<compile_context>
chip_gen: v6e
topology: v6e:2x2x1
jax: 0.10.0
libtpu: 0.0.40
codegen_flags: <defaults>
</compile_context>

<pallas_src>
import functools
import math

import jax
import jax.numpy as jnp
from jax import lax
from jax.experimental import pallas as pl
from jax.experimental.pallas import tpu as pltpu


def _round_up(x, m):
    return (x + m - 1) // m * m


# ---------------------------------------------------------------------------
# Kernel 1: row-tiled linear (used for the fused QKV projection).
# ---------------------------------------------------------------------------
def linear_kernel(x_ref, w_ref, b_ref, o_ref):
    acc = jnp.dot(x_ref[...], w_ref[...], preferred_element_type=jnp.float32)
    o_ref[...] = (acc + b_ref[...]).astype(o_ref.dtype)


def linear_pallas(x, w, b, *, max_tile_rows=512):
    rows, fin = x.shape
    fout = w.shape[1]
    rows8 = _round_up(rows, 8)                 # pad only to the sublane multiple
    if rows8 != rows:
        x = jnp.pad(x, ((0, rows8 - rows), (0, 0)))
    tile = min(max_tile_rows, rows8)
    grid = pl.cdiv(rows8, tile)                # ragged last block handled by Pallas
    cost = pl.CostEstimate(
        flops=2 * rows8 * fin * fout,
        transcendentals=0,
        bytes_accessed=4 * (rows8 * (fin + fout) + fin * fout))
    out = pl.pallas_call(
        linear_kernel,
        out_shape=jax.ShapeDtypeStruct((rows8, fout), x.dtype),
        grid_spec=pltpu.PrefetchScalarGridSpec(
            num_scalar_prefetch=0,
            grid=(grid,),
            in_specs=[
                pl.BlockSpec((tile, fin), lambda i: (i, 0)),
                pl.BlockSpec((fin, fout), lambda i: (0, 0)),
                pl.BlockSpec((1, fout), lambda i: (0, 0)),
            ],
            out_specs=pl.BlockSpec((tile, fout), lambda i: (i, 0)),
        ),
        compiler_params=pltpu.CompilerParams(dimension_semantics=("parallel",)),
        cost_estimate=cost,
    )(x, w, b.reshape(1, fout))
    return out[:rows]


# ---------------------------------------------------------------------------
# Kernel 2: sparse attention core.
#   One grid step processes `gblk` (batch, time) slices, all heads per slice.
#   q_ref: (gblk, S, F) selected queries (head-major columns)
#   k_ref/v_ref/o_ref: (gblk, N, F)  -- lane-dense last dim F = heads * dim.
# ---------------------------------------------------------------------------
def sparse_attn_kernel(q_ref, k_ref, v_ref, o_ref, *, heads, dim, scale, gblk):
    def one_slice(g, carry):
        # scale folded into q: S*F work instead of S*N, and keeps the MXU input small
        q_all = q_ref[g].astype(jnp.float32) * scale            # (S, F)
        k_all = k_ref[g].astype(jnp.float32)                    # (N, F)
        v_all = v_ref[g].astype(jnp.float32)                    # (N, F)
        outs = []
        for hh in range(heads):                                 # static, unrolled head loop
            lo = hh * dim
            q = q_all[:, lo:lo + dim]                           # (S, d)
            k = k_all[:, lo:lo + dim]                           # (N, d)
            v = v_all[:, lo:lo + dim]                           # (N, d)

            s = lax.dot_general(q, k, (((1,), (1,)), ((), ())),
                                preferred_element_type=jnp.float32)      # (S, N)
            s_max = jnp.max(s, axis=-1, keepdims=True)
            p = jnp.exp(s - s_max)
            # exact reciprocal-multiply (one (S,1) divide instead of S*N divides);
            # approx=True would be nearly free on the EUP but perturbs the cp tie-break.
            inv = 1.0 / jnp.sum(p, axis=-1, keepdims=True)
            attn = p * inv                                               # (S, N)

            ctx = jnp.dot(attn, v, preferred_element_type=jnp.float32)   # (S, d)

            # cp[n] = first selected-query index with maximal attention on key n
            # (matches torch.argmax over dim=-2), realised as a transpose-free
            # one-hot dot_general gather.
            col_max = jnp.max(attn, axis=0, keepdims=True)               # (1, N)
            row_ids = lax.broadcasted_iota(jnp.int32, attn.shape, 0)     # int32, no f32 cast
            cp = jnp.min(jnp.where(attn >= col_max, row_ids, attn.shape[0]),
                         axis=0, keepdims=True)                          # (1, N)
            sel = (row_ids == cp).astype(jnp.float32)                    # (S, N) one-hot cols
            outs.append(lax.dot_general(sel, ctx, (((0,), (0,)), ((), ())),
                                        preferred_element_type=jnp.float32))   # (N, d)
        # one lane-dense (N, F) store per slice: heads already merged, no post-kernel transpose
        o_ref[g] = jnp.concatenate(outs, axis=-1).astype(o_ref.dtype)
        return carry

    lax.fori_loop(0, gblk, one_slice, 0, unroll=gblk <= 8)


def sparse_attention_pallas(q_red, k, v, *, heads, dim, scale, vmem_budget_bytes=8 << 20):
    g, n_sel, feat = q_red.shape
    n = k.shape[1]

    # Batch gblk slices per grid step to amortise per-step overhead.  Keep the
    # double-buffered blocks well under a conservative VMEM budget (v7x scoped default
    # is 32 MiB) and keep >=2 grid steps so both v7x TensorCores get balanced work.
    bytes_per_slice = 4 * (n_sel + 3 * n) * feat
    cap = max(1, vmem_budget_bytes // (2 * bytes_per_slice))
    if g >= 2:
        cap = min(cap, g // 2)
    gblk = 1
    for cand in range(min(cap, g), 0, -1):
        if g % cand == 0:
            gblk = cand
            break

    cost = pl.CostEstimate(
        flops=6 * g * heads * n_sel * n * dim,          # scores + ctx + one-hot gather matmuls
        transcendentals=g * heads * n_sel * n,          # exp
        bytes_accessed=4 * g * (n_sel + 3 * n) * feat)

    kern = functools.partial(sparse_attn_kernel, heads=heads, dim=dim, scale=scale, gblk=gblk)
    return pl.pallas_call(
        kern,
        out_shape=jax.ShapeDtypeStruct((g, n, feat), v.dtype),
        grid_spec=pltpu.PrefetchScalarGridSpec(
            num_scalar_prefetch=0,
            grid=(g // gblk,),
            in_specs=[
                pl.BlockSpec((gblk, n_sel, feat), lambda i: (i, 0, 0)),
                pl.BlockSpec((gblk, n, feat), lambda i: (i, 0, 0)),
                pl.BlockSpec((gblk, n, feat), lambda i: (i, 0, 0)),
            ],
            out_specs=pl.BlockSpec((gblk, n, feat), lambda i: (i, 0, 0)),
        ),
        compiler_params=pltpu.CompilerParams(dimension_semantics=("parallel",)),
        cost_estimate=cost,
    )(q_red, k, v)


# ---------------------------------------------------------------------------
# Kernel 3: fused output head: ofc linear -> LayerNorm(affine) ->
#           FF(linear-relu-linear) + residual -> LayerNorm(no affine).
# ---------------------------------------------------------------------------
def output_head_kernel(x_ref, wo_ref, bo_ref, g_ref, be_ref,
                       w1_ref, b1_ref, w2_ref, b2_ref, o_ref, *, eps):
    x = x_ref[...].astype(jnp.float32)
    y = jnp.dot(x, wo_ref[...], preferred_element_type=jnp.float32) + bo_ref[...]
    mu = jnp.mean(y, axis=-1, keepdims=True)
    var = jnp.mean(jnp.square(y - mu), axis=-1, keepdims=True)
    y = (y - mu) * lax.rsqrt(var + eps) * g_ref[...] + be_ref[...]

    h = jnp.dot(y, w1_ref[...], preferred_element_type=jnp.float32) + b1_ref[...]
    h = jnp.maximum(h, 0.0)
    h = jnp.dot(h, w2_ref[...], preferred_element_type=jnp.float32) + b2_ref[...]
    h = h + y

    mu2 = jnp.mean(h, axis=-1, keepdims=True)
    var2 = jnp.mean(jnp.square(h - mu2), axis=-1, keepdims=True)
    o_ref[...] = ((h - mu2) * lax.rsqrt(var2 + eps)).astype(o_ref.dtype)


def output_head_pallas(x, wo, bo, gamma, beta, w1, b1, w2, b2,
                       *, eps=1e-5, max_tile_rows=512):
    rows, feat = x.shape
    rows8 = _round_up(rows, 8)
    if rows8 != rows:
        x = jnp.pad(x, ((0, rows8 - rows), (0, 0)))
    tile = min(max_tile_rows, rows8)
    grid = pl.cdiv(rows8, tile)
    row_spec = pl.BlockSpec((tile, feat), lambda i: (i, 0))
    mat_spec = pl.BlockSpec((feat, feat), lambda i: (0, 0))
    vec_spec = pl.BlockSpec((1, feat), lambda i: (0, 0))
    cost = pl.CostEstimate(
        flops=2 * 3 * rows8 * feat * feat,
        transcendentals=0,
        bytes_accessed=4 * (2 * rows8 * feat + 3 * feat * feat))
    out = pl.pallas_call(
        functools.partial(output_head_kernel, eps=eps),
        out_shape=jax.ShapeDtypeStruct((rows8, feat), x.dtype),
        grid_spec=pltpu.PrefetchScalarGridSpec(
            num_scalar_prefetch=0,
            grid=(grid,),
            in_specs=[row_spec, mat_spec, vec_spec, vec_spec, vec_spec,
                      mat_spec, vec_spec, mat_spec, vec_spec],
            out_specs=row_spec,
        ),
        compiler_params=pltpu.CompilerParams(dimension_semantics=("parallel",)),
        cost_estimate=cost,
    )(x, wo, bo.reshape(1, feat), gamma.reshape(1, feat), beta.reshape(1, feat),
      w1, b1.reshape(1, feat), w2, b2.reshape(1, feat))
    return out[:rows]


# ---------------------------------------------------------------------------
# Full forward (Pallas kernels + JAX glue).
# ---------------------------------------------------------------------------
def sparse_spatial_attention_forward(x, spa_eigvalue, spa_eigvec, tem_eigvalue, tem_eigvec,
                                     params, *, heads, dims, samples, localadj):
    b0, t, n, feat = x.shape
    h, d = heads, dims
    assert feat == h * d

    # eigen positional encoding: x + U_s diag(l_s) + U_t diag(l_t)
    pe = spa_eigvec * spa_eigvalue[None, :] + tem_eigvec * tem_eigvalue[None, :]   # (N, F)
    x_ = x + pe[None, None]

    rows = b0 * t * n
    # fused QKV projection (single HBM read of x_, one MXU matmul per row tile)
    w_qkv = jnp.concatenate([params["wq"], params["wk"], params["wv"]], axis=1)    # (F, 3F)
    b_qkv = jnp.concatenate([params["bq"], params["bk"], params["bv"]], axis=0)    # (3F,)
    qkv = linear_pallas(x_.reshape(rows, feat), w_qkv, b_qkv)
    q, k, v = jnp.split(qkv.reshape(b0, t, n, 3 * feat), 3, axis=-1)               # (B,T,N,F)

    # sampled-key scores M and top-k query selection (data-dependent glue).
    # The head axis stays trailing: no HBM head-split transpose of q/k/v.
    nl = localadj.shape[1]
    q5 = q.reshape(b0, t, n, h, d)
    k_sample = k[:, :, localadj, :].reshape(b0, t, n, nl, h, d)                    # (B,T,N,L,h,d)
    qk_sample = jnp.einsum("btnhd,btnlhd->bthnl", q5, k_sample)
    m_score = (jnp.einsum("bthnl,lo->bthno", qk_sample, params["w_proj"])[..., 0]
               + params["b_proj"][0])                                              # (B,T,h,N)
    n_sel = int(samples * math.log2(n))
    _, m_top = lax.top_k(m_score, n_sel)                                           # (B,T,h,S)

    # gather the selected queries; lay them out lane-dense (S, F) per (b,t) slice
    b_idx = jnp.arange(b0)[:, None, None, None]
    t_idx = jnp.arange(t)[None, :, None, None]
    h_idx = jnp.arange(h)[None, None, :, None]
    q_reduce = q5[b_idx, t_idx, m_top, h_idx]                                      # (B,T,h,S,d)
    q_reduce = jnp.transpose(q_reduce, (0, 1, 3, 2, 4)).reshape(b0 * t, n_sel, feat)

    # sparse attention core (Pallas): Gblk slices per grid step, all heads per slice,
    # output already in the head-merged (B,T,N,F) layout (no post-kernel transpose).
    ctx = sparse_attention_pallas(
        q_reduce,
        k.reshape(b0 * t, n, feat),
        v.reshape(b0 * t, n, feat),
        heads=h, dim=d, scale=1.0 / math.sqrt(d))                                  # (B*T, N, F)

    # fused output head: ofc + LayerNorm(affine) + FF + residual + LayerNorm(no affine)
    out = output_head_pallas(ctx.reshape(rows, feat),
                             params["wo"], params["bo"], params["ln_g"], params["ln_b"],
                             params["w1"], params["b1"], params["w2"], params["b2"])
    return out.reshape(b0, t, n, feat)


# ---------------------------------------------------------------------------
# Pure-JAX reference replicating the PyTorch forward op by op.
# ---------------------------------------------------------------------------
def reference_forward(x, spa_eigvalue, spa_eigvec, tem_eigvalue, tem_eigvec,
                      params, *, heads, dims, samples, localadj, eps=1e-5):
    h, d = heads, dims
    x_ = (x + jnp.matmul(spa_eigvec, jnp.diag(spa_eigvalue))
            + jnp.matmul(tem_eigvec, jnp.diag(tem_eigvalue)))

    def lin(z, w, b):
        return jnp.matmul(z, w) + b

    q = lin(x_, params["wq"], params["bq"])
    k = lin(x_, params["wk"], params["bk"])
    v = lin(x_, params["wv"], params["bv"])
    split = lambda z: jnp.concatenate(jnp.split(z, h, axis=-1), axis=0)
    q, k, v = split(q), split(k), split(v)
    bh, t, n, _ = k.shape

    k_sample = k[:, :, localadj, :]
    qk_sample = jnp.einsum("btnd,btnld->btnl", q, k_sample)
    m_score = (jnp.einsum("btnl,lo->btno", qk_sample, params["w_proj"])[..., 0]
               + params["b_proj"][0])
    n_sel = int(samples * math.log2(n))
    m_top = lax.top_k(m_score, n_sel)[1]
    q_reduce = jnp.take_along_axis(
        q, jnp.broadcast_to(m_top[..., None], (bh, t, n_sel, d)), axis=2)

    qk = jnp.einsum("btsd,btnd->btsn", q_reduce, k) / (d ** 0.5)
    attn = jax.nn.softmax(qk, axis=-1)
    cp = jnp.argmax(attn, axis=-2)                                      # (BH, T, N)
    ctx = jnp.einsum("btsn,btnd->btsd", attn, v)                        # (BH, T, S, d)
    value = jnp.take_along_axis(
        ctx, jnp.broadcast_to(cp[..., None], (bh, t, n, d)), axis=2)    # (BH, T, N, d)
    value = jnp.concatenate(jnp.split(value, h, axis=0), axis=-1)       # (B, T, N, F)

    y = lin(value, params["wo"], params["bo"])
    mu = jnp.mean(y, axis=-1, keepdims=True)
    var = jnp.mean(jnp.square(y - mu), axis=-1, keepdims=True)
    y = (y - mu) / jnp.sqrt(var + eps) * params["ln_g"] + params["ln_b"]

    hid = jnp.maximum(lin(y, params["w1"], params["b1"]), 0.0)
    out = lin(hid, params["w2"], params["b2"]) + y
    mu2 = jnp.mean(out, axis=-1, keepdims=True)
    var2 = jnp.mean(jnp.square(out - mu2), axis=-1, keepdims=True)
    return (out - mu2) / jnp.sqrt(var2 + eps)


if __name__ == "__main__":
    # Small but representative shapes: batch=2, time=4, nodes=16, heads=2, head_dim=16.
    B, T, N = 2, 4, 16
    heads, dims, samples = 2, 16, 2
    F = heads * dims                       # 32
    L = 6                                  # local-adjacency fan-out

    key = jax.random.PRNGKey(0)
    ks = jax.random.split(key, 21)
    x = jax.random.normal(ks[0], (B, T, N, F), dtype=jnp.float32)
    spa_eigvalue = jax.random.normal(ks[1], (F,), dtype=jnp.float32)
    tem_eigvalue = jax.random.normal(ks[2], (F,), dtype=jnp.float32)
    spa_eigvec = jax.random.normal(ks[3], (N, F), dtype=jnp.float32)
    tem_eigvec = jax.random.normal(ks[4], (N, F), dtype=jnp.float32)

    # deterministic local adjacency (any valid node indices)
    localadj = (jnp.arange(N, dtype=jnp.int32)[:, None] * 3
                + jnp.arange(L, dtype=jnp.int32)[None, :]) % N           # (N, L)

    def uniform(k, shape, fan_in):
        bound = 1.0 / math.sqrt(fan_in)
        return jax.random.uniform(k, shape, minval=-bound, maxval=bound, dtype=jnp.float32)

    params = {
        "wq": uniform(ks[5], (F, F), F), "bq": uniform(ks[6], (F,), F),
        "wk": uniform(ks[7], (F, F), F), "bk": uniform(ks[8], (F,), F),
        "wv": uniform(ks[9], (F, F), F), "bv": uniform(ks[10], (F,), F),
        "wo": uniform(ks[11], (F, F), F), "bo": uniform(ks[12], (F,), F),
        "w1": uniform(ks[13], (F, F), F), "b1": uniform(ks[14], (F,), F),
        "w2": uniform(ks[15], (F, F), F), "b2": uniform(ks[16], (F,), F),
        "w_proj": uniform(ks[17], (L, 1), L), "b_proj": uniform(ks[18], (1,), L),
        "ln_g": 1.0 + 0.1 * jax.random.normal(ks[19], (F,), dtype=jnp.float32),
        "ln_b": 0.1 * jax.random.normal(ks[20], (F,), dtype=jnp.float32),
    }

    fwd = jax.jit(functools.partial(
        sparse_spatial_attention_forward,
        heads=heads, dims=dims, samples=samples, localadj=localadj))
    out = jax.block_until_ready(
        fwd(x, spa_eigvalue, spa_eigvec, tem_eigvalue, tem_eigvec, params))

    ref = reference_forward(x, spa_eigvalue, spa_eigvec, tem_eigvalue, tem_eigvec, params,
                            heads=heads, dims=dims, samples=samples, localadj=localadj)
    assert out.shape == x.shape
    assert jnp.allclose(out, ref, atol=5e-4, rtol=5e-4), (
        f"mismatch vs reference: max abs err {float(jnp.max(jnp.abs(out - ref)))}")

    print("KERNEL_OK")
</pallas_src>

<mosaic_0001>
module attributes {stable_mosaic.version = 11 : i64} {
  func.func @linear_kernel(%arg0: i32, %arg1: memref<128x32xf32, #tpu.memory_space<vmem>>, %arg2: memref<32x96xf32, #tpu.memory_space<vmem>>, %arg3: memref<1x96xf32, #tpu.memory_space<vmem>>, %arg4: memref<128x96xf32, #tpu.memory_space<vmem>>) attributes {dimension_semantics = [#tpu.dimension_semantics<parallel>], iteration_bounds = array<i64: 1>, scalar_prefetch = 0 : i64, scratch_operands = 0 : i64, tpu.core_type = #tpu.core_type<tc>, window_params = [{transform_indices = @transform_0, window_bounds = array<i64: 128, 32>}, {pipeline_mode = #tpu.pipeline_mode<synchronous>, transform_indices = @transform_1, window_bounds = array<i64: 32, 96>}, {pipeline_mode = #tpu.pipeline_mode<synchronous>, transform_indices = @transform_2, window_bounds = array<i64: 1, 96>}, {transform_indices = @transform_3, window_bounds = array<i64: 128, 96>}]} {
    %c0 = arith.constant 0 : index
    %c0_0 = arith.constant 0 : index
    %0 = vector.load %arg1[%c0, %c0_0] : memref<128x32xf32, #tpu.memory_space<vmem>>, vector<128x32xf32>
    %c0_1 = arith.constant 0 : index
    %c0_2 = arith.constant 0 : index
    %1 = vector.load %arg2[%c0_1, %c0_2] : memref<32x96xf32, #tpu.memory_space<vmem>>, vector<32x96xf32>
    %cst = arith.constant dense<0.000000e+00> : vector<128x96xf32>
    %2 = tpu.matmul %0, %1, %cst {dimension_numbers = #tpu.dot_dimension_numbers<[1], [0], [0], [1], [0, 0, 1, 1], [], []>} : vector<128x32xf32>, vector<32x96xf32>, vector<128x96xf32> -> vector<128x96xf32>
    %c0_3 = arith.constant 0 : index
    %c0_4 = arith.constant 0 : index
    %3 = vector.load %arg3[%c0_3, %c0_4] : memref<1x96xf32, #tpu.memory_space<vmem>>, vector<1x96xf32>
    %4 = vector.broadcast %3 : vector<1x96xf32> to vector<128x96xf32>
    %5 = arith.addf %2, %4 : vector<128x96xf32>
    %c0_5 = arith.constant 0 : index
    %c0_6 = arith.constant 0 : index
    %6 = vector.load %arg4[%c0_5, %c0_6] : memref<128x96xf32, #tpu.memory_space<vmem>>, vector<128x96xf32>
    tpu.vector_store %arg4[%c0_5, %c0_6], %5 {strides = array<i32>} : memref<128x96xf32, #tpu.memory_space<vmem>>, vector<128x96xf32>,
    return
  }
  func.func @transform_0(%arg0: i32) -> (i32, i32) {
    %c0_i32 = arith.constant 0 : i32
    %c0_i32_0 = arith.constant 0 : i32
    return %arg0, %c0_i32 : i32, i32
  }
  func.func @transform_1(%arg0: i32) -> (i32, i32) {
    %c0_i32 = arith.constant 0 : i32
    %c0_i32_0 = arith.constant 0 : i32
    %c0_i32_1 = arith.constant 0 : i32
    return %c0_i32, %c0_i32_0 : i32, i32
  }
  func.func @transform_2(%arg0: i32) -> (i32, i32) {
    %c0_i32 = arith.constant 0 : i32
    %c0_i32_0 = arith.constant 0 : i32
    %c0_i32_1 = arith.constant 0 : i32
    return %c0_i32, %c0_i32_0 : i32, i32
  }
  func.func @transform_3(%arg0: i32) -> (i32, i32) {
    %c0_i32 = arith.constant 0 : i32
    %c0_i32_0 = arith.constant 0 : i32
    return %arg0, %c0_i32 : i32, i32
  }
}

module attributes {stable_mosaic.version = 11 : i64} {
  func.func @sparse_attn_kernel(%arg0: i32, %arg1: memref<4x8x32xf32, #tpu.memory_space<vmem>>, %arg2: memref<4x16x32xf32, #tpu.memory_space<vmem>>, %arg3: memref<4x16x32xf32, #tpu.memory_space<vmem>>, %arg4: memref<4x16x32xf32, #tpu.memory_space<vmem>>) attributes {dimension_semantics = [#tpu.dimension_semantics<parallel>], iteration_bounds = array<i64: 2>, scalar_prefetch = 0 : i64, scratch_operands = 0 : i64, tpu.core_type = #tpu.core_type<tc>, window_params = [{transform_indices = @transform_0, window_bounds = array<i64: 4, 8, 32>}, {transform_indices = @transform_1, window_bounds = array<i64: 4, 16, 32>}, {transform_indices = @transform_2, window_bounds = array<i64: 4, 16, 32>}, {transform_indices = @transform_3, window_bounds = array<i64: 4, 16, 32>}]} {
    %c0_i32 = arith.constant 0 : i32
    %0 = arith.index_cast %c0_i32 : i32 to index
    %c0 = arith.constant 0 : index
    %c0_0 = arith.constant 0 : index
    %1 = vector.load %arg1[%0, %c0, %c0_0] : memref<4x8x32xf32, #tpu.memory_space<vmem>>, vector<1x8x32xf32>
    %2 = vector.shape_cast %1 : vector<1x8x32xf32> to vector<8x32xf32>
    %cst = arith.constant 2.500000e-01 : f32
    %3 = vector.broadcast %cst : f32 to vector<8x32xf32>
    %4 = arith.mulf %2, %3 : vector<8x32xf32>
    %5 = arith.index_cast %c0_i32 : i32 to index
    %c0_1 = arith.constant 0 : index
    %c0_2 = arith.constant 0 : index
    %6 = vector.load %arg2[%5, %c0_1, %c0_2] : memref<4x16x32xf32, #tpu.memory_space<vmem>>, vector<1x16x32xf32>
    %7 = vector.shape_cast %6 : vector<1x16x32xf32> to vector<16x32xf32>
    %8 = arith.index_cast %c0_i32 : i32 to index
    %c0_3 = arith.constant 0 : index
    %c0_4 = arith.constant 0 : index
    %9 = vector.load %arg3[%8, %c0_3, %c0_4] : memref<4x16x32xf32, #tpu.memory_space<vmem>>, vector<1x16x32xf32>
    %10 = vector.shape_cast %9 : vector<1x16x32xf32> to vector<16x32xf32>
    %11 = vector.extract_strided_slice %4 {offsets = [0, 0], sizes = [8, 16], strides = [1, 1]} : vector<8x32xf32> to vector<8x16xf32>
    %12 = vector.extract_strided_slice %7 {offsets = [0, 0], sizes = [16, 16], strides = [1, 1]} : vector<16x32xf32> to vector<16x16xf32>
    %13 = vector.extract_strided_slice %10 {offsets = [0, 0], sizes = [16, 16], strides = [1, 1]} : vector<16x32xf32> to vector<16x16xf32>
    %cst_5 = arith.constant dense<0.000000e+00> : vector<8x16xf32>
    %14 = tpu.matmul %11, %12, %cst_5 {dimension_numbers = #tpu.dot_dimension_numbers<[1], [1], [0], [0], [0, 0, 1, 0], [], []>} : vector<8x16xf32>, vector<16x16xf32>, vector<8x16xf32> -> vector<8x16xf32>
    %cst_6 = arith.constant dense<0xFF800000> : vector<8xf32>
    %15 = vector.multi_reduction <maximumf>, %14, %cst_6 [1] : vector<8x16xf32> to vector<8xf32>
    %16 = vector.shape_cast %15 : vector<8xf32> to vector<8x1xf32>
    %17 = vector.broadcast %16 : vector<8x1xf32> to vector<8x16xf32>
    %18 = arith.subf %14, %17 : vector<8x16xf32>
    %19 = math.exp %18 : vector<8x16xf32>
    %cst_7 = arith.constant dense<0.000000e+00> : vector<8xf32>
    %20 = vector.multi_reduction <add>, %19, %cst_7 [1] : vector<8x16xf32> to vector<8xf32>
    %21 = vector.shape_cast %20 : vector<8xf32> to vector<8x1xf32>
    %cst_8 = arith.constant 1.000000e+00 : f32
    %22 = vector.broadcast %cst_8 : f32 to vector<8x1xf32>
    %23 = arith.divf %22, %21 : vector<8x1xf32>
    %24 = vector.broadcast %23 : vector<8x1xf32> to vector<8x16xf32>
    %25 = arith.mulf %19, %24 : vector<8x16xf32>
    %cst_9 = arith.constant dense<0.000000e+00> : vector<8x16xf32>
    %26 = tpu.matmul %25, %13, %cst_9 {dimension_numbers = #tpu.dot_dimension_numbers<[1], [0], [0], [1], [0, 0, 1, 1], [], []>} : vector<8x16xf32>, vector<16x16xf32>, vector<8x16xf32> -> vector<8x16xf32>
    %cst_10 = arith.constant dense<0xFF800000> : vector<16xf32>
    %27 = vector.multi_reduction <maximumf>, %25, %cst_10 [0] : vector<8x16xf32> to vector<16xf32>
    %28 = vector.shape_cast %27 : vector<16xf32> to vector<1x16xf32>
    %29 = tpu.iota {dimensions = array<i32: 0>} : vector<8x16xi32>
    %30 = vector.broadcast %28 : vector<1x16xf32> to vector<8x16xf32>
    %31 = arith.cmpf oge, %25, %30 : vector<8x16xf32>
    %c8_i32 = arith.constant 8 : i32
    %32 = vector.broadcast %c8_i32 : i32 to vector<8x16xi32>
    %33 = arith.select %31, %29, %32 : vector<8x16xi1>, vector<8x16xi32>
    %cst_11 = arith.constant dense<2147483647> : vector<16xi32>
    %34 = vector.multi_reduction <minsi>, %33, %cst_11 [0] : vector<8x16xi32> to vector<16xi32>
    %35 = vector.shape_cast %34 : vector<16xi32> to vector<1x16xi32>
    %36 = vector.broadcast %35 : vector<1x16xi32> to vector<8x16xi32>
    %37 = arith.cmpi eq, %29, %36 : vector<8x16xi32>
    %38 = arith.extui %37 : vector<8x16xi1> to vector<8x16xi32>
    %39 = arith.sitofp %38 : vector<8x16xi32> to vector<8x16xf32>
    %cst_12 = arith.constant dense<0.000000e+00> : vector<16x16xf32>
    %40 = tpu.matmul %39, %26, %cst_12 {dimension_numbers = #tpu.dot_dimension_numbers<[0], [0], [1], [1], [0, 1, 1, 1], [], []>} : vector<8x16xf32>, vector<8x16xf32>, vector<16x16xf32> -> vector<16x16xf32>
    %41 = vector.extract_strided_slice %4 {offsets = [0, 16], sizes = [8, 16], strides = [1, 1]} : vector<8x32xf32> to vector<8x16xf32>
    %42 = vector.extract_strided_slice %7 {offsets = [0, 16], sizes = [16, 16], strides = [1, 1]} : vector<16x32xf32> to vector<16x16xf32>
    %43 = vector.extract_strided_slice %10 {offsets = [0, 16], sizes = [16, 16], strides = [1, 1]} : vector<16x32xf32> to vector<16x16xf32>
    %cst_13 = arith.constant dense<0.000000e+00> : vector<8x16xf32>
    %44 = tpu.matmul %41, %42, %cst_13 {dimension_numbers = #tpu.dot_dimension_numbers<[1], [1], [0], [0], [0, 0, 1, 0], [], []>} : vector<8x16xf32>, vector<16x16xf32>, vector<8x16xf32> -> vector<8x16xf32>
    %cst_14 = arith.constant dense<0xFF800000> : vector<8xf32>
    %45 = vector.multi_reduction <maximumf>, %44, %cst_14 [1] : vector<8x16xf32> to vector<8xf32>
    %46 = vector.shape_cast %45 : vector<8xf32> to vector<8x1xf32>
    %47 = vector.broadcast %46 : vector<8x1xf32> to vector<8x16xf32>
    %48 = arith.subf %44, %47 : vector<8x16xf32>
    %49 = math.exp %48 : vector<8x16xf32>
    %cst_15 = arith.constant dense<0.000000e+00> : vector<8xf32>
    %50 = vector.multi_reduction <add>, %49, %cst_15 [1] : vector<8x16xf32> to vector<8xf32>
    %51 = vector.shape_cast %50 : vector<8xf32> to vector<8x1xf32>
    %cst_16 = arith.constant 1.000000e+00 : f32
    %52 = vector.broadcast %cst_16 : f32 to vector<8x1xf32>
    %53 = arith.divf %52, %51 : vector<8x1xf32>
    %54 = vector.broadcast %53 : vector<8x1xf32> to vector<8x16xf32>
    %55 = arith.mulf %49, %54 : vector<8x16xf32>
    %cst_17 = arith.constant dense<0.000000e+00> : vector<8x16xf32>
    %56 = tpu.matmul %55, %43, %cst_17 {dimension_numbers = #tpu.dot_dimension_numbers<[1], [0], [0], [1], [0, 0, 1, 1], [], []>} : vector<8x16xf32>, vector<16x16xf32>, vector<8x16xf32> -> vector<8x16xf32>
    %cst_18 = arith.constant dense<0xFF800000> : vector<16xf32>
    %57 = vector.multi_reduction <maximumf>, %55, %cst_18 [0] : vector<8x16xf32> to vector<16xf32>
    %58 = vector.shape_cast %57 : vector<16xf32> to vector<1x16xf32>
    %59 = tpu.iota {dimensions = array<i32: 0>} : vector<8x16xi32>
    %60 = vector.broadcast %58 : vector<1x16xf32> to vector<8x16xf32>
    %61 = arith.cmpf oge, %55, %60 : vector<8x16xf32>
    %c8_i32_19 = arith.constant 8 : i32
    %62 = vector.broadcast %c8_i32_19 : i32 to vector<8x16xi32>
    %63 = arith.select %61, %59, %62 : vector<8x16xi1>, vector<8x16xi32>
    %cst_20 = arith.constant dense<2147483647> : vector<16xi32>
    %64 = vector.multi_reduction <minsi>, %63, %cst_20 [0] : vector<8x16xi32> to vector<16xi32>
    %65 = vector.shape_cast %64 : vector<16xi32> to vector<1x16xi32>
    %66 = vector.broadcast %65 : vector<1x16xi32> to vector<8x16xi32>
    %67 = arith.cmpi eq, %59, %66 : vector<8x16xi32>
    %68 = arith.extui %67 : vector<8x16xi1> to vector<8x16xi32>
    %69 = arith.sitofp %68 : vector<8x16xi32> to vector<8x16xf32>
    %cst_21 = arith.constant dense<0.000000e+00> : vector<16x16xf32>
    %70 = tpu.matmul %69, %56, %cst_21 {dimension_numbers = #tpu.dot_dimension_numbers<[0], [0], [1], [1], [0, 1, 1, 1], [], []>} : vector<8x16xf32>, vector<8x16xf32>, vector<16x16xf32> -> vector<16x16xf32>
    %71 = tpu.concatenate %40, %70 in 1 : vector<16x16xf32>, vector<16x16xf32> -> vector<16x32xf32>
    %72 = arith.index_cast %c0_i32 : i32 to index
    %c0_22 = arith.constant 0 : index
    %c0_23 = arith.constant 0 : index
    %73 = vector.load %arg4[%72, %c0_22, %c0_23] : memref<4x16x32xf32, #tpu.memory_space<vmem>>, vector<1x16x32xf32>
    %74 = vector.shape_cast %73 : vector<1x16x32xf32> to vector<16x32xf32>
    %75 = vector.shape_cast %71 : vector<16x32xf32> to vector<1x16x32xf32>
    tpu.vector_store %arg4[%72, %c0_22, %c0_23], %75 {strides = array<i32>} : memref<4x16x32xf32, #tpu.memory_space<vmem>>, vector<1x16x32xf32>,
    %c1_i32 = arith.constant 1 : i32
    %76 = arith.index_cast %c1_i32 : i32 to index
    %c0_24 = arith.constant 0 : index
    %c0_25 = arith.constant 0 : index
    %77 = vector.load %arg1[%76, %c0_24, %c0_25] : memref<4x8x32xf32, #tpu.memory_space<vmem>>, vector<1x8x32xf32>
    %78 = vector.shape_cast %77 : vector<1x8x32xf32> to vector<8x32xf32>
    %cst_26 = arith.constant 2.500000e-01 : f32
    %79 = vector.broadcast %cst_26 : f32 to vector<8x32xf32>
    %80 = arith.mulf %78, %79 : vector<8x32xf32>
    %81 = arith.index_cast %c1_i32 : i32 to index
    %c0_27 = arith.constant 0 : index
    %c0_28 = arith.constant 0 : index
    %82 = vector.load %arg2[%81, %c0_27, %c0_28] : memref<4x16x32xf32, #tpu.memory_space<vmem>>, vector<1x16x32xf32>
    %83 = vector.shape_cast %82 : vector<1x16x32xf32> to vector<16x32xf32>
    %84 = arith.index_cast %c1_i32 : i32 to index
    %c0_29 = arith.constant 0 : index
    %c0_30 = arith.constant 0 : index
    %85 = vector.load %arg3[%84, %c0_29, %c0_30] : memref<4x16x32xf32, #tpu.memory_space<vmem>>, vector<1x16x32xf32>
    %86 = vector.shape_cast %85 : vector<1x16x32xf32> to vector<16x32xf32>
    %87 = vector.extract_strided_slice %80 {offsets = [0, 0], sizes = [8, 16], strides = [1, 1]} : vector<8x32xf32> to vector<8x16xf32>
    %88 = vector.extract_strided_slice %83 {offsets = [0, 0], sizes = [16, 16], strides = [1, 1]} : vector<16x32xf32> to vector<16x16xf32>
    %89 = vector.extract_strided_slice %86 {offsets = [0, 0], sizes = [16, 16], strides = [1, 1]} : vector<16x32xf32> to vector<16x16xf32>
    %cst_31 = arith.constant dense<0.000000e+00> : vector<8x16xf32>
    %90 = tpu.matmul %87, %88, %cst_31 {dimension_numbers = #tpu.dot_dimension_numbers<[1], [1], [0], [0], [0, 0, 1, 0], [], []>} : vector<8x16xf32>, vector<16x16xf32>, vector<8x16xf32> -> vector<8x16xf32>
    %cst_32 = arith.constant dense<0xFF800000> : vector<8xf32>
    %91 = vector.multi_reduction <maximumf>, %90, %cst_32 [1] : vector<8x16xf32> to vector<8xf32>
    %92 = vector.shape_cast %91 : vector<8xf32> to vector<8x1xf32>
    %93 = vector.broadcast %92 : vector<8x1xf32> to vector<8x16xf32>
    %94 = arith.subf %90, %93 : vector<8x16xf32>
    %95 = math.exp %94 : vector<8x16xf32>
    %cst_33 = arith.constant dense<0.000000e+00> : vector<8xf32>
    %96 = vector.multi_reduction <add>, %95, %cst_33 [1] : vector<8x16xf32> to vector<8xf32>
    %97 = vector.shape_cast %96 : vector<8xf32> to vector<8x1xf32>
    %cst_34 = arith.constant 1.000000e+00 : f32
    %98 = vector.broadcast %cst_34 : f32 to vector<8x1xf32>
    %99 = arith.divf %98, %97 : vector<8x1xf32>
    %100 = vector.broadcast %99 : vector<8x1xf32> to vector<8x16xf32>
    %101 = arith.mulf %95, %100 : vector<8x16xf32>
    %cst_35 = arith.constant dense<0.000000e+00> : vector<8x16xf32>
    %102 = tpu.matmul %101, %89, %cst_35 {dimension_numbers = #tpu.dot_dimension_numbers<[1], [0], [0], [1], [0, 0, 1, 1], [], []>} : vector<8x16xf32>, vector<16x16xf32>, vector<8x16xf32> -> vector<8x16xf32>
    %cst_36 = arith.constant dense<0xFF800000> : vector<16xf32>
    %103 = vector.multi_reduction <maximumf>, %101, %cst_36 [0] : vector<8x16xf32> to vector<16xf32>
    %104 = vector.shape_cast %103 : vector<16xf32> to vector<1x16xf32>
    %105 = tpu.iota {dimensions = array<i32: 0>} : vector<8x16xi32>
    %106 = vector.broadcast %104 : vector<1x16xf32> to vector<8x16xf32>
    %107 = arith.cmpf oge, %101, %106 : vector<8x16xf32>
    %c8_i32_37 = arith.constant 8 : i32
    %108 = vector.broadcast %c8_i32_37 : i32 to vector<8x16xi32>
    %109 = arith.select %107, %105, %108 : vector<8x16xi1>, vector<8x16xi32>
    %cst_38 = arith.constant dense<2147483647> : vector<16xi32>
    %110 = vector.multi_reduction <minsi>, %109, %cst_38 [0] : vector<8x16xi32> to vector<16xi32>
    %111 = vector.shape_cast %110 : vector<16xi32> to vector<1x16xi32>
    %112 = vector.broadcast %111 : vector<1x16xi32> to vector<8x16xi32>
    %113 = arith.cmpi eq, %105, %112 : vector<8x16xi32>
    %114 = arith.extui %113 : vector<8x16xi1> to vector<8x16xi32>
    %115 = arith.sitofp %114 : vector<8x16xi32> to vector<8x16xf32>
    %cst_39 = arith.constant dense<0.000000e+00> : vector<16x16xf32>
    %116 = tpu.matmul %115, %102, %cst_39 {dimension_numbers = #tpu.dot_dimension_numbers<[0], [0], [1], [1], [0, 1, 1, 1], [], []>} : vector<8x16xf32>, vector<8x16xf32>, vector<16x16xf32> -> vector<16x16xf32>
    %117 = vector.extract_strided_slice %80 {offsets = [0, 16], sizes = [8, 16], strides = [1, 1]} : vector<8x32xf32> to vector<8x16xf32>
    %118 = vector.extract_strided_slice %83 {offsets = [0, 16], sizes = [16, 16], strides = [1, 1]} : vector<16x32xf32> to vector<16x16xf32>
    %119 = vector.extract_strided_slice %86 {offsets = [0, 16], sizes = [16, 16], strides = [1, 1]} : vector<16x32xf32> to vector<16x16xf32>
    %cst_40 = arith.constant dense<0.000000e+00> : vector<8x16xf32>
    %120 = tpu.matmul %117, %118, %cst_40 {dimension_numbers = #tpu.dot_dimension_numbers<[1], [1], [0], [0], [0, 0, 1, 0], [], []>} : vector<8x16xf32>, vector<16x16xf32>, vector<8x16xf32> -> vector<8x16xf32>
    %cst_41 = arith.constant dense<0xFF800000> : vector<8xf32>
    %121 = vector.multi_reduction <maximumf>, %120, %cst_41 [1] : vector<8x16xf32> to vector<8xf32>
    %122 = vector.shape_cast %121 : vector<8xf32> to vector<8x1xf32>
    %123 = vector.broadcast %122 : vector<8x1xf32> to vector<8x16xf32>
    %124 = arith.subf %120, %123 : vector<8x16xf32>
    %125 = math.exp %124 : vector<8x16xf32>
    %cst_42 = arith.constant dense<0.000000e+00> : vector<8xf32>
    %126 = vector.multi_reduction <add>, %125, %cst_42 [1] : vector<8x16xf32> to vector<8xf32>
    %127 = vector.shape_cast %126 : vector<8xf32> to vector<8x1xf32>
    %cst_43 = arith.constant 1.000000e+00 : f32
    %128 = vector.broadcast %cst_43 : f32 to vector<8x1xf32>
    %129 = arith.divf %128, %127 : vector<8x1xf32>
    %130 = vector.broadcast %129 : vector<8x1xf32> to vector<8x16xf32>
    %131 = arith.mulf %125, %130 : vector<8x16xf32>
    %cst_44 = arith.constant dense<0.000000e+00> : vector<8x16xf32>
    %132 = tpu.matmul %131, %119, %cst_44 {dimension_numbers = #tpu.dot_dimension_numbers<[1], [0], [0], [1], [0, 0, 1, 1], [], []>} : vector<8x16xf32>, vector<16x16xf32>, vector<8x16xf32> -> vector<8x16xf32>
    %cst_45 = arith.constant dense<0xFF800000> : vector<16xf32>
    %133 = vector.multi_reduction <maximumf>, %131, %cst_45 [0] : vector<8x16xf32> to vector<16xf32>
    %134 = vector.shape_cast %133 : vector<16xf32> to vector<1x16xf32>
    %135 = tpu.iota {dimensions = array<i32: 0>} : vector<8x16xi32>
    %136 = vector.broadcast %134 : vector<1x16xf32> to vector<8x16xf32>
    %137 = arith.cmpf oge, %131, %136 : vector<8x16xf32>
    %c8_i32_46 = arith.constant 8 : i32
    %138 = vector.broadcast %c8_i32_46 : i32 to vector<8x16xi32>
    %139 = arith.select %137, %135, %138 : vector<8x16xi1>, vector<8x16xi32>
    %cst_47 = arith.constant dense<2147483647> : vector<16xi32>
    %140 = vector.multi_reduction <minsi>, %139, %cst_47 [0] : vector<8x16xi32> to vector<16xi32>
    %141 = vector.shape_cast %140 : vector<16xi32> to vector<1x16xi32>
    %142 = vector.broadcast %141 : vector<1x16xi32> to vector<8x16xi32>
    %143 = arith.cmpi eq, %135, %142 : vector<8x16xi32>
    %144 = arith.extui %143 : vector<8x16xi1> to vector<8x16xi32>
    %145 = arith.sitofp %144 : vector<8x16xi32> to vector<8x16xf32>
    %cst_48 = arith.constant dense<0.000000e+00> : vector<16x16xf32>
    %146 = tpu.matmul %145, %132, %cst_48 {dimension_numbers = #tpu.dot_dimension_numbers<[0], [0], [1], [1], [0, 1, 1, 1], [], []>} : vector<8x16xf32>, vector<8x16xf32>, vector<16x16xf32> -> vector<16x16xf32>
    %147 = tpu.concatenate %116, %146 in 1 : vector<16x16xf32>, vector<16x16xf32> -> vector<16x32xf32>
    %148 = arith.index_cast %c1_i32 : i32 to index
    %c0_49 = arith.constant 0 : index
    %c0_50 = arith.constant 0 : index
    %149 = vector.load %arg4[%148, %c0_49, %c0_50] : memref<4x16x32xf32, #tpu.memory_space<vmem>>, vector<1x16x32xf32>
    %150 = vector.shape_cast %149 : vector<1x16x32xf32> to vector<16x32xf32>
    %151 = vector.shape_cast %147 : vector<16x32xf32> to vector<1x16x32xf32>
    tpu.vector_store %arg4[%148, %c0_49, %c0_50], %151 {strides = array<i32>} : memref<4x16x32xf32, #tpu.memory_space<vmem>>, vector<1x16x32xf32>,
    %c2_i32 = arith.constant 2 : i32
    %152 = arith.index_cast %c2_i32 : i32 to index
    %c0_51 = arith.constant 0 : index
    %c0_52 = arith.constant 0 : index
    %153 = vector.load %arg1[%152, %c0_51, %c0_52] : memref<4x8x32xf32, #tpu.memory_space<vmem>>, vector<1x8x32xf32>
    %154 = vector.shape_cast %153 : vector<1x8x32xf32> to vector<8x32xf32>
    %cst_53 = arith.constant 2.500000e-01 : f32
    %155 = vector.broadcast %cst_53 : f32 to vector<8x32xf32>
    %156 = arith.mulf %154, %155 : vector<8x32xf32>
    %157 = arith.index_cast %c2_i32 : i32 to index
    %c0_54 = arith.constant 0 : index
    %c0_55 = arith.constant 0 : index
    %158 = vector.load %arg2[%157, %c0_54, %c0_55] : memref<4x16x32xf32, #tpu.memory_space<vmem>>, vector<1x16x32xf32>
    %159 = vector.shape_cast %158 : vector<1x16x32xf32> to vector<16x32xf32>
    %160 = arith.index_cast %c2_i32 : i32 to index
    %c0_56 = arith.constant 0 : index
    %c0_57 = arith.constant 0 : index
    %161 = vector.load %arg3[%160, %c0_56, %c0_57] : memref<4x16x32xf32, #tpu.memory_space<vmem>>, vector<1x16x32xf32>
    %162 = vector.shape_cast %161 : vector<1x16x32xf32> to vector<16x32xf32>
    %163 = vector.extract_strided_slice %156 {offsets = [0, 0], sizes = [8, 16], strides = [1, 1]} : vector<8x32xf32> to vector<8x16xf32>
    %164 = vector.extract_strided_slice %159 {offsets = [0, 0], sizes = [16, 16], strides = [1, 1]} : vector<16x32xf32> to vector<16x16xf32>
    %165 = vector.extract_strided_slice %162 {offsets = [0, 0], sizes = [16, 16], strides = [1, 1]} : vector<16x32xf32> to vector<16x16xf32>
    %cst_58 = arith.constant dense<0.000000e+00> : vector<8x16xf32>
    %166 = tpu.matmul %163, %164, %cst_58 {dimension_numbers = #tpu.dot_dimension_numbers<[1], [1], [0], [0], [0, 0, 1, 0], [], []>} : vector<8x16xf32>, vector<16x16xf32>, vector<8x16xf32> -> vector<8x16xf32>
    %cst_59 = arith.constant dense<0xFF800000> : vector<8xf32>
    %167 = vector.multi_reduction <maximumf>, %166, %cst_59 [1] : vector<8x16xf32> to vector<8xf32>
    %168 = vector.shape_cast %167 : vector<8xf32> to vector<8x1xf32>
    %169 = vector.broadcast %168 : vector<8x1xf32> to vector<8x16xf32>
    %170 = arith.subf %166, %169 : vector<8x16xf32>
    %171 = math.exp %170 : vector<8x16xf32>
    %cst_60 = arith.constant dense<0.000000e+00> : vector<8xf32>
    %172 = vector.multi_reduction <add>, %171, %cst_60 [1] : vector<8x16xf32> to vector<8xf32>
    %173 = vector.shape_cast %172 : vector<8xf32> to vector<8x1xf32>
    %cst_61 = arith.constant 1.000000e+00 : f32
    %174 = vector.broadcast %cst_61 : f32 to vector<8x1xf32>
    %175 = arith.divf %174, %173 : vector<8x1xf32>
    %176 = vector.broadcast %175 : vector<8x1xf32> to vector<8x16xf32>
    %177 = arith.mulf %171, %176 : vector<8x16xf32>
    %cst_62 = arith.constant dense<0.000000e+00> : vector<8x16xf32>
    %178 = tpu.matmul %177, %165, %cst_62 {dimension_numbers = #tpu.dot_dimension_numbers<[1], [0], [0], [1], [0, 0, 1, 1], [], []>} : vector<8x16xf32>, vector<16x16xf32>, vector<8x16xf32> -> vector<8x16xf32>
    %cst_63 = arith.constant dense<0xFF800000> : vector<16xf32>
    %179 = vector.multi_reduction <maximumf>, %177, %cst_63 [0] : vector<8x16xf32> to vector<16xf32>
    %180 = vector.shape_cast %179 : vector<16xf32> to vector<1x16xf32>
    %181 = tpu.iota {dimensions = array<i32: 0>} : vector<8x16xi32>
    %182 = vector.broadcast %180 : vector<1x16xf32> to vector<8x16xf32>
    %183 = arith.cmpf oge, %177, %182 : vector<8x16xf32>
    %c8_i32_64 = arith.constant 8 : i32
    %184 = vector.broadcast %c8_i32_64 : i32 to vector<8x16xi32>
    %185 = arith.select %183, %181, %184 : vector<8x16xi1>, vector<8x16xi32>
    %cst_65 = arith.constant dense<2147483647> : vector<16xi32>
    %186 = vector.multi_reduction <minsi>, %185, %cst_65 [0] : vector<8x16xi32> to vector<16xi32>
    %187 = vector.shape_cast %186 : vector<16xi32> to vector<1x16xi32>
    %188 = vector.broadcast %187 : vector<1x16xi32> to vector<8x16xi32>
    %189 = arith.cmpi eq, %181, %188 : vector<8x16xi32>
    %190 = arith.extui %189 : vector<8x16xi1> to vector<8x16xi32>
    %191 = arith.sitofp %190 : vector<8x16xi32> to vector<8x16xf32>
    %cst_66 = arith.constant dense<0.000000e+00> : vector<16x16xf32>
    %192 = tpu.matmul %191, %178, %cst_66 {dimension_numbers = #tpu.dot_dimension_numbers<[0], [0], [1], [1], [0, 1, 1, 1], [], []>} : vector<8x16xf32>, vector<8x16xf32>, vector<16x16xf32> -> vector<16x16xf32>
    %193 = vector.extract_strided_slice %156 {offsets = [0, 16], sizes = [8, 16], strides = [1, 1]} : vector<8x32xf32> to vector<8x16xf32>
    %194 = vector.extract_strided_slice %159 {offsets = [0, 16], sizes = [16, 16], strides = [1, 1]} : vector<16x32xf32> to vector<16x16xf32>
    %195 = vector.extract_strided_slice %162 {offsets = [0, 16], sizes = [16, 16], strides = [1, 1]} : vector<16x32xf32> to vector<16x16xf32>
    %cst_67 = arith.constant dense<0.000000e+00> : vector<8x16xf32>
    %196 = tpu.matmul %193, %194, %cst_67 {dimension_numbers = #tpu.dot_dimension_numbers<[1], [1], [0], [0], [0, 0, 1, 0], [], []>} : vector<8x16xf32>, vector<16x16xf32>, vector<8x16xf32> -> vector<8x16xf32>
    %cst_68 = arith.constant dense<0xFF800000> : vector<8xf32>
    %197 = vector.multi_reduction <maximumf>, %196, %cst_68 [1] : vector<8x16xf32> to vector<8xf32>
    %198 = vector.shape_cast %197 : vector<8xf32> to vector<8x1xf32>
    %199 = vector.broadcast %198 : vector<8x1xf32> to vector<8x16xf32>
    %200 = arith.subf %196, %199 : vector<8x16xf32>
    %201 = math.exp %200 : vector<8x16xf32>
    %cst_69 = arith.constant dense<0.000000e+00> : vector<8xf32>
    %202 = vector.multi_reduction <add>, %201, %cst_69 [1] : vector<8x16xf32> to vector<8xf32>
    %203 = vector.shape_cast %202 : vector<8xf32> to vector<8x1xf32>
    %cst_70 = arith.constant 1.000000e+00 : f32
    %204 = vector.broadcast %cst_70 : f32 to vector<8x1xf32>
    %205 = arith.divf %204, %203 : vector<8x1xf32>
    %206 = vector.broadcast %205 : vector<8x1xf32> to vector<8x16xf32>
    %207 = arith.mulf %201, %206 : vector<8x16xf32>
    %cst_71 = arith.constant dense<0.000000e+00> : vector<8x16xf32>
    %208 = tpu.matmul %207, %195, %cst_71 {dimension_numbers = #tpu.dot_dimension_numbers<[1], [0], [0], [1], [0, 0, 1, 1], [], []>} : vector<8x16xf32>, vector<16x16xf32>, vector<8x16xf32> -> vector<8x16xf32>
    %cst_72 = arith.constant dense<0xFF800000> : vector<16xf32>
    %209 = vector.multi_reduction <maximumf>, %207, %cst_72 [0] : vector<8x16xf32> to vector<16xf32>
    %210 = vector.shape_cast %209 : vector<16xf32> to vector<1x16xf32>
    %211 = tpu.iota {dimensions = array<i32: 0>} : vector<8x16xi32>
    %212 = vector.broadcast %210 : vector<1x16xf32> to vector<8x16xf32>
    %213 = arith.cmpf oge, %207, %212 : vector<8x16xf32>
    %c8_i32_73 = arith.constant 8 : i32
    %214 = vector.broadcast %c8_i32_73 : i32 to vector<8x16xi32>
    %215 = arith.select %213, %211, %214 : vector<8x16xi1>, vector<8x16xi32>
    %cst_74 = arith.constant dense<2147483647> : vector<16xi32>
    %216 = vector.multi_reduction <minsi>, %215, %cst_74 [0] : vector<8x16xi32> to vector<16xi32>
    %217 = vector.shape_cast %216 : vector<16xi32> to vector<1x16xi32>
    %218 = vector.broadcast %217 : vector<1x16xi32> to vector<8x16xi32>
    %219 = arith.cmpi eq, %211, %218 : vector<8x16xi32>
    %220 = arith.extui %219 : vector<8x16xi1> to vector<8x16xi32>
    %221 = arith.sitofp %220 : vector<8x16xi32> to vector<8x16xf32>
    %cst_75 = arith.constant dense<0.000000e+00> : vector<16x16xf32>
    %222 = tpu.matmul %221, %208, %cst_75 {dimension_numbers = #tpu.dot_dimension_numbers<[0], [0], [1], [1], [0, 1, 1, 1], [], []>} : vector<8x16xf32>, vector<8x16xf32>, vector<16x16xf32> -> vector<16x16xf32>
    %223 = tpu.concatenate %192, %222 in 1 : vector<16x16xf32>, vector<16x16xf32> -> vector<16x32xf32>
    %224 = arith.index_cast %c2_i32 : i32 to index
    %c0_76 = arith.constant 0 : index
    %c0_77 = arith.constant 0 : index
    %225 = vector.load %arg4[%224, %c0_76, %c0_77] : memref<4x16x32xf32, #tpu.memory_space<vmem>>, vector<1x16x32xf32>
    %226 = vector.shape_cast %225 : vector<1x16x32xf32> to vector<16x32xf32>
    %227 = vector.shape_cast %223 : vector<16x32xf32> to vector<1x16x32xf32>
    tpu.vector_store %arg4[%224, %c0_76, %c0_77], %227 {strides = array<i32>} : memref<4x16x32xf32, #tpu.memory_space<vmem>>, vector<1x16x32xf32>,
    %c3_i32 = arith.constant 3 : i32
    %228 = arith.index_cast %c3_i32 : i32 to index
    %c0_78 = arith.constant 0 : index
    %c0_79 = arith.constant 0 : index
    %229 = vector.load %arg1[%228, %c0_78, %c0_79] : memref<4x8x32xf32, #tpu.memory_space<vmem>>, vector<1x8x32xf32>
    %230 = vector.shape_cast %229 : vector<1x8x32xf32> to vector<8x32xf32>
    %cst_80 = arith.constant 2.500000e-01 : f32
    %231 = vector.broadcast %cst_80 : f32 to vector<8x32xf32>
    %232 = arith.mulf %230, %231 : vector<8x32xf32>
    %233 = arith.index_cast %c3_i32 : i32 to index
    %c0_81 = arith.constant 0 : index
    %c0_82 = arith.constant 0 : index
    %234 = vector.load %arg2[%233, %c0_81, %c0_82] : memref<4x16x32xf32, #tpu.memory_space<vmem>>, vector<1x16x32xf32>
    %235 = vector.shape_cast %234 : vector<1x16x32xf32> to vector<16x32xf32>
    %236 = arith.index_cast %c3_i32 : i32 to index
    %c0_83 = arith.constant 0 : index
    %c0_84 = arith.constant 0 : index
    %237 = vector.load %arg3[%236, %c0_83, %c0_84] : memref<4x16x32xf32, #tpu.memory_space<vmem>>, vector<1x16x32xf32>
    %238 = vector.shape_cast %237 : vector<1x16x32xf32> to vector<16x32xf32>
    %239 = vector.extract_strided_slice %232 {offsets = [0, 0], sizes = [8, 16], strides = [1, 1]} : vector<8x32xf32> to vector<8x16xf32>
    %240 = vector.extract_strided_slice %235 {offsets = [0, 0], sizes = [16, 16], strides = [1, 1]} : vector<16x32xf32> to vector<16x16xf32>
    %241 = vector.extract_strided_slice %238 {offsets = [0, 0], sizes = [16, 16], strides = [1, 1]} : vector<16x32xf32> to vector<16x16xf32>
    %cst_85 = arith.constant dense<0.000000e+00> : vector<8x16xf32>
    %242 = tpu.matmul %239, %240, %cst_85 {dimension_numbers = #tpu.dot_dimension_numbers<[1], [1], [0], [0], [0, 0, 1, 0], [], []>} : vector<8x16xf32>, vector<16x16xf32>, vector<8x16xf32> -> vector<8x16xf32>
    %cst_86 = arith.constant dense<0xFF800000> : vector<8xf32>
    %243 = vector.multi_reduction <maximumf>, %242, %cst_86 [1] : vector<8x16xf32> to vector<8xf32>
    %244 = vector.shape_cast %243 : vector<8xf32> to vector<8x1xf32>
    %245 = vector.broadcast %244 : vector<8x1xf32> to vector<8x16xf32>
    %246 = arith.subf %242, %245 : vector<8x16xf32>
    %247 = math.exp %246 : vector<8x16xf32>
    %cst_87 = arith.constant dense<0.000000e+00> : vector<8xf32>
    %248 = vector.multi_reduction <add>, %247, %cst_87 [1] : vector<8x16xf32> to vector<8xf32>
    %249 = vector.shape_cast %248 : vector<8xf32> to vector<8x1xf32>
    %cst_88 = arith.constant 1.000000e+00 : f32
    %250 = vector.broadcast %cst_88 : f32 to vector<8x1xf32>
    %251 = arith.divf %250, %249 : vector<8x1xf32>
    %252 = vector.broadcast %251 : vector<8x1xf32> to vector<8x16xf32>
    %253 = arith.mulf %247, %252 : vector<8x16xf32>
    %cst_89 = arith.constant dense<0.000000e+00> : vector<8x16xf32>
    %254 = tpu.matmul %253, %241, %cst_89 {dimension_numbers = #tpu.dot_dimension_numbers<[1], [0], [0], [1], [0, 0, 1, 1], [], []>} : vector<8x16xf32>, vector<16x16xf32>, vector<8x16xf32> -> vector<8x16xf32>
    %cst_90 = arith.constant dense<0xFF800000> : vector<16xf32>
    %255 = vector.multi_reduction <maximumf>, %253, %cst_90 [0] : vector<8x16xf32> to vector<16xf32>
    %256 = vector.shape_cast %255 : vector<16xf32> to vector<1x16xf32>
    %257 = tpu.iota {dimensions = array<i32: 0>} : vector<8x16xi32>
    %258 = vector.broadcast %256 : vector<1x16xf32> to vector<8x16xf32>
    %259 = arith.cmpf oge, %253, %258 : vector<8x16xf32>
    %c8_i32_91 = arith.constant 8 : i32
    %260 = vector.broadcast %c8_i32_91 : i32 to vector<8x16xi32>
    %261 = arith.select %259, %257, %260 : vector<8x16xi1>, vector<8x16xi32>
    %cst_92 = arith.constant dense<2147483647> : vector<16xi32>
    %262 = vector.multi_reduction <minsi>, %261, %cst_92 [0] : vector<8x16xi32> to vector<16xi32>
    %263 = vector.shape_cast %262 : vector<16xi32> to vector<1x16xi32>
    %264 = vector.broadcast %263 : vector<1x16xi32> to vector<8x16xi32>
    %265 = arith.cmpi eq, %257, %264 : vector<8x16xi32>
    %266 = arith.extui %265 : vector<8x16xi1> to vector<8x16xi32>
    %267 = arith.sitofp %266 : vector<8x16xi32> to vector<8x16xf32>
    %cst_93 = arith.constant dense<0.000000e+00> : vector<16x16xf32>
    %268 = tpu.matmul %267, %254, %cst_93 {dimension_numbers = #tpu.dot_dimension_numbers<[0], [0], [1], [1], [0, 1, 1, 1], [], []>} : vector<8x16xf32>, vector<8x16xf32>, vector<16x16xf32> -> vector<16x16xf32>
    %269 = vector.extract_strided_slice %232 {offsets = [0, 16], sizes = [8, 16], strides = [1, 1]} : vector<8x32xf32> to vector<8x16xf32>
    %270 = vector.extract_strided_slice %235 {offsets = [0, 16], sizes = [16, 16], strides = [1, 1]} : vector<16x32xf32> to vector<16x16xf32>
    %271 = vector.extract_strided_slice %238 {offsets = [0, 16], sizes = [16, 16], strides = [1, 1]} : vector<16x32xf32> to vector<16x16xf32>
    %cst_94 = arith.constant dense<0.000000e+00> : vector<8x16xf32>
    %272 = tpu.matmul %269, %270, %cst_94 {dimension_numbers = #tpu.dot_dimension_numbers<[1], [1], [0], [0], [0, 0, 1, 0], [], []>} : vector<8x16xf32>, vector<16x16xf32>, vector<8x16xf32> -> vector<8x16xf32>
    %cst_95 = arith.constant dense<0xFF800000> : vector<8xf32>
    %273 = vector.multi_reduction <maximumf>, %272, %cst_95 [1] : vector<8x16xf32> to vector<8xf32>
    %274 = vector.shape_cast %273 : vector<8xf32> to vector<8x1xf32>
    %275 = vector.broadcast %274 : vector<8x1xf32> to vector<8x16xf32>
    %276 = arith.subf %272, %275 : vector<8x16xf32>
    %277 = math.exp %276 : vector<8x16xf32>
    %cst_96 = arith.constant dense<0.000000e+00> : vector<8xf32>
    %278 = vector.multi_reduction <add>, %277, %cst_96 [1] : vector<8x16xf32> to vector<8xf32>
    %279 = vector.shape_cast %278 : vector<8xf32> to vector<8x1xf32>
    %cst_97 = arith.constant 1.000000e+00 : f32
    %280 = vector.broadcast %cst_97 : f32 to vector<8x1xf32>
    %281 = arith.divf %280, %279 : vector<8x1xf32>
    %282 = vector.broadcast %281 : vector<8x1xf32> to vector<8x16xf32>
    %283 = arith.mulf %277, %282 : vector<8x16xf32>
    %cst_98 = arith.constant dense<0.000000e+00> : vector<8x16xf32>
    %284 = tpu.matmul %283, %271, %cst_98 {dimension_numbers = #tpu.dot_dimension_numbers<[1], [0], [0], [1], [0, 0, 1, 1], [], []>} : vector<8x16xf32>, vector<16x16xf32>, vector<8x16xf32> -> vector<8x16xf32>
    %cst_99 = arith.constant dense<0xFF800000> : vector<16xf32>
    %285 = vector.multi_reduction <maximumf>, %283, %cst_99 [0] : vector<8x16xf32> to vector<16xf32>
    %286 = vector.shape_cast %285 : vector<16xf32> to vector<1x16xf32>
    %287 = tpu.iota {dimensions = array<i32: 0>} : vector<8x16xi32>
    %288 = vector.broadcast %286 : vector<1x16xf32> to vector<8x16xf32>
    %289 = arith.cmpf oge, %283, %288 : vector<8x16xf32>
    %c8_i32_100 = arith.constant 8 : i32
    %290 = vector.broadcast %c8_i32_100 : i32 to vector<8x16xi32>
    %291 = arith.select %289, %287, %290 : vector<8x16xi1>, vector<8x16xi32>
    %cst_101 = arith.constant dense<2147483647> : vector<16xi32>
    %292 = vector.multi_reduction <minsi>, %291, %cst_101 [0] : vector<8x16xi32> to vector<16xi32>
    %293 = vector.shape_cast %292 : vector<16xi32> to vector<1x16xi32>
    %294 = vector.broadcast %293 : vector<1x16xi32> to vector<8x16xi32>
    %295 = arith.cmpi eq, %287, %294 : vector<8x16xi32>
    %296 = arith.extui %295 : vector<8x16xi1> to vector<8x16xi32>
    %297 = arith.sitofp %296 : vector<8x16xi32> to vector<8x16xf32>
    %cst_102 = arith.constant dense<0.000000e+00> : vector<16x16xf32>
    %298 = tpu.matmul %297, %284, %cst_102 {dimension_numbers = #tpu.dot_dimension_numbers<[0], [0], [1], [1], [0, 1, 1, 1], [], []>} : vector<8x16xf32>, vector<8x16xf32>, vector<16x16xf32> -> vector<16x16xf32>
    %299 = tpu.concatenate %268, %298 in 1 : vector<16x16xf32>, vector<16x16xf32> -> vector<16x32xf32>
    %300 = arith.index_cast %c3_i32 : i32 to index
    %c0_103 = arith.constant 0 : index
    %c0_104 = arith.constant 0 : index
    %301 = vector.load %arg4[%300, %c0_103, %c0_104] : memref<4x16x32xf32, #tpu.memory_space<vmem>>, vector<1x16x32xf32>
    %302 = vector.shape_cast %301 : vector<1x16x32xf32> to vector<16x32xf32>
    %303 = vector.shape_cast %299 : vector<16x32xf32> to vector<1x16x32xf32>
    tpu.vector_store %arg4[%300, %c0_103, %c0_104], %303 {strides = array<i32>} : memref<4x16x32xf32, #tpu.memory_space<vmem>>, vector<1x16x32xf32>,
    %c4_i32 = arith.constant 4 : i32
    return
  }
  func.func @transform_0(%arg0: i32) -> (i32, i32, i32) {
    %c0_i32 = arith.constant 0 : i32
    %c0_i32_0 = arith.constant 0 : i32
    %c0_i32_1 = arith.constant 0 : i32
    return %arg0, %c0_i32, %c0_i32_0 : i32, i32, i32
  }
  func.func @transform_1(%arg0: i32) -> (i32, i32, i32) {
    %c0_i32 = arith.constant 0 : i32
    %c0_i32_0 = arith.constant 0 : i32
    %c0_i32_1 = arith.constant 0 : i32
    return %arg0, %c0_i32, %c0_i32_0 : i32, i32, i32
  }
  func.func @transform_2(%arg0: i32) -> (i32, i32, i32) {
    %c0_i32 = arith.constant 0 : i32
    %c0_i32_0 = arith.constant 0 : i32
    %c0_i32_1 = arith.constant 0 : i32
    return %arg0, %c0_i32, %c0_i32_0 : i32, i32, i32
  }
  func.func @transform_3(%arg0: i32) -> (i32, i32, i32) {
    %c0_i32 = arith.constant 0 : i32
    %c0_i32_0 = arith.constant 0 : i32
    %c0_i32_1 = arith.constant 0 : i32
    return %arg0, %c0_i32, %c0_i32_0 : i32, i32, i32
  }
}

module attributes {stable_mosaic.version = 11 : i64} {
  func.func @output_head_kernel(%arg0: i32, %arg1: memref<128x32xf32, #tpu.memory_space<vmem>>, %arg2: memref<32x32xf32, #tpu.memory_space<vmem>>, %arg3: memref<1x32xf32, #tpu.memory_space<vmem>>, %arg4: memref<1x32xf32, #tpu.memory_space<vmem>>, %arg5: memref<1x32xf32, #tpu.memory_space<vmem>>, %arg6: memref<32x32xf32, #tpu.memory_space<vmem>>, %arg7: memref<1x32xf32, #tpu.memory_space<vmem>>, %arg8: memref<32x32xf32, #tpu.memory_space<vmem>>, %arg9: memref<1x32xf32, #tpu.memory_space<vmem>>, %arg10: memref<128x32xf32, #tpu.memory_space<vmem>>) attributes {dimension_semantics = [#tpu.dimension_semantics<parallel>], iteration_bounds = array<i64: 1>, scalar_prefetch = 0 : i64, scratch_operands = 0 : i64, tpu.core_type = #tpu.core_type<tc>, window_params = [{transform_indices = @transform_0, window_bounds = array<i64: 128, 32>}, {pipeline_mode = #tpu.pipeline_mode<synchronous>, transform_indices = @transform_1, window_bounds = array<i64: 32, 32>}, {pipeline_mode = #tpu.pipeline_mode<synchronous>, transform_indices = @transform_2, window_bounds = array<i64: 1, 32>}, {pipeline_mode = #tpu.pipeline_mode<synchronous>, transform_indices = @transform_3, window_bounds = array<i64: 1, 32>}, {pipeline_mode = #tpu.pipeline_mode<synchronous>, transform_indices = @transform_4, window_bounds = array<i64: 1, 32>}, {pipeline_mode = #tpu.pipeline_mode<synchronous>, transform_indices = @transform_5, window_bounds = array<i64: 32, 32>}, {pipeline_mode = #tpu.pipeline_mode<synchronous>, transform_indices = @transform_6, window_bounds = array<i64: 1, 32>}, {pipeline_mode = #tpu.pipeline_mode<synchronous>, transform_indices = @transform_7, window_bounds = array<i64: 32, 32>}, {pipeline_mode = #tpu.pipeline_mode<synchronous>, transform_indices = @transform_8, window_bounds = array<i64: 1, 32>}, {transform_indices = @transform_9, window_bounds = array<i64: 128, 32>}]} {
    %c0 = arith.constant 0 : index
    %c0_0 = arith.constant 0 : index
    %0 = vector.load %arg1[%c0, %c0_0] : memref<128x32xf32, #tpu.memory_space<vmem>>, vector<128x32xf32>
    %c0_1 = arith.constant 0 : index
    %c0_2 = arith.constant 0 : index
    %1 = vector.load %arg2[%c0_1, %c0_2] : memref<32x32xf32, #tpu.memory_space<vmem>>, vector<32x32xf32>
    %cst = arith.constant dense<0.000000e+00> : vector<128x32xf32>
    %2 = tpu.matmul %0, %1, %cst {dimension_numbers = #tpu.dot_dimension_numbers<[1], [0], [0], [1], [0, 0, 1, 1], [], []>} : vector<128x32xf32>, vector<32x32xf32>, vector<128x32xf32> -> vector<128x32xf32>
    %c0_3 = arith.constant 0 : index
    %c0_4 = arith.constant 0 : index
    %3 = vector.load %arg3[%c0_3, %c0_4] : memref<1x32xf32, #tpu.memory_space<vmem>>, vector<1x32xf32>
    %4 = vector.broadcast %3 : vector<1x32xf32> to vector<128x32xf32>
    %5 = arith.addf %2, %4 : vector<128x32xf32>
    %cst_5 = arith.constant dense<0.000000e+00> : vector<128xf32>
    %6 = vector.multi_reduction <add>, %5, %cst_5 [1] : vector<128x32xf32> to vector<128xf32>
    %7 = vector.shape_cast %6 : vector<128xf32> to vector<128x1xf32>
    %cst_6 = arith.constant 3.200000e+01 : f32
    %8 = vector.broadcast %cst_6 : f32 to vector<128x1xf32>
    %9 = arith.divf %7, %8 : vector<128x1xf32>
    %10 = vector.broadcast %9 : vector<128x1xf32> to vector<128x32xf32>
    %11 = arith.subf %5, %10 : vector<128x32xf32>
    %12 = arith.mulf %11, %11 : vector<128x32xf32>
    %cst_7 = arith.constant dense<0.000000e+00> : vector<128xf32>
    %13 = vector.multi_reduction <add>, %12, %cst_7 [1] : vector<128x32xf32> to vector<128xf32>
    %14 = vector.shape_cast %13 : vector<128xf32> to vector<128x1xf32>
    %cst_8 = arith.constant 3.200000e+01 : f32
    %15 = vector.broadcast %cst_8 : f32 to vector<128x1xf32>
    %16 = arith.divf %14, %15 : vector<128x1xf32>
    %17 = vector.broadcast %9 : vector<128x1xf32> to vector<128x32xf32>
    %18 = arith.subf %5, %17 : vector<128x32xf32>
    %cst_9 = arith.constant 9.99999974E-6 : f32
    %19 = vector.broadcast %cst_9 : f32 to vector<128x1xf32>
    %20 = arith.addf %16, %19 : vector<128x1xf32>
    %21 = math.rsqrt %20 : vector<128x1xf32>
    %22 = vector.broadcast %21 : vector<128x1xf32> to vector<128x32xf32>
    %23 = arith.mulf %18, %22 : vector<128x32xf32>
    %c0_10 = arith.constant 0 : index
    %c0_11 = arith.constant 0 : index
    %24 = vector.load %arg4[%c0_10, %c0_11] : memref<1x32xf32, #tpu.memory_space<vmem>>, vector<1x32xf32>
    %25 = vector.broadcast %24 : vector<1x32xf32> to vector<128x32xf32>
    %26 = arith.mulf %23, %25 : vector<128x32xf32>
    %c0_12 = arith.constant 0 : index
    %c0_13 = arith.constant 0 : index
    %27 = vector.load %arg5[%c0_12, %c0_13] : memref<1x32xf32, #tpu.memory_space<vmem>>, vector<1x32xf32>
    %28 = vector.broadcast %27 : vector<1x32xf32> to vector<128x32xf32>
    %29 = arith.addf %26, %28 : vector<128x32xf32>
    %c0_14 = arith.constant 0 : index
    %c0_15 = arith.constant 0 : index
    %30 = vector.load %arg6[%c0_14, %c0_15] : memref<32x32xf32, #tpu.memory_space<vmem>>, vector<32x32xf32>
    %cst_16 = arith.constant dense<0.000000e+00> : vector<128x32xf32>
    %31 = tpu.matmul %29, %30, %cst_16 {dimension_numbers = #tpu.dot_dimension_numbers<[1], [0], [0], [1], [0, 0, 1, 1], [], []>} : vector<128x32xf32>, vector<32x32xf32>, vector<128x32xf32> -> vector<128x32xf32>
    %c0_17 = arith.constant 0 : index
    %c0_18 = arith.constant 0 : index
    %32 = vector.load %arg7[%c0_17, %c0_18] : memref<1x32xf32, #tpu.memory_space<vmem>>, vector<1x32xf32>
    %33 = vector.broadcast %32 : vector<1x32xf32> to vector<128x32xf32>
    %34 = arith.addf %31, %33 : vector<128x32xf32>
    %cst_19 = arith.constant 0.000000e+00 : f32
    %35 = vector.broadcast %cst_19 : f32 to vector<128x32xf32>
    %36 = arith.maximumf %34, %35 : vector<128x32xf32>
    %c0_20 = arith.constant 0 : index
    %c0_21 = arith.constant 0 : index
    %37 = vector.load %arg8[%c0_20, %c0_21] : memref<32x32xf32, #tpu.memory_space<vmem>>, vector<32x32xf32>
    %cst_22 = arith.constant dense<0.000000e+00> : vector<128x32xf32>
    %38 = tpu.matmul %36, %37, %cst_22 {dimension_numbers = #tpu.dot_dimension_numbers<[1], [0], [0], [1], [0, 0, 1, 1], [], []>} : vector<128x32xf32>, vector<32x32xf32>, vector<128x32xf32> -> vector<128x32xf32>
    %c0_23 = arith.constant 0 : index
    %c0_24 = arith.constant 0 : index
    %39 = vector.load %arg9[%c0_23, %c0_24] : memref<1x32xf32, #tpu.memory_space<vmem>>, vector<1x32xf32>
    %40 = vector.broadcast %39 : vector<1x32xf32> to vector<128x32xf32>
    %41 = arith.addf %38, %40 : vector<128x32xf32>
    %42 = arith.addf %41, %29 : vector<128x32xf32>
    %cst_25 = arith.constant dense<0.000000e+00> : vector<128xf32>
    %43 = vector.multi_reduction <add>, %42, %cst_25 [1] : vector<128x32xf32> to vector<128xf32>
    %44 = vector.shape_cast %43 : vector<128xf32> to vector<128x1xf32>
    %cst_26 = arith.constant 3.200000e+01 : f32
    %45 = vector.broadcast %cst_26 : f32 to vector<128x1xf32>
    %46 = arith.divf %44, %45 : vector<128x1xf32>
    %47 = vector.broadcast %46 : vector<128x1xf32> to vector<128x32xf32>
    %48 = arith.subf %42, %47 : vector<128x32xf32>
    %49 = arith.mulf %48, %48 : vector<128x32xf32>
    %cst_27 = arith.constant dense<0.000000e+00> : vector<128xf32>
    %50 = vector.multi_reduction <add>, %49, %cst_27 [1] : vector<128x32xf32> to vector<128xf32>
    %51 = vector.shape_cast %50 : vector<128xf32> to vector<128x1xf32>
    %cst_28 = arith.constant 3.200000e+01 : f32
    %52 = vector.broadcast %cst_28 : f32 to vector<128x1xf32>
    %53 = arith.divf %51, %52 : vector<128x1xf32>
    %54 = vector.broadcast %46 : vector<128x1xf32> to vector<128x32xf32>
    %55 = arith.subf %42, %54 : vector<128x32xf32>
    %cst_29 = arith.constant 9.99999974E-6 : f32
    %56 = vector.broadcast %cst_29 : f32 to vector<128x1xf32>
    %57 = arith.addf %53, %56 : vector<128x1xf32>
    %58 = math.rsqrt %57 : vector<128x1xf32>
    %59 = vector.broadcast %58 : vector<128x1xf32> to vector<128x32xf32>
    %60 = arith.mulf %55, %59 : vector<128x32xf32>
    %c0_30 = arith.constant 0 : index
    %c0_31 = arith.constant 0 : index
    %61 = vector.load %arg10[%c0_30, %c0_31] : memref<128x32xf32, #tpu.memory_space<vmem>>, vector<128x32xf32>
    tpu.vector_store %arg10[%c0_30, %c0_31], %60 {strides = array<i32>} : memref<128x32xf32, #tpu.memory_space<vmem>>, vector<128x32xf32>,
    return
  }
  func.func @transform_0(%arg0: i32) -> (i32, i32) {
    %c0_i32 = arith.constant 0 : i32
    %c0_i32_0 = arith.constant 0 : i32
    return %arg0, %c0_i32 : i32, i32
  }
  func.func @transform_1(%arg0: i32) -> (i32, i32) {
    %c0_i32 = arith.constant 0 : i32
    %c0_i32_0 = arith.constant 0 : i32
    %c0_i32_1 = arith.constant 0 : i32
    return %c0_i32, %c0_i32_0 : i32, i32
  }
  func.func @transform_2(%arg0: i32) -> (i32, i32) {
    %c0_i32 = arith.constant 0 : i32
    %c0_i32_0 = arith.constant 0 : i32
    %c0_i32_1 = arith.constant 0 : i32
    return %c0_i32, %c0_i32_0 : i32, i32
  }
  func.func @transform_3(%arg0: i32) -> (i32, i32) {
    %c0_i32 = arith.constant 0 : i32
    %c0_i32_0 = arith.constant 0 : i32
    %c0_i32_1 = arith.constant 0 : i32
    return %c0_i32, %c0_i32_0 : i32, i32
  }
  func.func @transform_4(%arg0: i32) -> (i32, i32) {
    %c0_i32 = arith.constant 0 : i32
    %c0_i32_0 = arith.constant 0 : i32
    %c0_i32_1 = arith.constant 0 : i32
    return %c0_i32, %c0_i32_0 : i32, i32
  }
  func.func @transform_5(%arg0: i32) -> (i32, i32) {
    %c0_i32 = arith.constant 0 : i32
    %c0_i32_0 = arith.constant 0 : i32
    %c0_i32_1 = arith.constant 0 : i32
    return %c0_i32, %c0_i32_0 : i32, i32
  }
  func.func @transform_6(%arg0: i32) -> (i32, i32) {
    %c0_i32 = arith.constant 0 : i32
    %c0_i32_0 = arith.constant 0 : i32
    %c0_i32_1 = arith.constant 0 : i32
    return %c0_i32, %c0_i32_0 : i32, i32
  }
  func.func @transform_7(%arg0: i32) -> (i32, i32) {
    %c0_i32 = arith.constant 0 : i32
    %c0_i32_0 = arith.constant 0 : i32
    %c0_i32_1 = arith.constant 0 : i32
    return %c0_i32, %c0_i32_0 : i32, i32
  }
  func.func @transform_8(%arg0: i32) -> (i32, i32) {
    %c0_i32 = arith.constant 0 : i32
    %c0_i32_0 = arith.constant 0 : i32
    %c0_i32_1 = arith.constant 0 : i32
    return %c0_i32, %c0_i32_0 : i32, i32
  }
  func.func @transform_9(%arg0: i32) -> (i32, i32) {
    %c0_i32 = arith.constant 0 : i32
    %c0_i32_0 = arith.constant 0 : i32
    return %arg0, %c0_i32 : i32, i32
  }
}

</mosaic_0001>

<bundles_post_ra>
// kernel: sparse_spatial_attention_forward.3
= control target key start
LH: loop header
LB: loop body
LE: loop exit
PB: predicated region body
PF: predicated region fallthrough
CT: control target
= control target key end

     0   :  { %vm41_vm0 = vcmask 261120   ;;  %vm235_vm1 = vcmask 785408   ;;  %s496_s1 = inlined_call_operand.vmem [shape: f32[32,96], index: 1, kind: input, shape index: {}]   ;;  %s497_s0 = inlined_call_operand.vmem [shape: f32[128,32], index: 0, kind: input, shape index: {}]   ;;  %s498_s2 = inlined_call_operand.vmem [shape: f32[1,96], index: 2, kind: input, shape index: {}]   ;;  %s499_s3 = inlined_call_operand.vmem [shape: f32[128,96], index: 3, kind: output, shape index: {}]  }
   0x1   :  { %v33_v0 = vld [vmem:[%s496_s1 + $0x18] sm:$0xff]  ;;  %v32_v1 = vld [vmem:[%s496_s1 + $0x10] sm:$0xff]  ;;  %v31_v2 = vld [vmem:[%s496_s1 + $0x8] sm:$0xff] }
   0x2   :  { %293 = vmatprep.subr.mxu0 %v33_v0  ;;  %325 = vmatprep.subr.mxu1 %v33_v0  ;;  %v30_v3 = vld [vmem:[%s496_s1] sm:$0xff]  ;;  %v15_v6 = vld [vmem:[%s497_s0 + $0x8] sm:$0xff]  ;;  %v16_v8 = vld [vmem:[%s497_s0 + $0x10] sm:$0xff] }
   0x3   :  { %294 = vmatpush3.msra.mxu0 %v33_v0  ;;  %329 = vmatpush3.msra.mxu1 %v33_v0  ;;  %v14_v4 = vld [vmem:[%s497_s0] sm:$0xff]  ;;  %v23_v7 = vld [vmem:[%s497_s0 + $0x48] sm:$0xff]  ;;  %v24_v9 = vld [vmem:[%s497_s0 + $0x50] sm:$0xff] }
   0x4   :  { %295 = vmatprep.subr.mxu0 %v32_v1  ;;  %326 = vmatprep.subr.mxu1 %v32_v1  ;;  %v22_v5 = vld [vmem:[%s497_s0 + $0x40] sm:$0xff]  ;;  %v17_v10 = vld [vmem:[%s497_s0 + $0x18] sm:$0xff]  ;;  %v19_v14 = vld [vmem:[%s497_s0 + $0x28] sm:$0xff] }
   0x5   :  { %296 = vmatpush3.msra.mxu0 %v32_v1  ;;  %330 = vmatpush3.msra.mxu1 %v32_v1  ;;  %v25_v11 = vld [vmem:[%s497_s0 + $0x58] sm:$0xff]  ;;  %v18_v12 = vld [vmem:[%s497_s0 + $0x20] sm:$0xff]  ;;  %v27_v15 = vld [vmem:[%s497_s0 + $0x68] sm:$0xff] }
   0x6   :  { %297 = vmatprep.subr.mxu0 %v31_v2  ;;  %327 = vmatprep.subr.mxu1 %v31_v2  ;;  %v26_v13 = vld [vmem:[%s497_s0 + $0x60] sm:$0xff]  ;;  %v20_v16 = vld [vmem:[%s497_s0 + $0x30] sm:$0xff]  ;;  %v21_v18 = vld [vmem:[%s497_s0 + $0x38] sm:$0xff] }
   0x7   :  { %298 = vmatpush3.msra.mxu0 %v31_v2  ;;  %331 = vmatpush3.msra.mxu1 %v31_v2  ;;  %v28_v17 = vld [vmem:[%s497_s0 + $0x70] sm:$0xff]  ;;  %v29_v19 = vld [vmem:[%s497_s0 + $0x78] sm:$0xff]  ;;  %v256_v20 = vld [vmem:[%s498_s2] ss:$0 sm:$0xff] }
   0x8   :  { %299 = vmatprep.subr.mxu0 %v30_v3  ;;  %328 = vmatprep.subr.mxu1 %v30_v3 }
   0x9   :  { %300 = vmatpush3.msra.mxu0 %v30_v3  ;;  %332 = vmatpush3.msra.mxu1 %v30_v3 }
   0xa   :  { %301 = vmatprep.mubr.msk.f32.mxu0 %vm41_vm0, %v14_v4  ;;  %313 = vmatprep.mubr.msk.f32.mxu1 %vm41_vm0, %v22_v5 }
   0xb   :  { %302 = vmatmul.mubr.msk.f32.vlgmr.msra.gmra.mxu0 %vm41_vm0, %v15_v6  ;;  %314 = vmatmul.mubr.msk.f32.vlgmr.msra.gmra.mxu1 %vm41_vm0, %v23_v7 }
   0xc   :  { %304 = vmatprep.mubr.msk.f32.mxu0 %vm41_vm0, %v16_v8  ;;  %316 = vmatprep.mubr.msk.f32.mxu1 %vm41_vm0, %v24_v9 }
   0xf   :  { %305 = vmatmul.mubr.msk.f32.gmra.mxu0 %vm41_vm0, %v17_v10  ;;  %317 = vmatmul.mubr.msk.f32.gmra.mxu1 %vm41_vm0, %v25_v11 }
  0x10   :  { %307 = vmatprep.mubr.msk.f32.mxu0 %vm41_vm0, %v18_v12  ;;  %319 = vmatprep.mubr.msk.f32.mxu1 %vm41_vm0, %v26_v13 }
  0x13   :  { %308 = vmatmul.mubr.msk.f32.gmra.mxu0 %vm41_vm0, %v19_v14  ;;  %320 = vmatmul.mubr.msk.f32.gmra.mxu1 %vm41_vm0, %v27_v15 }
  0x14   :  { %310 = vmatprep.mubr.msk.f32.mxu0 %vm41_vm0, %v20_v16  ;;  %322 = vmatprep.mubr.msk.f32.mxu1 %vm41_vm0, %v28_v17 }
  0x17   :  { %311 = vmatmul.mubr.msk.f32.gmra.mxu0 %vm41_vm0, %v21_v18  ;;  %323 = vmatmul.mubr.msk.f32.gmra.mxu1 %vm41_vm0, %v29_v19 }
  0xcb   :  { %v303_v21 = vpop.f32.mrf.mxu0  ;;  %v315_v22 = vpop.f32.mrf.mxu1 }
  0xcc   :  { %v162_v23 = vadd.f32 %v303_v21, %v256_v20  ;;  %v202_v24 = vadd.f32 %v315_v22, %v256_v20 }
  0xcd   :  { %v156_v25 = vpop.f32.mrf.mxu0  ;;  %v196_v26 = vpop.f32.mrf.mxu1 }
  0xce   :  { %237 = vst.msk [vmem:[%s499_s3 + $0x8] sm:$0xff] %vm235_vm1, %v162_v23  ;;  %245 = vst.msk [vmem:[%s499_s3 + $0x48] sm:$0xff] %vm235_vm1, %v202_v24  ;;  %v157_v27 = vadd.f32 %v256_v20, %v156_v25  ;;  %v197_v28 = vadd.f32 %v256_v20, %v196_v26 }
  0xcf   :  { %v306_v29 = vpop.f32.mrf.mxu0  ;;  %v318_v30 = vpop.f32.mrf.mxu1 }
  0xd0   :  { %236 = vst.msk [vmem:[%s499_s3] sm:$0xff] %vm235_vm1, %v157_v27  ;;  %244 = vst.msk [vmem:[%s499_s3 + $0x40] sm:$0xff] %vm235_vm1, %v197_v28  ;;  %v172_v31 = vadd.f32 %v306_v29, %v256_v20  ;;  %v212_v32 = vadd.f32 %v318_v30, %v256_v20 }
  0xd1   :  { %v166_v33 = vpop.f32.mrf.mxu0  ;;  %v206_v34 = vpop.f32.mrf.mxu1 }
  0xd2   :  { %239 = vst.msk [vmem:[%s499_s3 + $0x18] sm:$0xff] %vm235_vm1, %v172_v31  ;;  %247 = vst.msk [vmem:[%s499_s3 + $0x58] sm:$0xff] %vm235_vm1, %v212_v32  ;;  %v167_v35 = vadd.f32 %v256_v20, %v166_v33  ;;  %v207_v36 = vadd.f32 %v256_v20, %v206_v34 }
  0xd3   :  { %v309_v37 = vpop.f32.mrf.mxu0  ;;  %v321_v38 = vpop.f32.mrf.mxu1 }
  0xd4   :  { %238 = vst.msk [vmem:[%s499_s3 + $0x10] sm:$0xff] %vm235_vm1, %v167_v35  ;;  %246 = vst.msk [vmem:[%s499_s3 + $0x50] sm:$0xff] %vm235_vm1, %v207_v36  ;;  %v182_v39 = vadd.f32 %v309_v37, %v256_v20  ;;  %v222_v40 = vadd.f32 %v321_v38, %v256_v20 }
  0xd5   :  { %v176_v41 = vpop.f32.mrf.mxu0  ;;  %v216_v42 = vpop.f32.mrf.mxu1 }
  0xd6   :  { %241 = vst.msk [vmem:[%s499_s3 + $0x28] sm:$0xff] %vm235_vm1, %v182_v39  ;;  %249 = vst.msk [vmem:[%s499_s3 + $0x68] sm:$0xff] %vm235_vm1, %v222_v40  ;;  %v177_v43 = vadd.f32 %v256_v20, %v176_v41  ;;  %v217_v44 = vadd.f32 %v256_v20, %v216_v42 }
  0xd7   :  { %v312_v45 = vpop.f32.mrf.mxu0  ;;  %v324_v46 = vpop.f32.mrf.mxu1 }
  0xd8   :  { %240 = vst.msk [vmem:[%s499_s3 + $0x20] sm:$0xff] %vm235_vm1, %v177_v43  ;;  %248 = vst.msk [vmem:[%s499_s3 + $0x60] sm:$0xff] %vm235_vm1, %v217_v44  ;;  %v192_v47 = vadd.f32 %v312_v45, %v256_v20  ;;  %v232_v48 = vadd.f32 %v324_v46, %v256_v20 }
  0xd9   :  { %v186_v49 = vpop.f32.mrf.mxu0  ;;  %v226_v50 = vpop.f32.mrf.mxu1 }
  0xda   :  { %243 = vst.msk [vmem:[%s499_s3 + $0x38] sm:$0xff] %vm235_vm1, %v192_v47  ;;  %251 = vst.msk [vmem:[%s499_s3 + $0x78] sm:$0xff] %vm235_vm1, %v232_v48  ;;  %v187_v51 = vadd.f32 %v256_v20, %v186_v49  ;;  %v227_v52 = vadd.f32 %v256_v20, %v226_v50 }
  0xdc   :  { %242 = vst.msk [vmem:[%s499_s3 + $0x30] sm:$0xff] %vm235_vm1, %v187_v51  ;;  %250 = vst.msk [vmem:[%s499_s3 + $0x70] sm:$0xff] %vm235_vm1, %v227_v52 }

// kernel: sparse_spatial_attention_forward.5
= control target key start
LH: loop header
LB: loop body
LE: loop exit
PB: predicated region body
PF: predicated region fallthrough
CT: control target
= control target key end

     0   :  { %vm60_vm0 = vcmask 261120   ;;  %s2180_s0 = inlined_call_operand.vmem [shape: f32[128,32], index: 0, kind: input, shape index: {}]   ;;  %s2181_s1 = inlined_call_operand.vmem [shape: f32[32,32], index: 1, kind: input, shape index: {}]   ;;  %s2182_s2 = inlined_call_operand.vmem [shape: f32[1,32], index: 2, kind: input, shape index: {}]   ;;  %s2183_s3 = inlined_call_operand.vmem [shape: f32[1,32], index: 3, kind: input, shape index: {}]   ;;  %s2184_s4 = inlined_call_operand.vmem [shape: f32[1,32], index: 4, kind: input, shape index: {}]   ;;  %s2185_s5 = inlined_call_operand.vmem [shape: f32[32,32], index: 5, kind: input, shape index: {}]   ;;  %s2186_s6 = inlined_call_operand.vmem [shape: f32[1,32], index: 6, kind: input, shape index: {}]   ;;  %s2187_s7 = inlined_call_operand.vmem [shape: f32[32,32], index: 7, kind: input, shape index: {}]   ;;  %s2188_s8 = inlined_call_operand.vmem [shape: f32[1,32], index: 8, kind: input, shape index: {}]   ;;  %s2189_s9 = inlined_call_operand.hbm [shape: f32[128,32], index: 9, kind: output, shape index: {}]  }
   0x1   :  { %v52_v0 = vld [vmem:[%s2181_s1 + $0x18] sm:$0xff]  ;;  %v51_v1 = vld [vmem:[%s2181_s1 + $0x10] sm:$0xff]  ;;  %v33_v2 = vld [vmem:[%s2180_s0] sm:$0xff] }
   0x2   :  { %1302 = vmatprep.subr.mxu0 %v52_v0  ;;  %1398 = vmatprep.subr.mxu1 %v52_v0  ;;  %v50_v3 = vld [vmem:[%s2181_s1 + $0x8] sm:$0xff]  ;;  %v49_v4 = vld [vmem:[%s2181_s1] sm:$0xff] }
   0x3   :  { %1303 = vmatpush3.msra.mxu0 %v52_v0  ;;  %1310 = vmatprep.mubr.msk.f32.mxu0 %vm60_vm0, %v33_v2  ;;  %v34_v5 = vld [vmem:[%s2180_s0 + $0x8] sm:$0xff] }
   0x4   :  { %1304 = vmatprep.subr.mxu0 %v51_v1  ;;  %1402 = vmatpush3.msra.mxu1 %v52_v0 }
   0x5   :  { %1305 = vmatpush3.msra.mxu0 %v51_v1  ;;  %1399 = vmatprep.subr.mxu1 %v51_v1 }
   0x6   :  { %1306 = vmatprep.subr.mxu0 %v50_v3  ;;  %1403 = vmatpush3.msra.mxu1 %v51_v1 }
   0x7   :  { %1307 = vmatpush3.msra.mxu0 %v50_v3  ;;  %1400 = vmatprep.subr.mxu1 %v50_v3 }
   0x8   :  { %14 = vsyncpa [#allocation3], 0  ;;  %1308 = vmatprep.subr.mxu0 %v49_v4  ;;  %v35_v6 = vld [vmem:[%s2180_s0 + $0x10] sm:$0xff]  ;;  %1404 = vmatpush3.msra.mxu1 %v50_v3  ;;  %v41_v7 = vld [vmem:[%s2180_s0 + $0x40] sm:$0xff] }
   0x9   :  { %1309 = vmatpush3.msra.mxu0 %v49_v4  ;;  %1401 = vmatprep.subr.mxu1 %v49_v4  ;;  %v42_v8 = vld [vmem:[%s2180_s0 + $0x48] sm:$0xff]  ;;  %v43_v9 = vld [vmem:[%s2180_s0 + $0x50] sm:$0xff]  ;;  %v36_v10 = vld [vmem:[%s2180_s0 + $0x18] sm:$0xff] }
   0xa   :  { %1311 = vmatmul.mubr.msk.f32.vlgmr.msra.gmra.mxu0 %vm60_vm0, %v34_v5  ;;  %1405 = vmatpush3.msra.mxu1 %v49_v4  ;;  %v37_v11 = vld [vmem:[%s2180_s0 + $0x20] sm:$0xff]  ;;  %v44_v12 = vld [vmem:[%s2180_s0 + $0x58] sm:$0xff]  ;;  %v38_v14 = vld [vmem:[%s2180_s0 + $0x28] sm:$0xff] }
   0xb   :  { %1313 = vmatprep.mubr.msk.f32.mxu0 %vm60_vm0, %v35_v6  ;;  %1322 = vmatprep.mubr.msk.f32.mxu1 %vm60_vm0, %v41_v7  ;;  %v45_v13 = vld [vmem:[%s2180_s0 + $0x60] sm:$0xff]  ;;  %v39_v15 = vld [vmem:[%s2180_s0 + $0x30] sm:$0xff]  ;;  %v46_v16 = vld [vmem:[%s2180_s0 + $0x68] sm:$0xff] }
   0xc   :  { %1323 = vmatmul.mubr.msk.f32.vlgmr.msra.gmra.mxu1 %vm60_vm0, %v42_v8  ;;  %v47_v17 = vld [vmem:[%s2180_s0 + $0x70] sm:$0xff]  ;;  %v40_v18 = vld [vmem:[%s2180_s0 + $0x38] sm:$0xff]  ;;  %v1189_v21 = vld [vmem:[%s2182_s2] ss:$0 sm:$0xff] }
   0xd   :  { %1325 = vmatprep.mubr.msk.f32.mxu1 %vm60_vm0, %v43_v9  ;;  %v48_v19 = vld [vmem:[%s2180_s0 + $0x78] sm:$0xff] }
   0xe   :  { %1314 = vmatmul.mubr.msk.f32.gmra.mxu0 %vm60_vm0, %v36_v10 }
   0xf   :  { %1316 = vmatprep.mubr.msk.f32.mxu0 %vm60_vm0, %v37_v11 }
  0x10   :  { %1326 = vmatmul.mubr.msk.f32.gmra.mxu1 %vm60_vm0, %v44_v12 }
  0x11   :  { %1328 = vmatprep.mubr.msk.f32.mxu1 %vm60_vm0, %v45_v13 }
  0x12   :  { %1317 = vmatmul.mubr.msk.f32.gmra.mxu0 %vm60_vm0, %v38_v14 }
  0x13   :  { %1319 = vmatprep.mubr.msk.f32.mxu0 %vm60_vm0, %v39_v15 }
  0x14   :  { %1329 = vmatmul.mubr.msk.f32.gmra.mxu1 %vm60_vm0, %v46_v16 }
  0x15   :  { %1331 = vmatprep.mubr.msk.f32.mxu1 %vm60_vm0, %v47_v17 }
  0x16   :  { %1320 = vmatmul.mubr.msk.f32.gmra.mxu0 %vm60_vm0, %v40_v18 }
  0x18   :  { %1332 = vmatmul.mubr.msk.f32.gmra.mxu1 %vm60_vm0, %v48_v19 }
  0xca   :  { %v1312_v20 = vpop.f32.mrf.mxu0 }
  0xcb   :  { %v1629_v27 = vadd.f32 %v1312_v20, %v1189_v21 }
  0xcc   :  { %v175_v22 = vpop.f32.mrf.mxu0  ;;  %v1324_v23 = vpop.f32.mrf.mxu1 }
  0xcd   :  { %v1627_v24 = vadd.f32 %v1189_v21, %v175_v22  ;;  %v257_v36 = vsel %vm60_vm0, %v1629_v27, 0.0  ;;  %v1660_v54 = vadd.f32 %v1324_v23, %v1189_v21 }
  0xce   :  { %v1315_v25 = vpop.f32.mrf.mxu0  ;;  %v215_v26 = vpop.f32.mrf.mxu1 }
  0xcf   :  { %v254_v28 = vsel %vm60_vm0, %v1627_v24, 0.0  ;;  %v1633_v34 = vadd.f32 %v1315_v25, %v1189_v21  ;;  %v1648_v46 = vadd.f32 %v1189_v21, %v215_v26  ;;  %v281_v60 = vsel %vm60_vm0, %v1660_v54, 0.0 }
  0xd0   :  { %v185_v29 = vpop.f32.mrf.mxu0  ;;  %255 = vadd.xlane.f32.xlu0 %v254_v28  ;;  %v1327_v30 = vpop.f32.mrf.mxu1 }
  0xd1   :  { %v186_v31 = vadd.f32 %v1189_v21, %v185_v29  ;;  %v263_v42 = vsel %vm60_vm0, %v1633_v34, 0.0  ;;  %v278_v52 = vsel %vm60_vm0, %v1648_v46, 0.0  ;;  %v1668_v59 = vadd.f32 %v1327_v30, %v1189_v21 }
  0xd2   :  { %v1318_v32 = vpop.f32.mrf.mxu0  ;;  %v225_v33 = vpop.f32.mrf.mxu1 }
  0xd3   :  { %v260_v35 = vsel %vm60_vm0, %v186_v31, 0.0  ;;  %v1640_v41 = vadd.f32 %v1318_v32, %v1189_v21  ;;  %v1656_v51 = vadd.f32 %v1189_v21, %v225_v33  ;;  %v287_v0 = vsel %vm60_vm0, %v1668_v59, 0.0 }
  0xd4   :  { %v195_v37 = vpop.f32.mrf.mxu0  ;;  %261 = vadd.xlane.f32.xlu1 %v260_v35  ;;  %258 = vadd.xlane.f32.xlu0 %v257_v36  ;;  %v1330_v40 = vpop.f32.mrf.mxu1 }
  0xd5   :  { %v1638_v38 = vadd.f32 %v1189_v21, %v195_v37  ;;  %v269_v49 = vsel %vm60_vm0, %v1640_v41, 0.0  ;;  %v284_v57 = vsel %vm60_vm0, %v1656_v51, 0.0  ;;  %v1676_v63 = vadd.f32 %v1330_v40, %v1189_v21 }
  0xd6   :  { %v1321_v39 = vpop.f32.mrf.mxu0  ;;  %v235_v47 = vpop.f32.mrf.mxu1 }
  0xd7   :  { %v266_v43 = vsel %vm60_vm0, %v1638_v38, 0.0  ;;  %v1650_v48 = vadd.f32 %v1321_v39, %v1189_v21  ;;  %v1664_v56 = vadd.f32 %v1189_v21, %v235_v47  ;;  %v293_v3 = vsel %vm60_vm0, %v1676_v63, 0.0 }
  0xd8   :  { %v205_v44 = vpop.f32.mrf.mxu0  ;;  %264 = vadd.xlane.f32.xlu1 %v263_v42  ;;  %267 = vadd.xlane.f32.xlu0 %v266_v43  ;;  %v1333_v53 = vpop.f32.mrf.mxu1 }
  0xd9   :  { %v1646_v45 = vadd.f32 %v1189_v21, %v205_v44  ;;  %v275_v55 = vsel %vm60_vm0, %v1650_v48, 0.0  ;;  %v290_v62 = vsel %vm60_vm0, %v1664_v56, 0.0  ;;  %v1682_v2 = vadd.f32 %v1333_v53, %v1189_v21 }
  0xda   :  { %v245_v58 = vpop.f32.mrf.mxu1 }
  0xdb   :  { %v272_v50 = vsel %vm60_vm0, %v1646_v45, 0.0  ;;  %v1672_v61 = vadd.f32 %v1189_v21, %v245_v58  ;;  %v299_v4 = vsel %vm60_vm0, %v1682_v2, 0.0 }
  0xdc   :  { %270 = vadd.xlane.f32.xlu1 %v269_v49  ;;  %273 = vadd.xlane.f32.xlu0 %v272_v50 }
  0xdd   :  { %v296_v1 = vsel %vm60_vm0, %v1672_v61, 0.0 }
  0xe0   :  { %276 = vadd.xlane.f32.xlu1 %v275_v55  ;;  %279 = vadd.xlane.f32.xlu0 %v278_v52 }
  0xe4   :  { %282 = vadd.xlane.f32.xlu1 %v281_v60  ;;  %285 = vadd.xlane.f32.xlu0 %v284_v57 }
  0xe8   :  { %288 = vadd.xlane.f32.xlu1 %v287_v0  ;;  %291 = vadd.xlane.f32.xlu0 %v290_v62 }
  0xec   :  { %294 = vadd.xlane.f32.xlu1 %v293_v3  ;;  %297 = vadd.xlane.f32.xlu0 %v296_v1 }
  0xf0   :  { %300 = vadd.xlane.f32.xlu1 %v299_v4 }
 0x159   :  { %v256_v5 = vpop.xlane.xlu0 %255 }
 0x15a   :  { %v303_v6 = vmul.f32 0.03125, %v256_v5 }
 0x15c   :  { %v1689_v7 = vsub.f32 %v1627_v24, %v303_v6 }
 0x15d   :  { %v262_v8 = vpop.xlane.xlu1 %261  ;;  %v259_v9 = vpop.xlane.xlu0 %258 }
 0x15e   :  { %v305_v10 = vmul.f32 0.03125, %v262_v8  ;;  %v304_v11 = vmul.f32 0.03125, %v259_v9  ;;  %v335_v12 = vmul.f32 %v1689_v7, %v1689_v7 }
 0x160   :  { %v1693_v13 = vsub.f32 %v186_v31, %v305_v10  ;;  %v1696_v14 = vsub.f32 %v1629_v27, %v304_v11  ;;  %v351_v15 = vsel %vm60_vm0, %v335_v12, 0.0 }
 0x161   :  { %v265_v16 = vpop.xlane.xlu1 %264  ;;  %352 = vadd.xlane.f32.xlu0 %v351_v15  ;;  %v268_v17 = vpop.xlane.xlu0 %267 }
 0x162   :  { %v306_v18 = vmul.f32 0.03125, %v265_v16  ;;  %v307_v19 = vmul.f32 0.03125, %v268_v17  ;;  %v337_v20 = vmul.f32 %v1693_v13, %v1693_v13  ;;  %v336_v21 = vmul.f32 %v1696_v14, %v1696_v14 }
 0x164   :  { %v1704_v22 = vsub.f32 %v1633_v34, %v306_v18  ;;  %v1707_v23 = vsub.f32 %v1638_v38, %v307_v19  ;;  %v357_v24 = vsel %vm60_vm0, %v337_v20, 0.0  ;;  %v354_v25 = vsel %vm60_vm0, %v336_v21, 0.0 }
 0x165   :  { %v271_v26 = vpop.xlane.xlu1 %270  ;;  %358 = vadd.xlane.f32.xlu0 %v357_v24  ;;  %355 = vadd.xlane.f32.xlu1 %v354_v25  ;;  %v274_v27 = vpop.xlane.xlu0 %273 }
 0x166   :  { %v308_v28 = vmul.f32 0.03125, %v271_v26  ;;  %v309_v29 = vmul.f32 0.03125, %v274_v27  ;;  %v338_v30 = vmul.f32 %v1704_v22, %v1704_v22  ;;  %v339_v31 = vmul.f32 %v1707_v23, %v1707_v23  ;;  %v512_v26 = vld [vmem:[%s2185_s5 + $0x18] sm:$0xff] }
 0x167   :  { %1334 = vmatprep.subr.mxu1 %v512_v26 }
 0x168   :  { %v1716_v32 = vsub.f32 %v1640_v41, %v308_v28  ;;  %v1719_v33 = vsub.f32 %v1646_v45, %v309_v29  ;;  %v360_v34 = vsel %vm60_vm0, %v338_v30, 0.0  ;;  %v363_v35 = vsel %vm60_vm0, %v339_v31, 0.0  ;;  %1335 = vmatpush3.msra.mxu1 %v512_v26  ;;  %v510_v28 = vld [vmem:[%s2185_s5 + $0x8] sm:$0xff]  ;;  %v509_v29 = vld [vmem:[%s2185_s5] sm:$0xff]  ;;  %v732_v30 = vld [vmem:[%s2187_s7 + $0x18] sm:$0xff] }
 0x169   :  { %v277_v36 = vpop.xlane.xlu1 %276  ;;  %361 = vadd.xlane.f32.xlu1 %v360_v34  ;;  %364 = vadd.xlane.f32.xlu0 %v363_v35  ;;  %v280_v37 = vpop.xlane.xlu0 %279  ;;  %v731_v31 = vld [vmem:[%s2187_s7 + $0x10] sm:$0xff]  ;;  %v730_v34 = vld [vmem:[%s2187_s7 + $0x8] sm:$0xff] }
 0x16a   :  { %v310_v38 = vmul.f32 0.03125, %v277_v36  ;;  %v311_v39 = vmul.f32 0.03125, %v280_v37  ;;  %v340_v40 = vmul.f32 %v1716_v32, %v1716_v32  ;;  %v341_v41 = vmul.f32 %v1719_v33, %v1719_v33  ;;  %1366 = vmatprep.subr.mxu0 %v732_v30 }
 0x16b   :  { %1367 = vmatpush3.msra.mxu0 %v732_v30 }
 0x16c   :  { %v1728_v42 = vsub.f32 %v1650_v48, %v310_v38  ;;  %v1731_v43 = vsub.f32 %v1648_v46, %v311_v39  ;;  %v366_v44 = vsel %vm60_vm0, %v340_v40, 0.0  ;;  %v369_v45 = vsel %vm60_vm0, %v341_v41, 0.0  ;;  %1368 = vmatprep.subr.mxu0 %v731_v31 }
 0x16d   :  { %v283_v47 = vpop.xlane.xlu1 %282  ;;  %367 = vadd.xlane.f32.xlu1 %v366_v44  ;;  %370 = vadd.xlane.f32.xlu0 %v369_v45  ;;  %v286_v49 = vpop.xlane.xlu0 %285 }
 0x16e   :  { %v312_v50 = vmul.f32 0.03125, %v283_v47  ;;  %v313_v52 = vmul.f32 0.03125, %v286_v49  ;;  %v342_v53 = vmul.f32 %v1728_v42, %v1728_v42  ;;  %v343_v48 = vmul.f32 %v1731_v43, %v1731_v43  ;;  %1369 = vmatpush3.msra.mxu0 %v731_v31 }
 0x16f   :  { %1370 = vmatprep.subr.mxu0 %v730_v34 }
 0x170   :  { %v1740_v55 = vsub.f32 %v1660_v54, %v312_v50  ;;  %v1743_v46 = vsub.f32 %v1656_v51, %v313_v52  ;;  %v372_v57 = vsel %vm60_vm0, %v342_v53, 0.0  ;;  %v375_v58 = vsel %vm60_vm0, %v343_v48, 0.0  ;;  %1371 = vmatpush3.msra.mxu0 %v730_v34 }
 0x171   :  { %v289_v60 = vpop.xlane.xlu1 %288  ;;  %373 = vadd.xlane.f32.xlu1 %v372_v57  ;;  %376 = vadd.xlane.f32.xlu0 %v375_v58  ;;  %v292_v62 = vpop.xlane.xlu0 %291 }
 0x172   :  { %v314_v0 = vmul.f32 0.03125, %v289_v60  ;;  %v315_v1 = vmul.f32 0.03125, %v292_v62  ;;  %v344_v3 = vmul.f32 %v1740_v55, %v1740_v55  ;;  %v345_v54 = vmul.f32 %v1743_v46, %v1743_v46 }
 0x174   :  { %v1752_v4 = vsub.f32 %v1668_v59, %v314_v0  ;;  %v1755_v51 = vsub.f32 %v1664_v56, %v315_v1  ;;  %v378_v5 = vsel %vm60_vm0, %v344_v3, 0.0  ;;  %v381_v6 = vsel %vm60_vm0, %v345_v54, 0.0 }
 0x175   :  { %v295_v8 = vpop.xlane.xlu1 %294  ;;  %379 = vadd.xlane.f32.xlu1 %v378_v5  ;;  %382 = vadd.xlane.f32.xlu0 %v381_v6  ;;  %v298_v9 = vpop.xlane.xlu0 %297 }
 0x176   :  { %v316_v10 = vmul.f32 0.03125, %v295_v8  ;;  %v317_v11 = vmul.f32 0.03125, %v298_v9  ;;  %v346_v12 = vmul.f32 %v1752_v4, %v1752_v4  ;;  %v347_v59 = vmul.f32 %v1755_v51, %v1755_v51  ;;  %v1807_v9 = vld [vmem:[%s2183_s3] ss:$0 sm:$0xff] }
 0x178   :  { %v1764_v15 = vsub.f32 %v1676_v63, %v316_v10  ;;  %v1767_v56 = vsub.f32 %v1672_v61, %v317_v11  ;;  %v384_v16 = vsel %vm60_vm0, %v346_v12, 0.0  ;;  %v387_v17 = vsel %vm60_vm0, %v347_v59, 0.0 }
 0x179   :  { %v301_v18 = vpop.xlane.xlu1 %300  ;;  %385 = vadd.xlane.f32.xlu1 %v384_v16  ;;  %388 = vadd.xlane.f32.xlu0 %v387_v17  ;;  %v1813_v17 = vld [vmem:[%s2184_s4] ss:$0 sm:$0xff] }
 0x17a   :  { %v318_v19 = vmul.f32 0.03125, %v301_v18  ;;  %v348_v20 = vmul.f32 %v1764_v15, %v1764_v15  ;;  %v349_v21 = vmul.f32 %v1767_v56, %v1767_v56 }
 0x17c   :  { %v1776_v63 = vsub.f32 %v1682_v2, %v318_v19  ;;  %v390_v61 = vsel %vm60_vm0, %v348_v20, 0.0  ;;  %v393_v24 = vsel %vm60_vm0, %v349_v21, 0.0  ;;  %v511_v2 = vld [vmem:[%s2185_s5 + $0x10] sm:$0xff] }
 0x17d   :  { %391 = vadd.xlane.f32.xlu1 %v390_v61  ;;  %394 = vadd.xlane.f32.xlu0 %v393_v24 }
 0x17e   :  { %v350_v25 = vmul.f32 %v1776_v63, %v1776_v63  ;;  %1336 = vmatprep.subr.mxu1 %v511_v2 }
 0x17f   :  { %1337 = vmatpush3.msra.mxu1 %v511_v2 }
 0x180   :  { %v396_v27 = vsel %vm60_vm0, %v350_v25, 0.0  ;;  %1338 = vmatprep.subr.mxu1 %v510_v28 }
 0x181   :  { %397 = vadd.xlane.f32.xlu1 %v396_v27  ;;  %1339 = vmatpush3.msra.mxu1 %v510_v28 }
 0x182   :  { %1340 = vmatprep.subr.mxu1 %v509_v29 }
 0x183   :  { %1341 = vmatpush3.msra.mxu1 %v509_v29 }
 0x1ea   :  { %v353_v35 = vpop.xlane.xlu0 %352 }
 0x1eb   :  { %v399_v36 = vmul.f32 0.03125, %v353_v35 }
 0x1ed   :  { %v415_v37 = vadd.f32 1e-05, %v399_v36 }
 0x1ee   :  { %v356_v38 = vpop.xlane.xlu1 %355  ;;  %v359_v39 = vpop.xlane.xlu0 %358 }
 0x1ef   :  { %1409 = vrsqrt.f32 %v415_v37  ;;  %v400_v40 = vmul.f32 0.03125, %v356_v38  ;;  %v401_v41 = vmul.f32 0.03125, %v359_v39 }
 0x1f1   :  { %v416_v44 = vadd.f32 1e-05, %v400_v40  ;;  %v417_v45 = vadd.f32 1e-05, %v401_v41 }
 0x1f2   :  { %v362_v47 = vpop.xlane.xlu1 %361  ;;  %v365_v49 = vpop.xlane.xlu0 %364 }
 0x1f3   :  { %1411 = vrsqrt.f32 %v416_v44  ;;  %v402_v50 = vmul.f32 0.03125, %v362_v47  ;;  %v403_v52 = vmul.f32 0.03125, %v365_v49 }
 0x1f4   :  { %1413 = vrsqrt.f32 %v417_v45 }
 0x1f5   :  { %v418_v53 = vadd.f32 1e-05, %v402_v50  ;;  %v419_v48 = vadd.f32 1e-05, %v403_v52 }
 0x1f6   :  { %v368_v57 = vpop.xlane.xlu1 %367  ;;  %v371_v58 = vpop.xlane.xlu0 %370 }
 0x1f7   :  { %1415 = vrsqrt.f32 %v418_v53  ;;  %v404_v60 = vmul.f32 0.03125, %v368_v57  ;;  %v405_v62 = vmul.f32 0.03125, %v371_v58 }
 0x1f8   :  { %1417 = vrsqrt.f32 %v419_v48 }
 0x1f9   :  { %v420_v0 = vadd.f32 1e-05, %v404_v60  ;;  %v421_v1 = vadd.f32 1e-05, %v405_v62 }
 0x1fa   :  { %v374_v3 = vpop.xlane.xlu1 %373  ;;  %v377_v54 = vpop.xlane.xlu0 %376 }
 0x1fb   :  { %1419 = vrsqrt.f32 %v420_v0  ;;  %v406_v5 = vmul.f32 0.03125, %v374_v3  ;;  %v407_v6 = vmul.f32 0.03125, %v377_v54 }
 0x1fc   :  { %v1410_v8 = vpop.eup %1409  ;;  %1421 = vrsqrt.f32 %v421_v1 }
 0x1fd   :  { %v422_v10 = vadd.f32 1e-05, %v406_v5  ;;  %v423_v11 = vadd.f32 1e-05, %v407_v6  ;;  %v447_v12 = vmul.f32 %v1410_v8, %v1689_v7 }
 0x1fe   :  { %v380_v59 = vpop.xlane.xlu1 %379  ;;  %v383_v16 = vpop.xlane.xlu0 %382 }
 0x1ff   :  { %1423 = vrsqrt.f32 %v422_v10  ;;  %v408_v18 = vmul.f32 0.03125, %v380_v59  ;;  %v409_v19 = vmul.f32 0.03125, %v383_v16  ;;  %v470_v20 = vmul.f32 %v1807_v9, %v447_v12 }
 0x200   :  { %v1412_v21 = vpop.eup %1411  ;;  %1425 = vrsqrt.f32 %v423_v11 }
 0x201   :  { %v1414_v61 = vpop.eup %1413  ;;  %v448_v24 = vmul.f32 %v1412_v21, %v1696_v14  ;;  %v424_v25 = vadd.f32 1e-05, %v408_v18  ;;  %v425_v26 = vadd.f32 1e-05, %v409_v19  ;;  %v1818_v7 = vadd.f32 %v1813_v17, %v470_v20 }
 0x202   :  { %v386_v27 = vpop.xlane.xlu1 %385  ;;  %v389_v2 = vpop.xlane.xlu0 %388  ;;  %v449_v28 = vmul.f32 %v1414_v61, %v1693_v13 }
 0x203   :  { %v471_v29 = vmul.f32 %v1807_v9, %v448_v24  ;;  %1427 = vrsqrt.f32 %v424_v25  ;;  %v410_v30 = vmul.f32 0.03125, %v386_v27  ;;  %v411_v31 = vmul.f32 0.03125, %v389_v2  ;;  %1342 = vmatprep.mubr.msk.f32.mxu1 %vm60_vm0, %v1818_v7 }
 0x204   :  { %v1416_v34 = vpop.eup %1415  ;;  %1429 = vrsqrt.f32 %v425_v26  ;;  %v472_v14 = vmul.f32 %v1807_v9, %v449_v28 }
 0x205   :  { %v1418_v35 = vpop.eup %1417  ;;  %v426_v36 = vadd.f32 1e-05, %v410_v30  ;;  %v427_v37 = vadd.f32 1e-05, %v411_v31  ;;  %v1826_v38 = vadd.f32 %v1813_v17, %v471_v29  ;;  %v450_v13 = vmul.f32 %v1416_v34, %v1704_v22 }
 0x206   :  { %v392_v39 = vpop.xlane.xlu1 %391  ;;  %v395_v40 = vpop.xlane.xlu0 %394  ;;  %v1830_v41 = vadd.f32 %v1813_v17, %v472_v14  ;;  %v451_v44 = vmul.f32 %v1418_v35, %v1707_v23 }
 0x207   :  { %1431 = vrsqrt.f32 %v426_v36  ;;  %v412_v45 = vmul.f32 0.03125, %v392_v39  ;;  %v413_v47 = vmul.f32 0.03125, %v395_v40  ;;  %1343 = vmatmul.mubr.msk.f32.vlgmr.msra.gmra.mxu1 %vm60_vm0, %v1826_v38  ;;  %v473_v49 = vmul.f32 %v1807_v9, %v450_v13  ;;  %v1208_v39 = vld [vmem:[%s2186_s6] ss:$0 sm:$0xff] }
 0x208   :  { %v1420_v50 = vpop.eup %1419  ;;  %1433 = vrsqrt.f32 %v427_v37  ;;  %1345 = vmatprep.mubr.msk.f32.mxu1 %vm60_vm0, %v1830_v41  ;;  %v474_v22 = vmul.f32 %v1807_v9, %v451_v44 }
 0x209   :  { %v1422_v52 = vpop.eup %1421  ;;  %v428_v53 = vadd.f32 1e-05, %v412_v45  ;;  %v429_v48 = vadd.f32 1e-05, %v413_v47  ;;  %v1840_v23 = vadd.f32 %v1813_v17, %v473_v49  ;;  %v452_v57 = vmul.f32 %v1420_v50, %v1716_v32 }
 0x20a   :  { %v398_v58 = vpop.xlane.xlu1 %397  ;;  %v1844_v60 = vadd.f32 %v1813_v17, %v474_v22  ;;  %v453_v62 = vmul.f32 %v1422_v52, %v1719_v33 }
 0x20b   :  { %1435 = vrsqrt.f32 %v428_v53  ;;  %v414_v0 = vmul.f32 0.03125, %v398_v58  ;;  %1346 = vmatmul.mubr.msk.f32.gmra.mxu1 %vm60_vm0, %v1840_v23  ;;  %v475_v1 = vmul.f32 %v1807_v9, %v452_v57 }
 0x20c   :  { %v1424_v3 = vpop.eup %1423  ;;  %1437 = vrsqrt.f32 %v429_v48  ;;  %1348 = vmatprep.mubr.msk.f32.mxu1 %vm60_vm0, %v1844_v60  ;;  %v476_v32 = vmul.f32 %v1807_v9, %v453_v62 }
 0x20d   :  { %v1426_v54 = vpop.eup %1425  ;;  %v430_v5 = vadd.f32 1e-05, %v414_v0  ;;  %v1854_v6 = vadd.f32 %v1813_v17, %v475_v1  ;;  %v454_v33 = vmul.f32 %v1424_v3, %v1728_v42 }
 0x20e   :  { %v1858_v8 = vadd.f32 %v1813_v17, %v476_v32  ;;  %v455_v10 = vmul.f32 %v1426_v54, %v1731_v43 }
 0x20f   :  { %1439 = vrsqrt.f32 %v430_v5  ;;  %1349 = vmatmul.mubr.msk.f32.gmra.mxu1 %vm60_vm0, %v1854_v6  ;;  %v477_v11 = vmul.f32 %v1807_v9, %v454_v33 }
 0x210   :  { %v1428_v12 = vpop.eup %1427  ;;  %1351 = vmatprep.mubr.msk.f32.mxu1 %vm60_vm0, %v1858_v8  ;;  %v478_v59 = vmul.f32 %v1807_v9, %v455_v10 }
 0x211   :  { %v1430_v16 = vpop.eup %1429  ;;  %v1868_v42 = vadd.f32 %v1813_v17, %v477_v11  ;;  %v456_v18 = vmul.f32 %v1428_v12, %v1740_v55 }
 0x212   :  { %v1872_v43 = vadd.f32 %v1813_v17, %v478_v59  ;;  %v457_v19 = vmul.f32 %v1430_v16, %v1743_v46 }
 0x213   :  { %1352 = vmatmul.mubr.msk.f32.gmra.mxu1 %vm60_vm0, %v1868_v42  ;;  %v479_v20 = vmul.f32 %v1807_v9, %v456_v18 }
 0x214   :  { %v1432_v21 = vpop.eup %1431  ;;  %1354 = vmatprep.mubr.msk.f32.mxu1 %vm60_vm0, %v1872_v43  ;;  %v480_v61 = vmul.f32 %v1807_v9, %v457_v19 }
 0x215   :  { %v1434_v24 = vpop.eup %1433  ;;  %v1882_v25 = vadd.f32 %v1813_v17, %v479_v20  ;;  %v458_v55 = vmul.f32 %v1432_v21, %v1752_v4 }
 0x216   :  { %v1886_v26 = vadd.f32 %v1813_v17, %v480_v61  ;;  %v459_v46 = vmul.f32 %v1434_v24, %v1755_v51 }
 0x217   :  { %1355 = vmatmul.mubr.msk.f32.gmra.mxu1 %vm60_vm0, %v1882_v25  ;;  %v481_v27 = vmul.f32 %v1807_v9, %v458_v55 }
 0x218   :  { %v1436_v2 = vpop.eup %1435  ;;  %1357 = vmatprep.mubr.msk.f32.mxu1 %vm60_vm0, %v1886_v26  ;;  %v482_v28 = vmul.f32 %v1807_v9, %v459_v46 }
 0x219   :  { %v1438_v29 = vpop.eup %1437  ;;  %v1896_v30 = vadd.f32 %v1813_v17, %v481_v27  ;;  %v460_v4 = vmul.f32 %v1436_v2, %v1764_v15 }
 0x21a   :  { %v1900_v31 = vadd.f32 %v1813_v17, %v482_v28  ;;  %v461_v51 = vmul.f32 %v1438_v29, %v1767_v56 }
 0x21b   :  { %1358 = vmatmul.mubr.msk.f32.gmra.mxu1 %vm60_vm0, %v1896_v30  ;;  %v483_v34 = vmul.f32 %v1807_v9, %v460_v4 }
 0x21c   :  { %v1440_v14 = vpop.eup %1439  ;;  %1360 = vmatprep.mubr.msk.f32.mxu1 %vm60_vm0, %v1900_v31  ;;  %v484_v35 = vmul.f32 %v1807_v9, %v461_v51 }
 0x21d   :  { %v1910_v36 = vadd.f32 %v1813_v17, %v483_v34  ;;  %v462_v15 = vmul.f32 %v1440_v14, %v1776_v63  ;;  %v729_v63 = vld [vmem:[%s2187_s7] sm:$0xff] }
 0x21e   :  { %v1914_v37 = vadd.f32 %v1813_v17, %v484_v35  ;;  %1372 = vmatprep.subr.mxu0 %v729_v63 }
 0x21f   :  { %1361 = vmatmul.mubr.msk.f32.gmra.mxu1 %vm60_vm0, %v1910_v36  ;;  %v485_v56 = vmul.f32 %v1807_v9, %v462_v15  ;;  %1373 = vmatpush3.msra.mxu0 %v729_v63 }
 0x220   :  { %1363 = vmatprep.mubr.msk.f32.mxu1 %vm60_vm0, %v1914_v37 }
 0x221   :  { %v1922_v13 = vadd.f32 %v1813_v17, %v485_v56 }
 0x223   :  { %1364 = vmatmul.mubr.msk.f32.gmra.mxu1 %vm60_vm0, %v1922_v13 }
 0x2c7   :  { %v1344_v9 = vpop.f32.mrf.mxu1 }
 0x2c8   :  { %v640_v40 = vadd.f32 %v1344_v9, %v1208_v39 }
 0x2c9   :  { %v634_v44 = vpop.f32.mrf.mxu1 }
 0x2ca   :  { %v635_v45 = vadd.f32 %v1208_v39, %v634_v44  ;;  %v714_v49 = vmax.f32 %v640_v40, 0.0  ;;  %v1951_v40 = vld [vmem:[%s2188_s8] ss:$0 sm:$0xff]  ;;  %s1495_s8 = smov [#allocation2]  }
 0x2cb   :  { %v1347_v47 = vpop.f32.mrf.mxu1  ;;  %s1178_s24 = sshll.u32 %s1495_s8, 4  ;;  %s1179_s24 = int_to_ptr.vmem [resolvable:$true] %s1178_s24 }
 0x2cc   :  { %v713_v17 = vmax.f32 %v635_v45, 0.0  ;;  %v650_v50 = vadd.f32 %v1347_v47, %v1208_v39  ;;  %s1473_s1 = scalar_lea.vmem %s1179_s24, 2048  ;;  %p1478_p1 = scmp.lt.s32.totalorder %s1179_s24, %s1179_s24 }
 0x2cd   :  { %v644_v22 = vpop.f32.mrf.mxu1  ;;  %p1474_p0 = scmp.ne.s32.totalorder %s1179_s24, %s1473_s1  ;;  %p1479_p2 = scmp.lt.s32.totalorder %s1473_s1, %s1473_s1 }
 0x2ce   :  { %v645_v52 = vadd.f32 %v1208_v39, %v644_v22  ;;  %1374 = vmatprep.mubr.msk.f32.mxu0 %vm60_vm0, %v713_v17  ;;  %v716_v57 = vmax.f32 %v650_v50, 0.0 }
 0x2cf   :  { %v1350_v53 = vpop.f32.mrf.mxu1  ;;  %1375 = vmatmul.mubr.msk.f32.vlgmr.msra.gmra.mxu0 %vm60_vm0, %v714_v49  ;;  %p1480_p3 = por %p1479_p2, %p1478_p1 }
 0x2d0   :  { %v715_v48 = vmax.f32 %v645_v52, 0.0  ;;  %v660_v58 = vadd.f32 %v1350_v53, %v1208_v39 }
 0x2d1   :  { %v654_v62 = vpop.f32.mrf.mxu1  ;;  %p1481_p4 = pnand %p1480_p3, %p1474_p0 }
 0x2d2   :  { %v655_v0 = vadd.f32 %v1208_v39, %v654_v62  ;;  %1377 = vmatprep.mubr.msk.f32.mxu0 %vm60_vm0, %v715_v48  ;;  %v718_v32 = vmax.f32 %v660_v58, 0.0 }
 0x2d3   :  { %v1353_v1 = vpop.f32.mrf.mxu1  ;;  %1378 = vmatmul.mubr.msk.f32.gmra.mxu0 %vm60_vm0, %v716_v57 }
 0x2d4   :  { %v717_v3 = vmax.f32 %v655_v0, 0.0  ;;  %v670_v54 = vadd.f32 %v1353_v1, %v1208_v39 }
 0x2d5   :  { %v664_v5 = vpop.f32.mrf.mxu1 }
 0x2d6   :  { %v665_v33 = vadd.f32 %v1208_v39, %v664_v5  ;;  %1380 = vmatprep.mubr.msk.f32.mxu0 %vm60_vm0, %v717_v3  ;;  %v720_v12 = vmax.f32 %v670_v54, 0.0 }
 0x2d7   :  { %v1356_v10 = vpop.f32.mrf.mxu1  ;;  %1381 = vmatmul.mubr.msk.f32.gmra.mxu0 %vm60_vm0, %v718_v32 }
 0x2d8   :  { %v719_v11 = vmax.f32 %v665_v33, 0.0  ;;  %v680_v59 = vadd.f32 %v1356_v10, %v1208_v39 }
 0x2d9   :  { %v674_v16 = vpop.f32.mrf.mxu1 }
 0x2da   :  { %v675_v18 = vadd.f32 %v1208_v39, %v674_v16  ;;  %1383 = vmatprep.mubr.msk.f32.mxu0 %vm60_vm0, %v719_v11  ;;  %v722_v21 = vmax.f32 %v680_v59, 0.0 }
 0x2db   :  { %v1359_v19 = vpop.f32.mrf.mxu1  ;;  %1384 = vmatmul.mubr.msk.f32.gmra.mxu0 %vm60_vm0, %v720_v12 }
 0x2dc   :  { %v721_v20 = vmax.f32 %v675_v18, 0.0  ;;  %v690_v61 = vadd.f32 %v1359_v19, %v1208_v39 }
 0x2dd   :  { %v684_v24 = vpop.f32.mrf.mxu1 }
 0x2de   :  { %v685_v55 = vadd.f32 %v1208_v39, %v684_v24  ;;  %1386 = vmatprep.mubr.msk.f32.mxu0 %vm60_vm0, %v721_v20  ;;  %v724_v2 = vmax.f32 %v690_v61, 0.0 }
 0x2df   :  { %v1362_v46 = vpop.f32.mrf.mxu1  ;;  %1387 = vmatmul.mubr.msk.f32.gmra.mxu0 %vm60_vm0, %v722_v21 }
 0x2e0   :  { %v723_v27 = vmax.f32 %v685_v55, 0.0  ;;  %v700_v28 = vadd.f32 %v1362_v46, %v1208_v39 }
 0x2e1   :  { %v694_v29 = vpop.f32.mrf.mxu1 }
 0x2e2   :  { %v695_v4 = vadd.f32 %v1208_v39, %v694_v29  ;;  %1389 = vmatprep.mubr.msk.f32.mxu0 %vm60_vm0, %v723_v27  ;;  %v726_v14 = vmax.f32 %v700_v28, 0.0 }
 0x2e3   :  { %v1365_v51 = vpop.f32.mrf.mxu1  ;;  %1390 = vmatmul.mubr.msk.f32.gmra.mxu0 %vm60_vm0, %v724_v2 }
 0x2e4   :  { %v725_v34 = vmax.f32 %v695_v4, 0.0  ;;  %v710_v35 = vadd.f32 %v1365_v51, %v1208_v39 }
 0x2e5   :  { %v704_v15 = vpop.f32.mrf.mxu1 }
 0x2e6   :  { %v705_v56 = vadd.f32 %v1208_v39, %v704_v15  ;;  %1392 = vmatprep.mubr.msk.f32.mxu0 %vm60_vm0, %v725_v34  ;;  %v728_v9 = vmax.f32 %v710_v35, 0.0 }
 0x2e7   :  { %1393 = vmatmul.mubr.msk.f32.gmra.mxu0 %vm60_vm0, %v726_v14 }
 0x2e8   :  { %v727_v63 = vmax.f32 %v705_v56, 0.0 }
 0x2ea   :  { %1395 = vmatprep.mubr.msk.f32.mxu0 %vm60_vm0, %v727_v63 }
 0x2eb   :  { %1396 = vmatmul.mubr.msk.f32.gmra.mxu0 %vm60_vm0, %v728_v9 }
 0x38f   :  { %v1376_v44 = vpop.f32.mrf.mxu0 }
 0x390   :  { %v860_v45 = vadd.f32 %v1376_v44, %v1951_v40 }
 0x391   :  { %v854_v47 = vpop.f32.mrf.mxu0 }
 0x392   :  { %v855_v39 = vadd.f32 %v1951_v40, %v854_v47  ;;  %v1956_v17 = vadd.f32 %v860_v45, %v1826_v38 }
 0x393   :  { %v1379_v49 = vpop.f32.mrf.mxu0 }
 0x394   :  { %v870_v50 = vadd.f32 %v1379_v49, %v1951_v40  ;;  %v952_v22 = vsel %vm60_vm0, %v1956_v17, 0.0  ;;  %v1962_v52 = vadd.f32 %v855_v39, %v1818_v7 }
 0x395   :  { %953 = vadd.xlane.f32.xlu1 %v952_v22  ;;  %v864_v53 = vpop.f32.mrf.mxu0 }
 0x396   :  { %v865_v48 = vadd.f32 %v1951_v40, %v864_v53  ;;  %v949_v57 = vsel %vm60_vm0, %v1962_v52, 0.0  ;;  %v1968_v58 = vadd.f32 %v870_v50, %v1840_v23 }
 0x397   :  { %950 = vadd.xlane.f32.xlu0 %v949_v57  ;;  %v1382_v38 = vpop.f32.mrf.mxu0 }
 0x398   :  { %v880_v62 = vadd.f32 %v1382_v38, %v1951_v40  ;;  %v958_v0 = vsel %vm60_vm0, %v1968_v58, 0.0  ;;  %v1974_v7 = vadd.f32 %v865_v48, %v1830_v41 }
 0x399   :  { %959 = vadd.xlane.f32.xlu1 %v958_v0  ;;  %v874_v1 = vpop.f32.mrf.mxu0 }
 0x39a   :  { %v875_v3 = vadd.f32 %v1951_v40, %v874_v1  ;;  %v955_v32 = vsel %vm60_vm0, %v1974_v7, 0.0  ;;  %v1980_v23 = vadd.f32 %v880_v62, %v1854_v6 }
 0x39b   :  { %956 = vadd.xlane.f32.xlu0 %v955_v32  ;;  %v1385_v54 = vpop.f32.mrf.mxu0 }
 0x39c   :  { %v890_v5 = vadd.f32 %v1385_v54, %v1951_v40  ;;  %v964_v33 = vsel %vm60_vm0, %v1980_v23, 0.0  ;;  %v1986_v41 = vadd.f32 %v875_v3, %v1844_v60 }
 0x39d   :  { %965 = vadd.xlane.f32.xlu1 %v964_v33  ;;  %v884_v10 = vpop.f32.mrf.mxu0 }
 0x39e   :  { %v885_v11 = vadd.f32 %v1951_v40, %v884_v10  ;;  %v961_v12 = vsel %vm60_vm0, %v1986_v41, 0.0  ;;  %v1992_v6 = vadd.f32 %v890_v5, %v1868_v42 }
 0x39f   :  { %962 = vadd.xlane.f32.xlu0 %v961_v12  ;;  %v1388_v59 = vpop.f32.mrf.mxu0 }
 0x3a0   :  { %v900_v16 = vadd.f32 %v1388_v59, %v1951_v40  ;;  %v970_v18 = vsel %vm60_vm0, %v1992_v6, 0.0  ;;  %v1998_v60 = vadd.f32 %v885_v11, %v1858_v8 }
 0x3a1   :  { %971 = vadd.xlane.f32.xlu1 %v970_v18  ;;  %v894_v19 = vpop.f32.mrf.mxu0 }
 0x3a2   :  { %v895_v20 = vadd.f32 %v1951_v40, %v894_v19  ;;  %v967_v21 = vsel %vm60_vm0, %v1998_v60, 0.0  ;;  %v2004_v42 = vadd.f32 %v900_v16, %v1882_v25 }
 0x3a3   :  { %968 = vadd.xlane.f32.xlu0 %v967_v21  ;;  %v1391_v61 = vpop.f32.mrf.mxu0 }
 0x3a4   :  { %v910_v24 = vadd.f32 %v1391_v61, %v1951_v40  ;;  %v976_v55 = vsel %vm60_vm0, %v2004_v42, 0.0  ;;  %v2010_v8 = vadd.f32 %v895_v20, %v1872_v43 }
 0x3a5   :  { %977 = vadd.xlane.f32.xlu1 %v976_v55  ;;  %v904_v46 = vpop.f32.mrf.mxu0 }
 0x3a6   :  { %v905_v27 = vadd.f32 %v1951_v40, %v904_v46  ;;  %v973_v2 = vsel %vm60_vm0, %v2010_v8, 0.0  ;;  %v2016_v25 = vadd.f32 %v910_v24, %v1896_v30 }
 0x3a7   :  { %974 = vadd.xlane.f32.xlu0 %v973_v2  ;;  %v1394_v28 = vpop.f32.mrf.mxu0 }
 0x3a8   :  { %v920_v29 = vadd.f32 %v1394_v28, %v1951_v40  ;;  %v982_v4 = vsel %vm60_vm0, %v2016_v25, 0.0  ;;  %v2022_v43 = vadd.f32 %v905_v27, %v1886_v26 }
 0x3a9   :  { %983 = vadd.xlane.f32.xlu1 %v982_v4  ;;  %v914_v51 = vpop.f32.mrf.mxu0 }
 0x3aa   :  { %v915_v34 = vadd.f32 %v1951_v40, %v914_v51  ;;  %v979_v14 = vsel %vm60_vm0, %v2022_v43, 0.0  ;;  %v2028_v30 = vadd.f32 %v920_v29, %v1910_v36 }
 0x3ab   :  { %980 = vadd.xlane.f32.xlu0 %v979_v14  ;;  %v1397_v35 = vpop.f32.mrf.mxu0 }
 0x3ac   :  { %v930_v15 = vadd.f32 %v1397_v35, %v1951_v40  ;;  %v988_v56 = vsel %vm60_vm0, %v2028_v30, 0.0  ;;  %v2034_v26 = vadd.f32 %v915_v34, %v1900_v31 }
 0x3ad   :  { %989 = vadd.xlane.f32.xlu1 %v988_v56  ;;  %v924_v63 = vpop.f32.mrf.mxu0 }
 0x3ae   :  { %v925_v9 = vadd.f32 %v1951_v40, %v924_v63  ;;  %v985_v44 = vsel %vm60_vm0, %v2034_v26, 0.0  ;;  %v2040_v36 = vadd.f32 %v930_v15, %v1922_v13 }
 0x3af   :  { %986 = vadd.xlane.f32.xlu0 %v985_v44 }
 0x3b0   :  { %v994_v45 = vsel %vm60_vm0, %v2040_v36, 0.0  ;;  %v2045_v47 = vadd.f32 %v925_v9, %v1914_v37 }
 0x3b1   :  { %995 = vadd.xlane.f32.xlu1 %v994_v45 }
 0x3b2   :  { %v991_v31 = vsel %vm60_vm0, %v2045_v47, 0.0 }
 0x3b3   :  { %992 = vadd.xlane.f32.xlu0 %v991_v31 }
 0x41e   :  { %v954_v39 = vpop.xlane.xlu1 %953 }
 0x41f   :  { %v998_v40 = vmul.f32 0.03125, %v954_v39 }
 0x420   :  { %v951_v49 = vpop.xlane.xlu0 %950 }
 0x421   :  { %v2050_v50 = vsub.f32 %v1956_v17, %v998_v40  ;;  %v997_v13 = vmul.f32 0.03125, %v951_v49 }
 0x422   :  { %v960_v22 = vpop.xlane.xlu1 %959 }
 0x423   :  { %v2053_v53 = vsub.f32 %v1962_v52, %v997_v13  ;;  %v1000_v48 = vmul.f32 0.03125, %v960_v22  ;;  %v1030_v37 = vmul.f32 %v2050_v50, %v2050_v50 }
 0x424   :  { %v957_v57 = vpop.xlane.xlu0 %956 }
 0x425   :  { %v2058_v38 = vsub.f32 %v1968_v58, %v1000_v48  ;;  %v999_v62 = vmul.f32 0.03125, %v957_v57  ;;  %v1048_v0 = vsel %vm60_vm0, %v1030_v37, 0.0  ;;  %v1029_v17 = vmul.f32 %v2053_v53, %v2053_v53 }
 0x426   :  { %v966_v1 = vpop.xlane.xlu1 %965  ;;  %1049 = vadd.xlane.f32.xlu1 %v1048_v0 }
 0x427   :  { %v2064_v3 = vsub.f32 %v1974_v7, %v999_v62  ;;  %v1002_v52 = vmul.f32 0.03125, %v966_v1  ;;  %v1045_v32 = vsel %vm60_vm0, %v1029_v17, 0.0  ;;  %v1032_v54 = vmul.f32 %v2058_v38, %v2058_v38 }
 0x428   :  { %1046 = vadd.xlane.f32.xlu0 %v1045_v32  ;;  %v963_v58 = vpop.xlane.xlu0 %962 }
 0x429   :  { %v2070_v5 = vsub.f32 %v1980_v23, %v1002_v52  ;;  %v1001_v33 = vmul.f32 0.03125, %v963_v58  ;;  %v1054_v10 = vsel %vm60_vm0, %v1032_v54, 0.0  ;;  %v1031_v11 = vmul.f32 %v2064_v3, %v2064_v3 }
 0x42a   :  { %v972_v12 = vpop.xlane.xlu1 %971  ;;  %1055 = vadd.xlane.f32.xlu1 %v1054_v10 }
 0x42b   :  { %v2076_v7 = vsub.f32 %v1986_v41, %v1001_v33  ;;  %v1004_v59 = vmul.f32 0.03125, %v972_v12  ;;  %v1051_v16 = vsel %vm60_vm0, %v1031_v11, 0.0  ;;  %v1034_v18 = vmul.f32 %v2070_v5, %v2070_v5 }
 0x42c   :  { %1052 = vadd.xlane.f32.xlu0 %v1051_v16  ;;  %v969_v23 = vpop.xlane.xlu0 %968 }
 0x42d   :  { %v2082_v19 = vsub.f32 %v1992_v6, %v1004_v59  ;;  %v1003_v20 = vmul.f32 0.03125, %v969_v23  ;;  %v1060_v21 = vsel %vm60_vm0, %v1034_v18, 0.0  ;;  %v1033_v61 = vmul.f32 %v2076_v7, %v2076_v7 }
 0x42e   :  { %v978_v24 = vpop.xlane.xlu1 %977  ;;  %1061 = vadd.xlane.f32.xlu1 %v1060_v21 }
 0x42f   :  { %v2088_v41 = vsub.f32 %v1998_v60, %v1003_v20  ;;  %v1006_v55 = vmul.f32 0.03125, %v978_v24  ;;  %v1057_v46 = vsel %vm60_vm0, %v1033_v61, 0.0  ;;  %v1036_v27 = vmul.f32 %v2082_v19, %v2082_v19 }
 0x430   :  { %1058 = vadd.xlane.f32.xlu0 %v1057_v46  ;;  %v975_v6 = vpop.xlane.xlu0 %974 }
 0x431   :  { %v2094_v2 = vsub.f32 %v2004_v42, %v1006_v55  ;;  %v1005_v28 = vmul.f32 0.03125, %v975_v6  ;;  %v1066_v29 = vsel %vm60_vm0, %v1036_v27, 0.0  ;;  %v1035_v4 = vmul.f32 %v2088_v41, %v2088_v41 }
 0x432   :  { %v984_v51 = vpop.xlane.xlu1 %983  ;;  %1067 = vadd.xlane.f32.xlu1 %v1066_v29 }
 0x433   :  { %v2100_v60 = vsub.f32 %v2010_v8, %v1005_v28  ;;  %v1008_v34 = vmul.f32 0.03125, %v984_v51  ;;  %v1063_v14 = vsel %vm60_vm0, %v1035_v4, 0.0  ;;  %v1038_v35 = vmul.f32 %v2094_v2, %v2094_v2 }
 0x434   :  { %1064 = vadd.xlane.f32.xlu0 %v1063_v14  ;;  %v981_v42 = vpop.xlane.xlu0 %980 }
 0x435   :  { %v2106_v15 = vsub.f32 %v2016_v25, %v1008_v34  ;;  %v1007_v56 = vmul.f32 0.03125, %v981_v42  ;;  %v1072_v63 = vsel %vm60_vm0, %v1038_v35, 0.0  ;;  %v1037_v9 = vmul.f32 %v2100_v60, %v2100_v60 }
 0x436   :  { %v990_v44 = vpop.xlane.xlu1 %989  ;;  %1073 = vadd.xlane.f32.xlu1 %v1072_v63 }
 0x437   :  { %v2112_v8 = vsub.f32 %v2022_v43, %v1007_v56  ;;  %v1010_v45 = vmul.f32 0.03125, %v990_v44  ;;  %v1069_v31 = vsel %vm60_vm0, %v1037_v9, 0.0  ;;  %v1040_v39 = vmul.f32 %v2106_v15, %v2106_v15 }
 0x438   :  { %1070 = vadd.xlane.f32.xlu0 %v1069_v31  ;;  %v987_v25 = vpop.xlane.xlu0 %986 }
 0x439   :  { %v2118_v40 = vsub.f32 %v2028_v30, %v1010_v45  ;;  %v1009_v49 = vmul.f32 0.03125, %v987_v25  ;;  %v1078_v13 = vsel %vm60_vm0, %v1040_v39, 0.0  ;;  %v1039_v22 = vmul.f32 %v2112_v8, %v2112_v8 }
 0x43a   :  { %1079 = vadd.xlane.f32.xlu1 %v1078_v13  ;;  %v996_v43 = vpop.xlane.xlu1 %995 }
 0x43b   :  { %v2124_v48 = vsub.f32 %v2034_v26, %v1009_v49  ;;  %v1012_v37 = vmul.f32 0.03125, %v996_v43  ;;  %v1075_v57 = vsel %vm60_vm0, %v1039_v22, 0.0  ;;  %v1042_v62 = vmul.f32 %v2118_v40, %v2118_v40 }
 0x43c   :  { %1076 = vadd.xlane.f32.xlu0 %v1075_v57  ;;  %v993_v30 = vpop.xlane.xlu0 %992 }
 0x43d   :  { %v2130_v0 = vsub.f32 %v2040_v36, %v1012_v37  ;;  %v1011_v17 = vmul.f32 0.03125, %v993_v30  ;;  %v1084_v1 = vsel %vm60_vm0, %v1042_v62, 0.0  ;;  %v1041_v52 = vmul.f32 %v2124_v48, %v2124_v48 }
 0x43e   :  { %1085 = vadd.xlane.f32.xlu1 %v1084_v1 }
 0x43f   :  { %v2136_v26 = vsub.f32 %v2045_v47, %v1011_v17  ;;  %v1081_v32 = vsel %vm60_vm0, %v1041_v52, 0.0  ;;  %v1044_v54 = vmul.f32 %v2130_v0, %v2130_v0 }
 0x440   :  { %1082 = vadd.xlane.f32.xlu0 %v1081_v32 }
 0x441   :  { %v1090_v58 = vsel %vm60_vm0, %v1044_v54, 0.0  ;;  %v1043_v36 = vmul.f32 %v2136_v26, %v2136_v26 }
 0x442   :  { %1091 = vadd.xlane.f32.xlu1 %v1090_v58 }
 0x443   :  { %v1087_v33 = vsel %vm60_vm0, %v1043_v36, 0.0 }
 0x444   :  { %1088 = vadd.xlane.f32.xlu0 %v1087_v33 }
 0x4af   :  { %v1050_v10 = vpop.xlane.xlu1 %1049 }
 0x4b0   :  { %v1094_v11 = vmul.f32 0.03125, %v1050_v10 }
 0x4b1   :  { %v1047_v12 = vpop.xlane.xlu0 %1046 }
 0x4b2   :  { %v1110_v47 = vadd.f32 1e-05, %v1094_v11  ;;  %v1093_v59 = vmul.f32 0.03125, %v1047_v12 }
 0x4b3   :  { %v1056_v16 = vpop.xlane.xlu1 %1055 }
 0x4b4   :  { %1441 = vrsqrt.f32 %v1110_v47  ;;  %v1109_v18 = vadd.f32 1e-05, %v1093_v59  ;;  %v1096_v23 = vmul.f32 0.03125, %v1056_v16 }
 0x4b5   :  { %v1053_v20 = vpop.xlane.xlu0 %1052 }
 0x4b6   :  { %1443 = vrsqrt.f32 %v1109_v18  ;;  %v1112_v21 = vadd.f32 1e-05, %v1096_v23  ;;  %v1095_v61 = vmul.f32 0.03125, %v1053_v20 }
 0x4b7   :  { %v1062_v24 = vpop.xlane.xlu1 %1061 }
 0x4b8   :  { %1445 = vrsqrt.f32 %v1112_v21  ;;  %v1111_v55 = vadd.f32 1e-05, %v1095_v61  ;;  %v1098_v46 = vmul.f32 0.03125, %v1062_v24 }
 0x4b9   :  { %v1059_v27 = vpop.xlane.xlu0 %1058 }
 0x4ba   :  { %1447 = vrsqrt.f32 %v1111_v55  ;;  %v1114_v6 = vadd.f32 1e-05, %v1098_v46  ;;  %v1097_v28 = vmul.f32 0.03125, %v1059_v27 }
 0x4bb   :  { %v1068_v29 = vpop.xlane.xlu1 %1067 }
 0x4bc   :  { %1449 = vrsqrt.f32 %v1114_v6  ;;  %v1113_v4 = vadd.f32 1e-05, %v1097_v28  ;;  %v1100_v51 = vmul.f32 0.03125, %v1068_v29 }
 0x4bd   :  { %v1065_v34 = vpop.xlane.xlu0 %1064 }
 0x4be   :  { %1451 = vrsqrt.f32 %v1113_v4  ;;  %v1116_v14 = vadd.f32 1e-05, %v1100_v51  ;;  %v1099_v35 = vmul.f32 0.03125, %v1065_v34 }
 0x4bf   :  { %v1074_v42 = vpop.xlane.xlu1 %1073 }
 0x4c0   :  { %1453 = vrsqrt.f32 %v1116_v14  ;;  %v1115_v56 = vadd.f32 1e-05, %v1099_v35  ;;  %v1102_v63 = vmul.f32 0.03125, %v1074_v42 }
 0x4c1   :  { %v1442_v9 = vpop.eup %1441  ;;  %v1071_v44 = vpop.xlane.xlu0 %1070 }
 0x4c2   :  { %v1142_v45 = vmul.f32 %v1442_v9, %v2050_v50  ;;  %1455 = vrsqrt.f32 %v1115_v56  ;;  %v1118_v31 = vadd.f32 1e-05, %v1102_v63  ;;  %v1101_v39 = vmul.f32 0.03125, %v1071_v44 }
 0x4c3   :  { %v1444_v25 = vpop.eup %1443  ;;  %v1080_v49 = vpop.xlane.xlu1 %1079 }
 0x4c4   :  { %1158 = vst.msk [vmem:[#allocation2 + $0x8] sm:$0xff] %vm60_vm0, %v1142_v45  ;;  %v1141_v13 = vmul.f32 %v1444_v25, %v2053_v53  ;;  %1457 = vrsqrt.f32 %v1118_v31  ;;  %v1117_v22 = vadd.f32 1e-05, %v1101_v39  ;;  %v1104_v43 = vmul.f32 0.03125, %v1080_v49 }
 0x4c5   :  { %v1446_v37 = vpop.eup %1445  ;;  %v1077_v57 = vpop.xlane.xlu0 %1076 }
 0x4c6   :  { %1157 = vst.msk [vmem:[#allocation2] sm:$0xff] %vm60_vm0, %v1141_v13  ;;  %v1144_v62 = vmul.f32 %v1446_v37, %v2058_v38  ;;  %1459 = vrsqrt.f32 %v1117_v22  ;;  %v1120_v50 = vadd.f32 1e-05, %v1104_v43  ;;  %v1103_v30 = vmul.f32 0.03125, %v1077_v57 }
 0x4c7   :  { %v1448_v17 = vpop.eup %1447  ;;  %v1086_v1 = vpop.xlane.xlu1 %1085 }
 0x4c8   :  { %1160 = vst.msk [vmem:[#allocation2 + $0x18] sm:$0xff] %vm60_vm0, %v1144_v62  ;;  %v1143_v52 = vmul.f32 %v1448_v17, %v2064_v3  ;;  %1461 = vrsqrt.f32 %v1120_v50  ;;  %v1119_v53 = vadd.f32 1e-05, %v1103_v30  ;;  %v1106_v32 = vmul.f32 0.03125, %v1086_v1 }
 0x4c9   :  { %v1450_v54 = vpop.eup %1449  ;;  %v1083_v58 = vpop.xlane.xlu0 %1082 }
 0x4ca   :  { %1159 = vst.msk [vmem:[#allocation2 + $0x10] sm:$0xff] %vm60_vm0, %v1143_v52  ;;  %v1146_v36 = vmul.f32 %v1450_v54, %v2070_v5  ;;  %1463 = vrsqrt.f32 %v1119_v53  ;;  %v1122_v38 = vadd.f32 1e-05, %v1106_v32  ;;  %v1105_v33 = vmul.f32 0.03125, %v1083_v58 }
 0x4cb   :  { %v1452_v10 = vpop.eup %1451  ;;  %v1092_v11 = vpop.xlane.xlu1 %1091 }
 0x4cc   :  { %1162 = vst.msk [vmem:[#allocation2 + $0x28] sm:$0xff] %vm60_vm0, %v1146_v36  ;;  %v1145_v12 = vmul.f32 %v1452_v10, %v2076_v7  ;;  %1465 = vrsqrt.f32 %v1122_v38  ;;  %v1121_v3 = vadd.f32 1e-05, %v1105_v33  ;;  %v1108_v47 = vmul.f32 0.03125, %v1092_v11 }
 0x4cd   :  { %v1454_v59 = vpop.eup %1453  ;;  %v1089_v16 = vpop.xlane.xlu0 %1088 }
 0x4ce   :  { %1161 = vst.msk [vmem:[#allocation2 + $0x20] sm:$0xff] %vm60_vm0, %v1145_v12  ;;  %v1148_v18 = vmul.f32 %v1454_v59, %v2082_v19  ;;  %1467 = vrsqrt.f32 %v1121_v3  ;;  %v1124_v5 = vadd.f32 1e-05, %v1108_v47  ;;  %v1107_v23 = vmul.f32 0.03125, %v1089_v16 }
 0x4cf   :  { %v1456_v20 = vpop.eup %1455 }
 0x4d0   :  { %1164 = vst.msk [vmem:[#allocation2 + $0x38] sm:$0xff] %vm60_vm0, %v1148_v18  ;;  %v1147_v21 = vmul.f32 %v1456_v20, %v2088_v41  ;;  %1469 = vrsqrt.f32 %v1124_v5  ;;  %v1123_v61 = vadd.f32 1e-05, %v1107_v23 }
 0x4d1   :  { %v1458_v7 = vpop.eup %1457 }
 0x4d2   :  { %1163 = vst.msk [vmem:[#allocation2 + $0x30] sm:$0xff] %vm60_vm0, %v1147_v21  ;;  %v1150_v24 = vmul.f32 %v1458_v7, %v2094_v2  ;;  %1471 = vrsqrt.f32 %v1123_v61 }
 0x4d3   :  { %v1460_v55 = vpop.eup %1459 }
 0x4d4   :  { %1166 = vst.msk [vmem:[#allocation2 + $0x48] sm:$0xff] %vm60_vm0, %v1150_v24  ;;  %v1149_v19 = vmul.f32 %v1460_v55, %v2100_v60 }
 0x4d5   :  { %v1462_v46 = vpop.eup %1461 }
 0x4d6   :  { %1165 = vst.msk [vmem:[#allocation2 + $0x40] sm:$0xff] %vm60_vm0, %v1149_v19  ;;  %v1152_v27 = vmul.f32 %v1462_v46, %v2106_v15 }
 0x4d7   :  { %v1464_v6 = vpop.eup %1463 }
 0x4d8   :  { %1168 = vst.msk [vmem:[#allocation2 + $0x58] sm:$0xff] %vm60_vm0, %v1152_v27  ;;  %v1151_v41 = vmul.f32 %v1464_v6, %v2112_v8 }
 0x4d9   :  { %v1466_v28 = vpop.eup %1465 }
 0x4da   :  { %1167 = vst.msk [vmem:[#allocation2 + $0x50] sm:$0xff] %vm60_vm0, %v1151_v41  ;;  %v1154_v2 = vmul.f32 %v1466_v28, %v2118_v40 }
 0x4db   :  { %v1468_v29 = vpop.eup %1467 }
 0x4dc   :  { %1170 = vst.msk [vmem:[#allocation2 + $0x68] sm:$0xff] %vm60_vm0, %v1154_v2  ;;  %v1153_v60 = vmul.f32 %v1468_v29, %v2124_v48 }
 0x4dd   :  { %v1470_v4 = vpop.eup %1469 }
 0x4de   :  { %1169 = vst.msk [vmem:[#allocation2 + $0x60] sm:$0xff] %vm60_vm0, %v1153_v60  ;;  %v1156_v15 = vmul.f32 %v1470_v4, %v2130_v0 }
 0x4df   :  { %v1472_v51 = vpop.eup %1471 }
 0x4e0   :  { %1172 = vst.msk [vmem:[#allocation2 + $0x78] sm:$0xff] %vm60_vm0, %v1156_v15  ;;  %v1155_v8 = vmul.f32 %v1472_v51, %v2136_v26 }
 0x4e2   :  { %1171 = vst.msk [vmem:[#allocation2 + $0x70] sm:$0xff] %vm60_vm0, %v1155_v8 }
 0x4e3   :  { %1484 = shalt.err (!%p1481_p4)
}
 0x4e4   :  { %s1496_s25 = smov 128   ;;  %s1497_s26 = smov 8  }
 0x4e5   :  { %1184 = dma.vmem_to_hbm [thread:$0]  %s1179_s24, 2048, %s2189_s9, [#allocation3], %s1496_s25, %s1496_s25, %s1497_s26  }
 0x4e6   :  { %1493 = dma.done.wait [#allocation3], 2048  }
 0x4e7   :  { %1494 = vsyncadd [#allocation3], 4294965248 }
 0x4e8   :  { %1188 = vsyncpa [#allocation3], 1 }

// kernel: sparse_spatial_attention_forward.4
= control target key start
LH: loop header
LB: loop body
LE: loop exit
PB: predicated region body
PF: predicated region fallthrough
CT: control target
= control target key end

     0   :  { %s3231_s12 = smov 0   ;;  %s3601_s0 = inlined_call_operand.vmem [shape: f32[8,8,32], index: 0, kind: input, shape index: {}]   ;;  %s3602_s1 = inlined_call_operand.vmem [shape: f32[8,16,32], index: 1, kind: input, shape index: {}]   ;;  %s3603_s2 = inlined_call_operand.vmem [shape: f32[8,16,32], index: 2, kind: input, shape index: {}]   ;;  %s3604_s3 = inlined_call_operand.vmem [shape: f32[8,16,32], index: 3, kind: output, shape index: {}]  }
   0x1 LB: > { %s2833_s13 = sadd.s32 4294967295, %s3205_s12   ;;  %p2837_p0 = scmp.ge.s32.totalorder %s3205_s12, 1  ;;  %s3205_s12 = sphi %s3231_s12, %s13_s12  }
   0x2   : > { %p162_p1 = scmp.lt.s32.totalorder %s3205_s12, 3 }
   0x4   : > { %p163_p2 = pnand %p2837_p0, %p162_p1 }
   0x5   : > { %s2838_s14 = sshll.u32 (!%p163_p2), %s2833_s13, 2  ;;  %s3209_s23 = smov (!%p163_p2), 112  }
   0x6   : > { %166 = sbr.rel (%p163_p2) target bundleno = 2508 (0x9cc), region = 32  ;;  %p200_p3 = scmp.lt.s32.totalorder (!%p163_p2), %s2838_s14, 7 }
   0x7   : > { %s3210_s27 = smov (!%p163_p2), 16  }
   0xb   : > { %v3207_v0 = vmov 0.0   ;;  %vm3208_vm0 = vmmov 0   ;;  %s3606_s14 = smov (!%p200_p3, %s2838_s14), 7  ;;  %vm232_vm1 = vcmask 130048   ;;  %v404_v50 = vlaneseq }
   0xc   : > { %3003 = vmatprep.subr.mxu0 %v3207_v0  ;;  %3007 = vmatprep.mubr.msk.f32.mxu0 %vm3208_vm0, %v3207_v0  ;;  %s3245_s15 = sshll.u32 %s3606_s14, 4  ;;  %s2839_s16 = sshll.u32 %s3606_s14, 3  ;;  %vm453_vm9 = vcmask 64512  }
   0xd   : > { %3010 = vmatprep.subr.mxu1 %v3207_v0  ;;  %3014 = vmatprep.mubr.msk.f32.mxu1 %vm3208_vm0, %v3207_v0  ;;  %s3251_s19 = scalar_lea.vmem %s3602_s1, %s3245_s15  ;;  %s3256_s22 = scalar_lea.vmem %s3601_s0, %s2839_s16  ;;  %v3340_v52 = vshrl.u32 %v404_v50, 7 }
   0xe   : > { %v229_v1 = vld [vmem:[%s3251_s19 + $0x8] sm:$0xff]  ;;  %v226_v2 = vld [vmem:[%s3256_s22] sm:$0xff]  ;;  %v2865_v8 = vld [vmem:[%s3251_s19 + $0x18] sm:$0xff]  ;;  %s3293_s26 = scalar_lea.vmem %s3603_s2, %s3245_s15  ;;  %s3560_s30 = scalar_lea.vmem %s3604_s3, %s3245_s15 }
   0xf   : > { %3004 = vmatpush3.xpose.msk.msra.mxu0 %vm232_vm1, %v229_v1  ;;  %v227_v3 = vmul.f32 0.25, %v226_v2  ;;  %539 = vrot.lane.b32.xlu0 %v229_v1, %s3209_s23  ;;  %v228_v4 = vld [vmem:[%s3251_s19] sm:$0xff]  ;;  %v2863_v9 = vld [vmem:[%s3256_s22 + $0x8] sm:$0xff]  ;;  %v2864_v10 = vld [vmem:[%s3251_s19 + $0x10] sm:$0xff] }
  0x10   : > { %3005 = vmatprep.subr.mxu0 %v3207_v0  ;;  %v860_v11 = vmul.f32 0.25, %v2863_v9  ;;  %v231_v15 = vld [vmem:[%s3293_s26 + $0x8] sm:$0xff]  ;;  %v230_v16 = vld [vmem:[%s3293_s26] sm:$0xff]  ;;  %v2884_v44 = vld [vmem:[%s3256_s22 + $0x10] sm:$0xff] }
  0x11   : > { %535 = vrot.lane.b32.xlu1 %v227_v3, %s3209_s23  ;;  %3011 = vmatpush3.msra.mxu1 %v231_v15  ;;  %v3318_v39 = vld [vmem:[%s3251_s19 + $0x28] sm:$0xff]  ;;  %v3329_v46 = vld [vmem:[%s3251_s19 + $0x20] sm:$0xff]  ;;  %v3331_v48 = vmul.f32 0.25, %v2884_v44 }
  0x12   : > { %3012 = vmatprep.subr.mxu1 %v3207_v0 }
  0x13   : > { %3006 = vmatpush3.xpose.msk.msra.mxu0 %vm232_vm1, %v228_v4  ;;  %537 = vrot.lane.b32.xlu0 %v228_v4, %s3209_s23 }
  0x14   : > { %3022 = vmatprep.subr.mxu0 %v3207_v0  ;;  %3013 = vmatpush3.msra.mxu1 %v230_v16 }
  0x16   : > { %3008 = vmatmul.mubr.msk.f32.vlgmr.msra.gmra.mxu0 %vm232_vm1, %v227_v3 }
  0x17   : > { %3026 = vmatprep.mubr.msk.f32.mxu0 %vm3208_vm0, %v3207_v0 }
  0x81   : > { %v540_v5 = vpop.permute.xlu0 %539 }
  0x82   : > { %3023 = vmatpush3.xpose.msk.msra.mxu0 %vm232_vm1, %v540_v5 }
  0x83   : > { %3024 = vmatprep.subr.mxu0 %v3207_v0  ;;  %v536_v7 = vpop.permute.xlu1 %535 }
  0x85   : > { %v538_v6 = vpop.permute.xlu0 %537 }
  0x86   : > { %3025 = vmatpush3.xpose.msk.msra.mxu0 %vm232_vm1, %v538_v6 }
  0x87   : > { %3041 = vmatprep.subr.mxu0 %v3207_v0 }
  0x89   : > { %3027 = vmatmul.mubr.msk.f32.vlgmr.msra.gmra.mxu0 %vm232_vm1, %v536_v7 }
  0x8a   : > { %3042 = vmatpush3.xpose.msk.msra.mxu0 %vm232_vm1, %v2865_v8  ;;  %3045 = vmatprep.mubr.msk.f32.mxu0 %vm3208_vm0, %v3207_v0 }
  0x8b   : > { %3043 = vmatprep.subr.mxu0 %v3207_v0 }
  0x8e   : > { %3044 = vmatpush3.xpose.msk.msra.mxu0 %vm232_vm1, %v2864_v10 }
  0x8f   : > { %3060 = vmatprep.subr.mxu0 %v3207_v0 }
  0x91   : > { %3046 = vmatmul.mubr.msk.f32.vlgmr.msra.gmra.mxu0 %vm232_vm1, %v860_v11 }
  0x92   : > { %3064 = vmatprep.mubr.msk.f32.mxu0 %vm3208_vm0, %v3207_v0 }
  0xd6   : > { %v308_v12 = vpop.f32.mrf.mxu0 }
  0xd7   : > { %v312_v13 = vsel %vm232_vm1, %v308_v12, -inf }
  0xd8   : > { %313 = vmax.xlane.f32.xlu1 %v312_v13  ;;  %v3009_v14 = vpop.f32.mrf.mxu0 }
  0xe9   : > { %631 = vrot.lane.b32.xlu1 %v230_v16, %s3209_s23 }
 0x149   : > { %v613_v17 = vpop.f32.mrf.mxu0 }
 0x14a   : > { %v617_v26 = vsel %vm232_vm1, %v613_v17, -inf }
 0x14b   : > { %v3028_v18 = vpop.f32.mrf.mxu0 }
 0x151   : > { %v3299_v19 = vpop.f32.mrf.mxu0 }
 0x152   : > { %v946_v27 = vsel %vm232_vm1, %v3299_v19, -inf }
 0x153   : > { %v3047_v20 = vpop.f32.mrf.mxu0 }
 0x161   : > { %v314_v21 = vpop.xlane.xlu1 %313 }
 0x162   : > { %v315_v22 = vsub.f32 %v308_v12, %v314_v21 }
 0x164   : > { %v316_v23 = vmul.f32 1.442695, %v315_v22 }
 0x165   : > { %v632_v4 = vpop.permute.xlu1 %631 }
 0x166   : > { %3167 = vpow2.f32 %v316_v23 }
 0x173   : > { %v3168_v24 = vpop.eup %3167 }
 0x174   : > { %v318_v25 = vsel %vm232_vm1, %v3168_v24, 0.0 }
 0x175   : > { %319 = vadd.xlane.f32.xlu0 %v318_v25 }
 0x179   : > { %618 = vmax.xlane.f32.xlu0 %v617_v26 }
 0x18f   : > { %633 = vrot.lane.b32.xlu0 %v231_v15, %s3209_s23 }
 0x193   : > { %1170 = vrot.lane.b32.xlu0 %v2865_v8, %s3209_s23 }
 0x197   : > { %1168 = vrot.lane.b32.xlu0 %v2864_v10, %s3209_s23 }
 0x19b   : > { %1166 = vrot.lane.b32.xlu0 %v860_v11, %s3209_s23 }
 0x1ba   : > { %947 = vmax.xlane.f32.xlu0 %v946_v27 }
 0x1fe   : > { %v320_v28 = vpop.xlane.xlu0 %319 }
 0x1ff   : > { %3169 = vrcp.f32 %v320_v28 }
 0x202   : > { %v619_v29 = vpop.xlane.xlu0 %618 }
 0x203   : > { %v620_v30 = vsub.f32 %v613_v17, %v619_v29 }
 0x205   : > { %v621_v31 = vmul.f32 1.442695, %v620_v30 }
 0x206   : > { %v3309_v32 = vpop.permute.xlu0 %633 }
 0x207   : > { %3171 = vpow2.f32 %v621_v31 }
 0x20a   : > { %v1171_v33 = vpop.permute.xlu0 %1170 }
 0x20b   : > { %3061 = vmatpush3.xpose.msk.msra.mxu0 %vm232_vm1, %v1171_v33 }
 0x20c   : > { %v3170_v34 = vpop.eup %3169  ;;  %3062 = vmatprep.subr.mxu0 %v3207_v0 }
 0x20d   : > { %v323_v35 = vmul.f32 %v3170_v34, %v3168_v24  ;;  %v3368_v34 = vld [vmem:[%s3293_s26 + $0x18] sm:$0xff] }
 0x20e   : > { %v1169_v36 = vpop.permute.xlu0 %1168 }
 0x20f   : > { %3015 = vmatmul.mubr.msk.f32.vlgmr.msra.gmra.mxu1 %vm232_vm1, %v323_v35  ;;  %v397_v37 = vsel %vm232_vm1, %v323_v35, -inf  ;;  %3063 = vmatpush3.xpose.msk.msra.mxu0 %vm232_vm1, %v1169_v36 }
 0x210   : > { %v398_v38 = vrot.slane %v397_v37, 4  ;;  %3079 = vmatprep.subr.mxu0 %v3207_v0 }
 0x212   : > { %v399_v40 = vmax.f32 %v397_v37, %v398_v38  ;;  %v1167_v41 = vpop.permute.xlu0 %1166 }
 0x213   : > { %3065 = vmatmul.mubr.msk.f32.vlgmr.msra.gmra.mxu0 %vm232_vm1, %v1167_v41 }
 0x214   : > { %v3172_v42 = vpop.eup %3171  ;;  %v400_v43 = vrot.slane %v399_v40, 2  ;;  %3080 = vmatpush3.xpose.msk.msra.mxu0 %vm232_vm1, %v3318_v39  ;;  %3083 = vmatprep.mubr.msk.f32.mxu0 %vm3208_vm0, %v3207_v0 }
 0x215   : > { %v623_v45 = vsel %vm232_vm1, %v3172_v42, 0.0  ;;  %3081 = vmatprep.subr.mxu0 %v3207_v0 }
 0x216   : > { %v401_v47 = vmax.f32 %v399_v40, %v400_v43  ;;  %624 = vadd.xlane.f32.xlu1 %v623_v45 }
 0x218   : > { %v402_v49 = vrot.slane %v401_v47, 1  ;;  %3082 = vmatpush3.xpose.msk.msra.mxu0 %vm232_vm1, %v3329_v46 }
 0x219   : > { %3098 = vmatprep.subr.mxu0 %v3207_v0 }
 0x21a   : > { %v403_v51 = vmax.f32 %v401_v47, %v402_v49 }
 0x21b   : > { %3084 = vmatmul.mubr.msk.f32.vlgmr.msra.gmra.mxu0 %vm232_vm1, %v3331_v48 }
 0x21c   : > { %3102 = vmatprep.mubr.msk.f32.mxu0 %vm3208_vm0, %v3207_v0  ;;  %vm406_vm2 = vcmp.ge.f32.partialorder %v323_v35, %v403_v51 }
 0x21d   : > { %v407_v53 = vsel %vm406_vm2, %v3340_v52, 8 }
 0x21e   : > { %v408_v54 = vsel %vm232_vm1, %v407_v53, 2147483647 }
 0x21f   : > { %v409_v55 = vrot.slane %v408_v54, 4 }
 0x221   : > { %vm410_vm3 = vcmp.lt.s32.totalorder %v408_v54, %v409_v55 }
 0x222   : > { %v411_v56 = vsel %vm410_vm3, %v408_v54, %v409_v55  ;;  %v3394_v54 = vld [vmem:[%s3251_s19 + $0x38] sm:$0xff] }
 0x223   : > { %v412_v57 = vrot.slane %v411_v56, 2 }
 0x225   : > { %vm413_vm4 = vcmp.lt.s32.totalorder %v411_v56, %v412_v57 }
 0x226   : > { %v414_v58 = vsel %vm413_vm4, %v411_v56, %v412_v57  ;;  %v2905_v57 = vld [vmem:[%s3256_s22 + $0x18] sm:$0xff] }
 0x227   : > { %v415_v59 = vrot.slane %v414_v58, 1 }
 0x229   : > { %vm416_vm5 = vcmp.lt.s32.totalorder %v414_v58, %v415_v59 }
 0x22a   : > { %v417_v60 = vsel %vm416_vm5, %v414_v58, %v415_v59  ;;  %v3404_v58 = vld [vmem:[%s3251_s19 + $0x30] sm:$0xff] }
 0x22b   : > { %vm418_vm6 = vcmp.eq.s32.totalorder %v3340_v52, %v417_v60  ;;  %v3406_v60 = vmul.f32 0.25, %v2905_v57 }
 0x22c   : > { %v2853_v61 = vsel %vm418_vm6, 1.0, %v3207_v0 }
 0x243   : > { %v948_v62 = vpop.xlane.xlu0 %947 }
 0x244   : > { %v949_v63 = vsub.f32 %v3299_v19, %v948_v62 }
 0x246   : > { %v950_v1 = vmul.f32 1.442695, %v949_v63 }
 0x248   : > { %3173 = vpow2.f32 %v950_v1 }
 0x249   : > { %421 = vxpose.xlu1.b32.start.end [1/1] (short) (narrow) %v2853_v61, 16  ;;  %v2866_v61 = vld [vmem:[%s3293_s26 + $0x10] sm:$0xff] }
 0x255   : > { %v3347_v2 = vpop.eup %3173 }
 0x256   : > { %v952_v3 = vsel %vm232_vm1, %v3347_v2, 0.0 }
 0x274   : > { %953 = vadd.xlane.f32.xlu1 %v952_v3 }
 0x29f   : > { %v625_v5 = vpop.xlane.xlu1 %624 }
 0x2a0   : > { %3175 = vrcp.f32 %v625_v5 }
 0x2ad   : > { %v3176_v6 = vpop.eup %3175 }
 0x2ae   : > { %v628_v7 = vmul.f32 %v3176_v6, %v3172_v42 }
 0x2b0   : > { %v710_v8 = vsel %vm232_vm1, %v628_v7, -inf }
 0x2b1   : > { %v711_v9 = vrot.slane %v710_v8, 4 }
 0x2b3   : > { %v712_v10 = vmax.f32 %v710_v8, %v711_v9 }
 0x2b5   : > { %v713_v11 = vrot.slane %v712_v10, 2 }
 0x2b7   : > { %v714_v12 = vmax.f32 %v712_v10, %v713_v11 }
 0x2b9   : > { %v715_v13 = vrot.slane %v714_v12, 1 }
 0x2bb   : > { %v716_v14 = vmax.f32 %v714_v12, %v715_v13 }
 0x2bd   : > { %vm717_vm7 = vcmp.ge.f32.partialorder %v628_v7, %v716_v14 }
 0x2be   : > { %v718_v15 = vsel %vm717_vm7, %v3340_v52, 8 }
 0x2bf   : > { %v719_v16 = vsel %vm232_vm1, %v718_v15, 2147483647 }
 0x2c0   : > { %v720_v17 = vrot.slane %v719_v16, 4 }
 0x2c2   : > { %vm721_vm8 = vcmp.lt.s32.totalorder %v719_v16, %v720_v17 }
 0x2c3   : > { %v722_v18 = vsel %vm721_vm8, %v719_v16, %v720_v17 }
 0x2c4   : > { %v723_v19 = vrot.slane %v722_v18, 2 }
 0x2c5   : > { %v437_v20 = vpop.trf.xlu1 }
 0x2c6   : > { %vm724_vm10 = vcmp.lt.s32.totalorder %v722_v18, %v723_v19  ;;  %3019 = vmatprep.mubr.msk.f32.mxu1 %vm453_vm9, %v437_v20 }
 0x2c7   : > { %v725_v21 = vsel %vm724_vm10, %v722_v18, %v723_v19 }
 0x2c8   : > { %v726_v22 = vrot.slane %v725_v21, 1 }
 0x2c9   : > { %v438_v26 = vpop.trf.xlu1 }
 0x2ca   : > { %vm727_vm11 = vcmp.lt.s32.totalorder %v725_v21, %v726_v22 }
 0x2cb   : > { %v728_v23 = vsel %vm727_vm11, %v725_v21, %v726_v22 }
 0x2cc   : > { %vm729_vm12 = vcmp.eq.s32.totalorder %v3340_v52, %v728_v23 }
 0x2cd   : > { %v2860_v24 = vsel %vm729_vm12, 1.0, %v3207_v0 }
 0x2ce   : > { %732 = vxpose.xlu0.b32.start.end [1/1] (short) (narrow) %v2860_v24, 16 }
 0x2cf   : > { %v393_v25 = vpop.f32.mrf.mxu1 }
 0x2d0   : > { %3017 = vmatprep.subr.mxu1 %v393_v25 }
 0x2d1   : > { %v3016_v27 = vpop.f32.mrf.mxu1  ;;  %3018 = vmatpush3.msra.mxu1 %v393_v25 }
 0x2d2   : > { %3020 = vmatmul.mubr.msk.f32.vlgmr.msra.gmra.mxu1 %vm453_vm9, %v438_v26  ;;  %3029 = vmatprep.subr.mxu1 %v3207_v0 }
 0x2d3   : > { %3030 = vmatpush3.msra.mxu1 %v3309_v32  ;;  %v1244_v28 = vpop.f32.mrf.mxu0  ;;  %3033 = vmatprep.mubr.msk.f32.mxu1 %vm3208_vm0, %v3207_v0 }
 0x2d4   : > { %3031 = vmatprep.subr.mxu1 %v3207_v0  ;;  %v1248_v29 = vsel %vm232_vm1, %v1244_v28, -inf }
 0x2d5   : > { %3032 = vmatpush3.msra.mxu1 %v632_v4  ;;  %1249 = vmax.xlane.f32.xlu1 %v1248_v29  ;;  %v3066_v30 = vpop.f32.mrf.mxu0 }
 0x2d6   : > { %3034 = vmatmul.mubr.msk.f32.vlgmr.msra.gmra.mxu1 %vm232_vm1, %v628_v7 }
 0x2db   : > { %v3365_v31 = vpop.f32.mrf.mxu0 }
 0x2dc   : > { %v1577_v32 = vsel %vm232_vm1, %v3365_v31, -inf }
 0x2dd   : > { %v3085_v33 = vpop.f32.mrf.mxu0 }
 0x2fb   : > { %1264 = vrot.lane.b32.xlu0 %v3368_v34, %s3209_s23 }
 0x2fd   : > { %v954_v36 = vpop.xlane.xlu1 %953 }
 0x2fe   : > { %3177 = vrcp.f32 %v954_v36 }
 0x2ff   : > { %1801 = vrot.lane.b32.xlu0 %v3318_v39, %s3209_s23 }
 0x303   : > { %1799 = vrot.lane.b32.xlu0 %v3329_v46, %s3209_s23 }
 0x307   : > { %1797 = vrot.lane.b32.xlu0 %v3331_v48, %s3209_s23 }
 0x30b   : > { %v3178_v38 = vpop.eup %3177 }
 0x30c   : > { %v957_v39 = vmul.f32 %v3178_v38, %v3347_v2 }
 0x30e   : > { %v1031_v42 = vsel %vm232_vm1, %v957_v39, -inf }
 0x30f   : > { %v1032_v44 = vrot.slane %v1031_v42, 4 }
 0x311   : > { %v1033_v46 = vmax.f32 %v1031_v42, %v1032_v44 }
 0x313   : > { %v1034_v50 = vrot.slane %v1033_v46, 2 }
 0x315   : > { %v1035_v53 = vmax.f32 %v1033_v46, %v1034_v50 }
 0x317   : > { %v1036_v56 = vrot.slane %v1035_v53, 1 }
 0x319   : > { %v1037_v59 = vmax.f32 %v1035_v53, %v1036_v56 }
 0x31b   : > { %vm1038_vm13 = vcmp.ge.f32.partialorder %v957_v39, %v1037_v59 }
 0x31c   : > { %v1039_v62 = vsel %vm1038_vm13, %v3340_v52, 8 }
 0x31d   : > { %v1040_v63 = vsel %vm232_vm1, %v1039_v62, 2147483647 }
 0x31e   : > { %v1041_v1 = vrot.slane %v1040_v63, 4 }
 0x320   : > { %vm1042_vm14 = vcmp.lt.s32.totalorder %v1040_v63, %v1041_v1 }
 0x321   : > { %v1043_v2 = vsel %vm1042_vm14, %v1040_v63, %v1041_v1 }
 0x322   : > { %v1044_v5 = vrot.slane %v1043_v2, 2 }
 0x324   : > { %vm1045_vm15 = vcmp.lt.s32.totalorder %v1043_v2, %v1044_v5 }
 0x325   : > { %v1046_v8 = vsel %vm1045_vm15, %v1043_v2, %v1044_v5 }
 0x326   : > { %1578 = vmax.xlane.f32.xlu0 %v1577_v32  ;;  %v1047_v9 = vrot.slane %v1046_v8, 1 }
 0x328   : > { %vm1048_vm2 = vcmp.lt.s32.totalorder %v1046_v8, %v1047_v9 }
 0x329   : > { %v1049_v10 = vsel %vm1048_vm2, %v1046_v8, %v1047_v9  ;;  %v2887_v9 = vld [vmem:[%s3293_s26 + $0x20] sm:$0xff] }
 0x32a   : > { %vm1050_vm3 = vcmp.eq.s32.totalorder %v3340_v52, %v1049_v10 }
 0x32b   : > { %v2872_v11 = vsel %vm1050_vm3, 1.0, %v3207_v0 }
 0x34a   : > { %v748_v35 = vpop.trf.xlu0 }
 0x34b   : > { %3038 = vmatprep.mubr.msk.f32.mxu1 %vm453_vm9, %v748_v35 }
 0x34e   : > { %v749_v43 = vpop.trf.xlu0 }
 0x35e   : > { %v1250_v37 = vpop.xlane.xlu1 %1249 }
 0x35f   : > { %v1251_v40 = vsub.f32 %v1244_v28, %v1250_v37 }
 0x361   : > { %v1252_v41 = vmul.f32 1.442695, %v1251_v40 }
 0x363   : > { %3179 = vpow2.f32 %v1252_v41 }
 0x36d   : > { %v3383_v45 = vpop.permute.xlu0 %1264 }
 0x370   : > { %v3385_v47 = vpop.eup %3179 }
 0x371   : > { %v1802_v48 = vpop.permute.xlu0 %1801  ;;  %v1254_v49 = vsel %vm232_vm1, %v3385_v47, 0.0 }
 0x372   : > { %3099 = vmatpush3.xpose.msk.msra.mxu0 %vm232_vm1, %v1802_v48  ;;  %1255 = vadd.xlane.f32.xlu1 %v1254_v49 }
 0x373   : > { %3100 = vmatprep.subr.mxu0 %v3207_v0 }
 0x375   : > { %v1800_v51 = vpop.permute.xlu0 %1799 }
 0x376   : > { %3101 = vmatpush3.xpose.msk.msra.mxu0 %vm232_vm1, %v1800_v51 }
 0x377   : > { %3117 = vmatprep.subr.mxu0 %v3207_v0 }
 0x379   : > { %v1798_v55 = vpop.permute.xlu0 %1797 }
 0x37a   : > { %3103 = vmatmul.mubr.msk.f32.vlgmr.msra.gmra.mxu0 %vm232_vm1, %v1798_v55 }
 0x37b   : > { %3118 = vmatpush3.xpose.msk.msra.mxu0 %vm232_vm1, %v3394_v54  ;;  %3121 = vmatprep.mubr.msk.f32.mxu0 %vm3208_vm0, %v3207_v0 }
 0x37c   : > { %3119 = vmatprep.subr.mxu0 %v3207_v0 }
 0x37f   : > { %3120 = vmatpush3.xpose.msk.msra.mxu0 %vm232_vm1, %v3404_v58 }
 0x380   : > { %3136 = vmatprep.subr.mxu0 %v3207_v0 }
 0x382   : > { %3122 = vmatmul.mubr.msk.f32.vlgmr.msra.gmra.mxu0 %vm232_vm1, %v3406_v60 }
 0x383   : > { %1262 = vrot.lane.b32.xlu1 %v2866_v61, %s3209_s23  ;;  %3140 = vmatprep.mubr.msk.f32.mxu0 %vm3208_vm0, %v3207_v0 }
 0x392   : > { %v3419_v3 = vpop.f32.mrf.mxu1 }
 0x394   : > { %v3421_v4 = vpop.f32.mrf.mxu1 }
 0x396   : > { %v706_v6 = vpop.f32.mrf.mxu1 }
 0x397   : > { %3036 = vmatprep.subr.mxu1 %v706_v6 }
 0x398   : > { %v3035_v7 = vpop.f32.mrf.mxu1  ;;  %3037 = vmatpush3.msra.mxu1 %v706_v6 }
 0x399   : > { %3039 = vmatmul.mubr.msk.f32.vlgmr.msra.gmra.mxu1 %vm453_vm9, %v749_v43  ;;  %3048 = vmatprep.subr.mxu1 %v3207_v0  ;;  %v2888_v7 = vld [vmem:[%s3293_s26 + $0x28] sm:$0xff] }
 0x39a   : > { %3049 = vmatpush3.msra.mxu1 %v3368_v34  ;;  %3052 = vmatprep.mubr.msk.f32.mxu1 %vm3208_vm0, %v3207_v0 }
 0x39b   : > { %3050 = vmatprep.subr.mxu1 %v3207_v0 }
 0x39c   : > { %3051 = vmatpush3.msra.mxu1 %v2866_v61 }
 0x39d   : > { %3053 = vmatmul.mubr.msk.f32.vlgmr.msra.gmra.mxu1 %vm232_vm1, %v957_v39 }
 0x3ac   : > { %1053 = vxpose.xlu1.b32.start.end [1/1] (short) (narrow) %v2872_v11, 16 }
 0x3af   : > { %v1579_v12 = vpop.xlane.xlu0 %1578 }
 0x3b0   : > { %v1580_v13 = vsub.f32 %v3365_v31, %v1579_v12 }
 0x3b2   : > { %v1581_v14 = vmul.f32 1.442695, %v1580_v13 }
 0x3b4   : > { %3181 = vpow2.f32 %v1581_v14 }
 0x3c1   : > { %v3433_v15 = vpop.eup %3181 }
 0x3c2   : > { %v1583_v16 = vsel %vm232_vm1, %v3433_v15, 0.0 }
 0x3d7   : > { %1584 = vadd.xlane.f32.xlu1 %v1583_v16 }
 0x3fb   : > { %v1256_v17 = vpop.xlane.xlu1 %1255 }
 0x3fc   : > { %3183 = vrcp.f32 %v1256_v17 }
 0x3ff   : > { %v1263_v33 = vpop.permute.xlu1 %1262 }
 0x409   : > { %v3184_v18 = vpop.eup %3183 }
 0x40a   : > { %v1259_v19 = vmul.f32 %v3184_v18, %v3385_v47 }
 0x40c   : > { %v1341_v20 = vsel %vm232_vm1, %v1259_v19, -inf }
 0x40d   : > { %v1342_v21 = vrot.slane %v1341_v20, 4 }
 0x40f   : > { %v1343_v22 = vmax.f32 %v1341_v20, %v1342_v21 }
 0x411   : > { %v1344_v23 = vrot.slane %v1343_v22, 2 }
 0x413   : > { %v1345_v24 = vmax.f32 %v1343_v22, %v1344_v23 }
 0x415   : > { %v1346_v25 = vrot.slane %v1345_v24, 1 }
 0x417   : > { %v1347_v26 = vmax.f32 %v1345_v24, %v1346_v25 }
 0x419   : > { %vm1348_vm4 = vcmp.ge.f32.partialorder %v1259_v19, %v1347_v26 }
 0x41a   : > { %v1349_v27 = vsel %vm1348_vm4, %v3340_v52, 8 }
 0x41b   : > { %v1350_v28 = vsel %vm232_vm1, %v1349_v27, 2147483647 }
 0x41c   : > { %v1351_v29 = vrot.slane %v1350_v28, 4 }
 0x41e   : > { %vm1352_vm5 = vcmp.lt.s32.totalorder %v1350_v28, %v1351_v29 }
 0x41f   : > { %v1353_v30 = vsel %vm1352_vm5, %v1350_v28, %v1351_v29 }
 0x420   : > { %v1354_v31 = vrot.slane %v1353_v30, 2 }
 0x422   : > { %vm1355_vm6 = vcmp.lt.s32.totalorder %v1353_v30, %v1354_v31 }
 0x423   : > { %v1356_v34 = vsel %vm1355_vm6, %v1353_v30, %v1354_v31 }
 0x424   : > { %v1357_v32 = vrot.slane %v1356_v34, 1 }
 0x426   : > { %vm1358_vm7 = vcmp.lt.s32.totalorder %v1356_v34, %v1357_v32 }
 0x427   : > { %v1359_v35 = vsel %vm1358_vm7, %v1356_v34, %v1357_v32 }
 0x428   : > { %vm1360_vm8 = vcmp.eq.s32.totalorder %v3340_v52, %v1359_v35  ;;  %v1069_v36 = vpop.trf.xlu1 }
 0x429   : > { %v2879_v37 = vsel %vm1360_vm8, 1.0, %v3207_v0  ;;  %3057 = vmatprep.mubr.msk.f32.mxu1 %vm453_vm9, %v1069_v36 }
 0x42a   : > { %1363 = vxpose.xlu0.b32.start.end [1/1] (short) (narrow) %v2879_v37, 16 }
 0x42c   : > { %v1070_v47 = vpop.trf.xlu1 }
 0x43a   : > { %v1875_v38 = vpop.f32.mrf.mxu0 }
 0x43b   : > { %v1879_v40 = vsel %vm232_vm1, %v1875_v38, -inf }
 0x43c   : > { %1880 = vmax.xlane.f32.xlu1 %v1879_v40  ;;  %v3104_v41 = vpop.f32.mrf.mxu0 }
 0x442   : > { %v3445_v39 = vpop.f32.mrf.mxu0 }
 0x443   : > { %v2208_v49 = vsel %vm232_vm1, %v3445_v39, -inf }
 0x444   : > { %v3123_v42 = vpop.f32.mrf.mxu0 }
 0x457   : > { %2432 = vrot.lane.b32.xlu0 %v3394_v54, %s3209_s23 }
 0x459   : > { %v3449_v43 = vpop.f32.mrf.mxu1 }
 0x45b   : > { %v3451_v44 = vpop.f32.mrf.mxu1  ;;  %2428 = vrot.lane.b32.xlu0 %v3406_v60, %s3209_s23 }
 0x45d   : > { %v1027_v46 = vpop.f32.mrf.mxu1 }
 0x45e   : > { %3055 = vmatprep.subr.mxu1 %v1027_v46 }
 0x45f   : > { %v3054_v48 = vpop.f32.mrf.mxu1  ;;  %3056 = vmatpush3.msra.mxu1 %v1027_v46 }
 0x460   : > { %3058 = vmatmul.mubr.msk.f32.vlgmr.msra.gmra.mxu1 %vm453_vm9, %v1070_v47  ;;  %3067 = vmatprep.subr.mxu1 %v3207_v0  ;;  %v1585_v51 = vpop.xlane.xlu1 %1584 }
 0x461   : > { %3068 = vmatpush3.msra.mxu1 %v3383_v45  ;;  %3071 = vmatprep.mubr.msk.f32.mxu1 %vm3208_vm0, %v3207_v0  ;;  %3185 = vrcp.f32 %v1585_v51 }
 0x462   : > { %3069 = vmatprep.subr.mxu1 %v3207_v0 }
 0x463   : > { %3070 = vmatpush3.msra.mxu1 %v1263_v33 }
 0x464   : > { %3072 = vmatmul.mubr.msk.f32.vlgmr.msra.gmra.mxu1 %vm232_vm1, %v1259_v19 }
 0x46e   : > { %v3186_v57 = vpop.eup %3185 }
 0x46f   : > { %v1588_v59 = vmul.f32 %v3186_v57, %v3433_v15 }
 0x471   : > { %v1662_v60 = vsel %vm232_vm1, %v1588_v59, -inf }
 0x472   : > { %v1663_v61 = vrot.slane %v1662_v60, 4 }
 0x474   : > { %v1664_v1 = vmax.f32 %v1662_v60, %v1663_v61  ;;  %v2908_v61 = vld [vmem:[%s3293_s26 + $0x30] sm:$0xff] }
 0x476   : > { %v1665_v2 = vrot.slane %v1664_v1, 2 }
 0x478   : > { %v1666_v5 = vmax.f32 %v1664_v1, %v1665_v2 }
 0x47a   : > { %2209 = vmax.xlane.f32.xlu0 %v2208_v49  ;;  %v1667_v6 = vrot.slane %v1666_v5, 1 }
 0x47c   : > { %v1668_v8 = vmax.f32 %v1666_v5, %v1667_v6 }
 0x47e   : > { %vm1669_vm10 = vcmp.ge.f32.partialorder %v1588_v59, %v1668_v8 }
 0x47f   : > { %v1670_v10 = vsel %vm1669_vm10, %v3340_v52, 8 }
 0x480   : > { %v1671_v11 = vsel %vm232_vm1, %v1670_v10, 2147483647 }
 0x481   : > { %v1672_v12 = vrot.slane %v1671_v11, 4 }
 0x483   : > { %vm1673_vm11 = vcmp.lt.s32.totalorder %v1671_v11, %v1672_v12 }
 0x484   : > { %v1674_v13 = vsel %vm1673_vm11, %v1671_v11, %v1672_v12 }
 0x485   : > { %v1675_v14 = vrot.slane %v1674_v13, 2 }
 0x487   : > { %vm1676_vm12 = vcmp.lt.s32.totalorder %v1674_v13, %v1675_v14 }
 0x488   : > { %v1677_v15 = vsel %vm1676_vm12, %v1674_v13, %v1675_v14 }
 0x489   : > { %v1678_v16 = vrot.slane %v1677_v15, 1 }
 0x48b   : > { %vm1679_vm13 = vcmp.lt.s32.totalorder %v1677_v15, %v1678_v16 }
 0x48c   : > { %v1680_v17 = vsel %vm1679_vm13, %v1677_v15, %v1678_v16 }
 0x48d   : > { %vm1681_vm14 = vcmp.eq.s32.totalorder %v3340_v52, %v1680_v17 }
 0x48e   : > { %v2893_v18 = vsel %vm1681_vm14, 1.0, %v3207_v0 }
 0x4a6   : > { %v1379_v50 = vpop.trf.xlu0 }
 0x4a7   : > { %3076 = vmatprep.mubr.msk.f32.mxu1 %vm453_vm9, %v1379_v50 }
 0x4aa   : > { %v1380_v54 = vpop.trf.xlu0 }
 0x4c5   : > { %v1881_v53 = vpop.xlane.xlu1 %1880 }
 0x4c6   : > { %v1882_v45 = vsub.f32 %v1875_v38, %v1881_v53 }
 0x4c8   : > { %v1883_v55 = vmul.f32 1.442695, %v1882_v45 }
 0x4c9   : > { %v2433_v56 = vpop.permute.xlu0 %2432 }
 0x4ca   : > { %3187 = vpow2.f32 %v1883_v55  ;;  %3137 = vmatpush3.xpose.msk.msra.mxu0 %vm232_vm1, %v2433_v56 }
 0x4cb   : > { %3138 = vmatprep.subr.mxu0 %v3207_v0 }
 0x4cd   : > { %v2429_v23 = vpop.permute.xlu0 %2428 }
 0x4d7   : > { %v3188_v62 = vpop.eup %3187 }
 0x4d8   : > { %v1885_v63 = vsel %vm232_vm1, %v3188_v62, 0.0 }
 0x4d9   : > { %1886 = vadd.xlane.f32.xlu1 %v1885_v63 }
 0x4ea   : > { %1895 = vrot.lane.b32.xlu1 %v2888_v7, %s3209_s23 }
 0x4ee   : > { %1893 = vrot.lane.b32.xlu1 %v2887_v9, %s3209_s23 }
 0x503   : > { %v2210_v24 = vpop.xlane.xlu0 %2209 }
 0x504   : > { %v2211_v25 = vsub.f32 %v3445_v39, %v2210_v24 }
 0x506   : > { %v2212_v26 = vmul.f32 1.442695, %v2211_v25 }
 0x508   : > { %3189 = vpow2.f32 %v2212_v26 }
 0x515   : > { %v3491_v27 = vpop.eup %3189 }
 0x516   : > { %v2214_v28 = vsel %vm232_vm1, %v3491_v27, 0.0 }
 0x517   : > { %1684 = vxpose.xlu1.b32.start.end [1/1] (short) (narrow) %v2893_v18, 16 }
 0x520   : > { %v3478_v19 = vpop.f32.mrf.mxu1 }
 0x522   : > { %v3480_v20 = vpop.f32.mrf.mxu1 }
 0x524   : > { %v1337_v21 = vpop.f32.mrf.mxu1 }
 0x525   : > { %3074 = vmatprep.subr.mxu1 %v1337_v21 }
 0x526   : > { %v3073_v22 = vpop.f32.mrf.mxu1  ;;  %3075 = vmatpush3.msra.mxu1 %v1337_v21 }
 0x527   : > { %3077 = vmatmul.mubr.msk.f32.vlgmr.msra.gmra.mxu1 %vm453_vm9, %v1380_v54  ;;  %3086 = vmatprep.subr.mxu1 %v3207_v0 }
 0x528   : > { %3087 = vmatpush3.msra.mxu1 %v2888_v7  ;;  %3090 = vmatprep.mubr.msk.f32.mxu1 %vm3208_vm0, %v3207_v0 }
 0x529   : > { %3088 = vmatprep.subr.mxu1 %v3207_v0 }
 0x52a   : > { %3089 = vmatpush3.msra.mxu1 %v2887_v9  ;;  %v2909_v9 = vld [vmem:[%s3293_s26 + $0x38] sm:$0xff] }
 0x52b   : > { %3091 = vmatmul.mubr.msk.f32.vlgmr.msra.gmra.mxu1 %vm232_vm1, %v1588_v59 }
 0x539   : > { %2430 = vrot.lane.b32.xlu1 %v3404_v58, %s3209_s23 }
 0x55d   : > { %2215 = vadd.xlane.f32.xlu1 %v2214_v28 }
 0x562   : > { %v1887_v29 = vpop.xlane.xlu1 %1886 }
 0x563   : > { %3191 = vrcp.f32 %v1887_v29 }
 0x566   : > { %v1896_v46 = vpop.permute.xlu1 %1895 }
 0x56a   : > { %v1894_v50 = vpop.permute.xlu1 %1893 }
 0x570   : > { %v3192_v30 = vpop.eup %3191 }
 0x571   : > { %v1890_v31 = vmul.f32 %v3192_v30, %v3188_v62 }
 0x573   : > { %v1972_v33 = vsel %vm232_vm1, %v1890_v31, -inf }
 0x574   : > { %v1973_v34 = vrot.slane %v1972_v33, 4 }
 0x576   : > { %v1974_v58 = vmax.f32 %v1972_v33, %v1973_v34 }
 0x578   : > { %v1975_v32 = vrot.slane %v1974_v58, 2 }
 0x57a   : > { %v1976_v35 = vmax.f32 %v1974_v58, %v1975_v32 }
 0x57c   : > { %v1977_v36 = vrot.slane %v1976_v35, 1 }
 0x57e   : > { %v1978_v37 = vmax.f32 %v1976_v35, %v1977_v36 }
 0x580   : > { %vm1979_vm15 = vcmp.ge.f32.partialorder %v1890_v31, %v1978_v37 }
 0x581   : > { %v1980_v38 = vsel %vm1979_vm15, %v3340_v52, 8 }
 0x582   : > { %v1981_v40 = vsel %vm232_vm1, %v1980_v38, 2147483647 }
 0x583   : > { %v1982_v41 = vrot.slane %v1981_v40, 4 }
 0x585   : > { %vm1983_vm2 = vcmp.lt.s32.totalorder %v1981_v40, %v1982_v41 }
 0x586   : > { %v1984_v39 = vsel %vm1983_vm2, %v1981_v40, %v1982_v41 }
 0x587   : > { %v1985_v42 = vrot.slane %v1984_v39, 2 }
 0x589   : > { %vm1986_vm3 = vcmp.lt.s32.totalorder %v1984_v39, %v1985_v42 }
 0x58a   : > { %v1987_v47 = vsel %vm1986_vm3, %v1984_v39, %v1985_v42  ;;  %vm855_vm3 = vcmask 261120  }
 0x58b   : > { %v1988_v48 = vrot.slane %v1987_v47, 1 }
 0x58d   : > { %vm1989_vm4 = vcmp.lt.s32.totalorder %v1987_v47, %v1988_v48 }
 0x58e   : > { %v1990_v49 = vsel %vm1989_vm4, %v1987_v47, %v1988_v48 }
 0x58f   : > { %vm1991_vm5 = vcmp.eq.s32.totalorder %v3340_v52, %v1990_v49 }
 0x590   : > { %v2900_v51 = vsel %vm1991_vm5, 1.0, %v3207_v0 }
 0x591   : > { %1994 = vxpose.xlu0.b32.start.end [1/1] (short) (narrow) %v2900_v51, 16 }
 0x593   : > { %v1700_v53 = vpop.trf.xlu1 }
 0x594   : > { %3095 = vmatprep.mubr.msk.f32.mxu1 %vm453_vm9, %v1700_v53 }
 0x597   : > { %v1701_v54 = vpop.trf.xlu1 }
 0x5ab   : > { %v2431_v45 = vpop.permute.xlu1 %2430 }
 0x5ac   : > { %3139 = vmatpush3.xpose.msk.msra.mxu0 %vm232_vm1, %v2431_v45 }
 0x5af   : > { %3141 = vmatmul.mubr.msk.f32.vlgmr.msra.gmra.mxu0 %vm232_vm1, %v2429_v23 }
 0x5be   : > { %2524 = vrot.lane.b32.xlu0 %v2908_v61, %s3209_s23 }
 0x5e6   : > { %v2216_v2 = vpop.xlane.xlu1 %2215 }
 0x5e7   : > { %v3503_v55 = vpop.f32.mrf.mxu1  ;;  %3193 = vrcp.f32 %v2216_v2 }
 0x5e9   : > { %v3505_v56 = vpop.f32.mrf.mxu1 }
 0x5eb   : > { %v1658_v57 = vpop.f32.mrf.mxu1 }
 0x5ec   : > { %3093 = vmatprep.subr.mxu1 %v1658_v57 }
 0x5ed   : > { %v3092_v59 = vpop.f32.mrf.mxu1  ;;  %3094 = vmatpush3.msra.mxu1 %v1658_v57 }
 0x5ee   : > { %3096 = vmatmul.mubr.msk.f32.vlgmr.msra.gmra.mxu1 %vm453_vm9, %v1701_v54  ;;  %3105 = vmatprep.subr.mxu1 %v3207_v0 }
 0x5ef   : > { %3106 = vmatpush3.msra.mxu1 %v1896_v46  ;;  %3109 = vmatprep.mubr.msk.f32.mxu1 %vm3208_vm0, %v3207_v0 }
 0x5f0   : > { %3107 = vmatprep.subr.mxu1 %v3207_v0 }
 0x5f1   : > { %3108 = vmatpush3.msra.mxu1 %v1894_v50 }
 0x5f2   : > { %3110 = vmatmul.mubr.msk.f32.vlgmr.msra.gmra.mxu1 %vm232_vm1, %v1890_v31 }
 0x5f4   : > { %v3194_v10 = vpop.eup %3193 }
 0x5f5   : > { %v2219_v12 = vmul.f32 %v3194_v10, %v3491_v27 }
 0x5f7   : > { %v2293_v16 = vsel %vm232_vm1, %v2219_v12, -inf }
 0x5f8   : > { %v2294_v17 = vrot.slane %v2293_v16, 4 }
 0x5fa   : > { %v2295_v18 = vmax.f32 %v2293_v16, %v2294_v17 }
 0x5fc   : > { %v2296_v23 = vrot.slane %v2295_v18, 2 }
 0x5fe   : > { %v2297_v24 = vmax.f32 %v2295_v18, %v2296_v23 }
 0x600   : > { %v2298_v25 = vrot.slane %v2297_v24, 1 }
 0x602   : > { %v2299_v26 = vmax.f32 %v2297_v24, %v2298_v25 }
 0x604   : > { %vm2300_vm6 = vcmp.ge.f32.partialorder %v2219_v12, %v2299_v26 }
 0x605   : > { %v2301_v27 = vsel %vm2300_vm6, %v3340_v52, 8 }
 0x606   : > { %v2302_v28 = vsel %vm232_vm1, %v2301_v27, 2147483647 }
 0x607   : > { %v2303_v29 = vrot.slane %v2302_v28, 4 }
 0x609   : > { %vm2304_vm7 = vcmp.lt.s32.totalorder %v2302_v28, %v2303_v29 }
 0x60a   : > { %v2305_v30 = vsel %vm2304_vm7, %v2302_v28, %v2303_v29 }
 0x60b   : > { %v2306_v31 = vrot.slane %v2305_v30, 2 }
 0x60d   : > { %v2010_v60 = vpop.trf.xlu0  ;;  %vm2307_vm8 = vcmp.lt.s32.totalorder %v2305_v30, %v2306_v31 }
 0x60e   : > { %3114 = vmatprep.mubr.msk.f32.mxu1 %vm453_vm9, %v2010_v60  ;;  %v2308_v33 = vsel %vm2307_vm8, %v2305_v30, %v2306_v31 }
 0x60f   : > { %v2309_v34 = vrot.slane %v2308_v33, 1 }
 0x611   : > { %v2011_v8 = vpop.trf.xlu0  ;;  %vm2310_vm10 = vcmp.lt.s32.totalorder %v2308_v33, %v2309_v34 }
 0x612   : > { %v2311_v58 = vsel %vm2310_vm10, %v2308_v33, %v2309_v34 }
 0x613   : > { %vm2312_vm11 = vcmp.eq.s32.totalorder %v3340_v52, %v2311_v58 }
 0x614   : > { %v2914_v32 = vsel %vm2312_vm11, 1.0, %v3207_v0 }
 0x66f   : > { %v2506_v62 = vpop.f32.mrf.mxu0 }
 0x670   : > { %v2510_v63 = vsel %vm232_vm1, %v2506_v62, -inf }
 0x671   : > { %2511 = vmax.xlane.f32.xlu1 %v2510_v63  ;;  %v3142_v1 = vpop.f32.mrf.mxu0 }
 0x672   : > { %v2525_v1 = vpop.permute.xlu0 %2524 }
 0x6ae   : > { %v3517_v5 = vpop.f32.mrf.mxu1 }
 0x6b0   : > { %v3519_v6 = vpop.f32.mrf.mxu1 }
 0x6b2   : > { %v1968_v7 = vpop.f32.mrf.mxu1 }
 0x6b3   : > { %3112 = vmatprep.subr.mxu1 %v1968_v7 }
 0x6b4   : > { %v3111_v11 = vpop.f32.mrf.mxu1  ;;  %3113 = vmatpush3.msra.mxu1 %v1968_v7 }
 0x6b5   : > { %3115 = vmatmul.mubr.msk.f32.vlgmr.msra.gmra.mxu1 %vm453_vm9, %v2011_v8  ;;  %3124 = vmatprep.subr.mxu1 %v3207_v0 }
 0x6b6   : > { %3125 = vmatpush3.msra.mxu1 %v2909_v9  ;;  %3128 = vmatprep.mubr.msk.f32.mxu1 %vm3208_vm0, %v3207_v0 }
 0x6b7   : > { %3126 = vmatprep.subr.mxu1 %v3207_v0 }
 0x6b8   : > { %3127 = vmatpush3.msra.mxu1 %v2908_v61 }
 0x6b9   : > { %3129 = vmatmul.mubr.msk.f32.vlgmr.msra.gmra.mxu1 %vm232_vm1, %v2219_v12 }
 0x6fa   : > { %v2512_v13 = vpop.xlane.xlu1 %2511 }
 0x6fb   : > { %v2513_v14 = vsub.f32 %v2506_v62, %v2512_v13 }
 0x6fd   : > { %v2514_v15 = vmul.f32 1.442695, %v2513_v14 }
 0x6ff   : > { %3195 = vpow2.f32 %v2514_v15 }
 0x70c   : > { %v3196_v21 = vpop.eup %3195 }
 0x70d   : > { %v2516_v22 = vsel %vm232_vm1, %v3196_v21, 0.0 }
 0x70e   : > { %2517 = vadd.xlane.f32.xlu1 %v2516_v22 }
 0x71f   : > { %2526 = vrot.lane.b32.xlu1 %v2909_v9, %s3209_s23 }
 0x748   : > { %2315 = vxpose.xlu1.b32.start.end [1/1] (short) (narrow) %v2914_v32, 16 }
 0x76a   : > { %847 = vrot.lane.b32.xlu1 %v3451_v44, %s3210_s27 }
 0x76e   : > { %1480 = vrot.lane.b32.xlu1 %v3503_v55, %s3210_s27 }
 0x772   : > { %1478 = vrot.lane.b32.xlu1 %v3505_v56, %s3210_s27 }
 0x775   : > { %v3116_v35 = vpop.f32.mrf.mxu1 }
 0x776   : > { %2111 = vrot.lane.b32.xlu1 %v3116_v35, %s3210_s27 }
 0x777   : > { %v2098_v36 = vpop.f32.mrf.mxu1 }
 0x779   : > { %v2289_v37 = vpop.f32.mrf.mxu1 }
 0x77a   : > { %3131 = vmatprep.subr.mxu1 %v2289_v37  ;;  %2109 = vrot.lane.b32.xlu1 %v2098_v36, %s3210_s27 }
 0x77b   : > { %v3130_v38 = vpop.f32.mrf.mxu1  ;;  %3132 = vmatpush3.msra.mxu1 %v2289_v37 }
 0x77c   : > { %3143 = vmatprep.subr.mxu1 %v3207_v0 }
 0x797   : > { %v2518_v40 = vpop.xlane.xlu1 %2517 }
 0x798   : > { %3197 = vrcp.f32 %v2518_v40 }
 0x79b   : > { %v2527_v57 = vpop.permute.xlu1 %2526 }
 0x7a5   : > { %v3198_v44 = vpop.eup %3197 }
 0x7a6   : > { %v2521_v41 = vmul.f32 %v3198_v44, %v3196_v21 }
 0x7a8   : > { %v2603_v39 = vsel %vm232_vm1, %v2521_v41, -inf }
 0x7a9   : > { %v2604_v42 = vrot.slane %v2603_v39, 4 }
 0x7ab   : > { %v2605_v46 = vmax.f32 %v2603_v39, %v2604_v42 }
 0x7ad   : > { %v2606_v47 = vrot.slane %v2605_v46, 2 }
 0x7af   : > { %v2607_v48 = vmax.f32 %v2605_v46, %v2606_v47 }
 0x7b1   : > { %v2608_v49 = vrot.slane %v2607_v48, 1 }
 0x7b3   : > { %v2609_v50 = vmax.f32 %v2607_v48, %v2608_v49 }
 0x7b5   : > { %vm2610_vm12 = vcmp.ge.f32.partialorder %v2521_v41, %v2609_v50 }
 0x7b6   : > { %v2611_v51 = vsel %vm2610_vm12, %v3340_v52, 8 }
 0x7b7   : > { %v2612_v53 = vsel %vm232_vm1, %v2611_v51, 2147483647 }
 0x7b8   : > { %v2613_v54 = vrot.slane %v2612_v53, 4 }
 0x7ba   : > { %vm2614_vm13 = vcmp.lt.s32.totalorder %v2612_v53, %v2613_v54 }
 0x7bb   : > { %v2615_v45 = vsel %vm2614_vm13, %v2612_v53, %v2613_v54 }
 0x7bc   : > { %v2616_v55 = vrot.slane %v2615_v45, 2 }
 0x7be   : > { %vm2617_vm14 = vcmp.lt.s32.totalorder %v2615_v45, %v2616_v55 }
 0x7bf   : > { %v2618_v56 = vsel %vm2617_vm14, %v2615_v45, %v2616_v55 }
 0x7c0   : > { %v2619_v59 = vrot.slane %v2618_v56, 1 }
 0x7c2   : > { %vm2620_vm15 = vcmp.lt.s32.totalorder %v2618_v56, %v2619_v59 }
 0x7c3   : > { %v2621_v60 = vsel %vm2620_vm15, %v2618_v56, %v2619_v59 }
 0x7c4   : > { %v2331_v61 = vpop.trf.xlu1  ;;  %vm2622_vm2 = vcmp.eq.s32.totalorder %v3340_v52, %v2621_v60 }
 0x7c5   : > { %3133 = vmatprep.mubr.msk.f32.mxu1 %vm453_vm9, %v2331_v61  ;;  %v2921_v62 = vsel %vm2622_vm2, 1.0, %v3207_v0 }
 0x7c6   : > { %2625 = vxpose.xlu0.b32.start.end [1/1] (short) (narrow) %v2921_v62, 16 }
 0x7c8   : > { %v2332_v63 = vpop.trf.xlu1 }
 0x7c9   : > { %3134 = vmatmul.mubr.msk.f32.vlgmr.msra.gmra.mxu1 %vm453_vm9, %v2332_v63 }
 0x7ca   : > { %3144 = vmatpush3.msra.mxu1 %v2527_v57  ;;  %3147 = vmatprep.mubr.msk.f32.mxu1 %vm3208_vm0, %v3207_v0 }
 0x7cb   : > { %3145 = vmatprep.subr.mxu1 %v3207_v0 }
 0x7cc   : > { %3146 = vmatpush3.msra.mxu1 %v2525_v1 }
 0x7cd   : > { %3148 = vmatmul.mubr.msk.f32.vlgmr.msra.gmra.mxu1 %vm232_vm1, %v2521_v41 }
 0x7dc   : > { %v848_v52 = vpop.permute.xlu1 %847 }
 0x7dd   : > { %v853_v2 = vsel %vm232_vm1, %v3421_v4, %v848_v52 }
 0x7de   : > { %856 = vst.msk [vmem:[%s3560_s30] sm:$0xff] %vm855_vm3, %v853_v2 }
 0x7e0   : > { %v1481_v0 = vpop.permute.xlu1 %1480 }
 0x7e1   : > { %v1485_v14 = vsel %vm232_vm1, %v3478_v19, %v1481_v0 }
 0x7e2   : > { %2883 = vst.msk [vmem:[%s3560_s30 + $0x18] sm:$0xff] %vm855_vm3, %v1485_v14 }
 0x7e4   : > { %v1479_v7 = vpop.permute.xlu1 %1478 }
 0x7e5   : > { %v1484_v8 = vsel %vm232_vm1, %v3480_v20, %v1479_v7 }
 0x7e6   : > { %2882 = vst.msk [vmem:[%s3560_s30 + $0x10] sm:$0xff] %vm855_vm3, %v1484_v8 }
 0x7e8   : > { %v2112_v9 = vpop.permute.xlu1 %2111 }
 0x7ec   : > { %v2110_v10 = vpop.permute.xlu1 %2109 }
 0x7ed   : > { %v2115_v11 = vsel %vm232_vm1, %v3519_v6, %v2110_v10  ;;  %v2116_v6 = vsel %vm232_vm1, %v3517_v5, %v2112_v9 }
 0x7ee   : > { %2903 = vst.msk [vmem:[%s3560_s30 + $0x20] sm:$0xff] %vm855_vm3, %v2115_v11  ;;  %2904 = vst.msk [vmem:[%s3560_s30 + $0x28] sm:$0xff] %vm855_vm3, %v2116_v6 }
 0x7f3   : > { %849 = vrot.lane.b32.xlu0 %v3449_v43, %s3210_s27 }
 0x842   : > { %v2641_v4 = vpop.trf.xlu0 }
 0x843   : > { %3152 = vmatprep.mubr.msk.f32.mxu1 %vm453_vm9, %v2641_v4 }
 0x846   : > { %v2642_v12 = vpop.trf.xlu0 }
 0x865   : > { %v850_v13 = vpop.permute.xlu0 %849 }
 0x866   : > { %v854_v20 = vsel %vm232_vm1, %v3419_v3, %v850_v13 }
 0x867   : > { %857 = vst.msk [vmem:[%s3560_s30 + $0x8] sm:$0xff] %vm855_vm3, %v854_v20 }
 0x889   : > { %v3135_v43 = vpop.f32.mrf.mxu1 }
 0x88b   : > { %v2419_v15 = vpop.f32.mrf.mxu1 }
 0x88d   : > { %v2599_v16 = vpop.f32.mrf.mxu1 }
 0x88e   : > { %3150 = vmatprep.subr.mxu1 %v2599_v16 }
 0x88f   : > { %v3149_v17 = vpop.f32.mrf.mxu1  ;;  %3151 = vmatpush3.msra.mxu1 %v2599_v16 }
 0x890   : > { %3153 = vmatmul.mubr.msk.f32.vlgmr.msra.gmra.mxu1 %vm453_vm9, %v2642_v12 }
 0x950   : > { %v3154_v3 = vpop.f32.mrf.mxu1 }
 0x952   : > { %v2729_v19 = vpop.f32.mrf.mxu1 }
 0x953   : > { %2740 = vrot.lane.b32.xlu1 %v2729_v19, %s3210_s27 }
 0x957   : > { %2742 = vrot.lane.b32.xlu1 %v3154_v3, %s3210_s27 }
 0x9c5   : > { %v2741_v5 = vpop.permute.xlu1 %2740 }
 0x9c6   : > { %v2746_v18 = vsel %vm232_vm1, %v2419_v15, %v2741_v5 }
 0x9c7   : > { %2924 = vst.msk [vmem:[%s3560_s30 + $0x30] sm:$0xff] %vm855_vm3, %v2746_v18 }
 0x9c9   : > { %v2743_v21 = vpop.permute.xlu1 %2742 }
 0x9ca   : > { %v2747_v22 = vsel %vm232_vm1, %v3135_v43, %v2743_v21 }
 0x9cb   : > { %2925 = vst.msk [vmem:[%s3560_s30 + $0x38] sm:$0xff] %vm855_vm3, %v2747_v22 }
 0x9cc PF: > { %s13_s12 = sadd.s32 1, %s3205_s12  }
 0x9cd   : > { %p10_p4 = scmp.ge.s32.totalorder %s13_s12, 4  }
 0x9cf   :  { %12 = sbr.rel (!%p10_p4) target bundleno = 1 (0x1), region = 80 }

</bundles_post_ra>
